<compile_context>
chip_gen: v6e
topology: v6e:2x2x1
jax: 0.10.0
libtpu: 0.0.40
codegen_flags: <defaults>
</compile_context>

<pallas_src>
import jax
import jax.numpy as jnp
from jax.experimental import pallas as pl
from jax.experimental.pallas import tpu as pltpu

BN_EPS = 1e-5
LANE = 128


def _round_up(x, m):
    return ((x + m - 1) // m) * m


# --------------------------- Pallas kernels ---------------------------------

def _conv_bn_relu_kernel(x_ref, w_ref, bias_ref, o_ref):
    """Fused 3x3 conv (pad=1, stride=1, BN-scale folded into weights) + bias + ReLU, one image.

    x_ref:    (1, H+2, W+2, Cin_p)   bf16  (spatially pre-padded)
    w_ref:    (3, 3, Cin_p, Cout_p)  bf16  (already multiplied by gamma/sqrt(var+eps))
    bias_ref: (1, Cout_p)            f32   beta - mean*scale
    o_ref:    (1, H*W, Cout_p)       bf16
    """
    H = x_ref.shape[1] - 2
    W = x_ref.shape[2] - 2
    cin = x_ref.shape[3]
    cout = o_ref.shape[2]

    acc = jnp.zeros((H * W, cout), jnp.float32)
    for kh in range(3):                      # 9 shifted taps, K = Cin each (no HBM im2col)
        for kw in range(3):
            win = x_ref[0, pl.ds(kh, H), pl.ds(kw, W), :]          # (H, W, Cin_p) bf16
            win = win.reshape(H * W, cin)                          # lane dim unchanged
            acc = acc + jnp.dot(win, w_ref[kh, kw],
                                preferred_element_type=jnp.float32)
    y = acc + bias_ref[...]                                        # folded BN bias, f32
    o_ref[0] = jnp.maximum(y, 0.0).astype(o_ref.dtype)             # ReLU, store bf16 lane-dense


def _maxpool_kernel(x_ref, o_ref):
    """2x2 / stride-2 max pool over a block of pooled rows.

    x_ref: (TR, 2, Wo, 2*C)  pure reshape of (N,H,W,C): row-pair axis + (w parity, c) in lanes
    o_ref: (TR, Wo, C)
    """
    C = o_ref.shape[2]
    hm = jnp.maximum(x_ref[:, 0, :, :], x_ref[:, 1, :, :])         # max over the H pair
    o_ref[...] = jnp.maximum(hm[:, :, :C], hm[:, :, C:])           # max over the two lane halves (w even/odd)


def _head_kernel(x_ref, w_ref, b_ref, o_ref):
    """AdaptiveAvgPool2d(1) + Flatten + Linear (lane-padded classes).

    x_ref: (N, H*W, C_p) bf16 ; w_ref: (C_p, CLS_p) f32 ; b_ref: (1, CLS_p) f32 ; o_ref: (N, CLS_p) f32
    """
    hw = x_ref.shape[1]
    pooled = jnp.sum(x_ref[...].astype(jnp.float32), axis=1) * (1.0 / hw)
    o_ref[...] = (jnp.dot(pooled, w_ref[...], preferred_element_type=jnp.float32)
                  + b_ref[...])


# --------------------------- Pallas wrappers ---------------------------------

def conv_bn_relu(x_nhwc, w_folded, bias):
    """x_nhwc: (N,H,W,Cin_p) bf16 -> (N,H,W,Cout_p) bf16."""
    N, H, W, cin = x_nhwc.shape
    cout = w_folded.shape[-1]
    xp = jnp.pad(x_nhwc, ((0, 0), (1, 1), (1, 1), (0, 0)))         # spatial halo only
    flops = 2 * N * H * W * 9 * cin * cout
    bytes_accessed = (xp.size + w_folded.size + N * H * W * cout) * 2 + bias.size * 4
    out = pl.pallas_call(
        _conv_bn_relu_kernel,
        out_shape=jax.ShapeDtypeStruct((N, H * W, cout), jnp.bfloat16),
        grid=(N,),
        in_specs=[
            pl.BlockSpec((1, H + 2, W + 2, cin), lambda n: (n, 0, 0, 0)),
            pl.BlockSpec((3, 3, cin, cout), lambda n: (0, 0, 0, 0)),   # weights resident across grid
            pl.BlockSpec((1, cout), lambda n: (0, 0)),
        ],
        out_specs=pl.BlockSpec((1, H * W, cout), lambda n: (n, 0, 0)),
        compiler_params=pltpu.CompilerParams(
            dimension_semantics=("parallel",),
            vmem_limit_bytes=32 * 1024 * 1024,
        ),
        cost_estimate=pl.CostEstimate(flops=flops, transcendentals=0,
                                      bytes_accessed=bytes_accessed),
    )(xp, w_folded, bias)
    return out.reshape(N, H, W, cout)                              # contiguous -> free reshape


def _pick_row_tile(n_rows, row_bytes, budget=2 * 1024 * 1024):
    cap = max(1, min(n_rows, budget // max(row_bytes, 1)))
    if n_rows >= 2:
        cap = min(cap, max(1, n_rows // 2))      # keep >= 2 grid steps so both TCs get work
    t = cap
    while n_rows % t:
        t -= 1
    return t


def maxpool_2x2(x_nhwc):
    N, H, W, C = x_nhwc.shape
    Ho, Wo = H // 2, W // 2
    xr = x_nhwc.reshape(N * Ho, 2, Wo, 2 * C)    # pure contiguous reshape, no transpose copy
    rows = N * Ho
    tr = _pick_row_tile(rows, 2 * Wo * 2 * C * x_nhwc.dtype.itemsize)
    out = pl.pallas_call(
        _maxpool_kernel,
        out_shape=jax.ShapeDtypeStruct((rows, Wo, C), x_nhwc.dtype),
        grid=(rows // tr,),
        in_specs=[pl.BlockSpec((tr, 2, Wo, 2 * C), lambda i: (i, 0, 0, 0))],
        out_specs=pl.BlockSpec((tr, Wo, C), lambda i: (i, 0, 0)),
        compiler_params=pltpu.CompilerParams(dimension_semantics=("parallel",)),
    )(xr)
    return out.reshape(N, Ho, Wo, C)


def head(x_nhwc, w_lin_pad, b_lin_pad):
    N, H, W, C = x_nhwc.shape
    x = x_nhwc.reshape(N, H * W, C)
    clsp = w_lin_pad.shape[1]
    return pl.pallas_call(
        _head_kernel,
        out_shape=jax.ShapeDtypeStruct((N, clsp), jnp.float32),
    )(x, w_lin_pad, b_lin_pad)


# --------------------------- model --------------------------------------------

class VGGPallas:
    """Pallas/TPU mirror of the PyTorch VGG(cfg, num_classes) forward pass.

    # TODO(synk): BatchNorm2d is folded in inference mode (running stats); training-mode
    # batch statistics are not reproduced.
    """

    def __init__(self, cfg, num_classes=10, key=None):
        if key is None:
            key = jax.random.PRNGKey(42)
        self.cfg = cfg
        self.num_classes = num_classes
        self.blocks = []   # 'M' or (w_folded (3,3,Cin_p,Cout_p) bf16, bias (1,Cout_p) f32)
        in_c = 3
        in_cp = _round_up(in_c, LANE)
        self.first_cin, self.first_cinp = in_c, in_cp
        for c in cfg:
            if c == 'M':
                self.blocks.append('M')
                continue
            cp = _round_up(c, LANE)
            key, kw_, kg, kb, km, kv = jax.random.split(key, 6)
            w = jax.random.normal(kw_, (c, in_c, 3, 3), jnp.float32) * 0.1     # torch OIHW, no bias
            gamma = jax.random.uniform(kg, (c,), jnp.float32, 0.5, 1.5)
            beta = jax.random.normal(kb, (c,), jnp.float32) * 0.1
            run_mean = jax.random.normal(km, (c,), jnp.float32) * 0.1
            run_var = jax.random.uniform(kv, (c,), jnp.float32, 0.5, 1.5)
            scale = gamma / jnp.sqrt(run_var + BN_EPS)                          # BN (eval) fold
            bias = beta - run_mean * scale
            w_hwio = jnp.transpose(w, (2, 3, 1, 0))                             # (3,3,Cin,Cout)
            w_folded = w_hwio * scale[None, None, None, :]                      # fold scale into weights
            w_pad = jnp.pad(w_folded, ((0, 0), (0, 0), (0, in_cp - in_c), (0, cp - c)))
            bias_pad = jnp.pad(bias, (0, cp - c)).reshape(1, cp)                # padded channels -> 0
            self.blocks.append((w_pad.astype(jnp.bfloat16), bias_pad))
            in_c, in_cp = c, cp
        clsp = _round_up(num_classes, LANE)
        key, kl, kbl = jax.random.split(key, 3)
        w_lin = jax.random.normal(kl, (num_classes, in_c), jnp.float32) * 0.1
        b_lin = jax.random.normal(kbl, (num_classes,), jnp.float32) * 0.1
        self.w_lin_pad = jnp.pad(jnp.transpose(w_lin),
                                 ((0, in_cp - in_c), (0, clsp - num_classes)))  # (Cin_p, CLS_p)
        self.b_lin_pad = jnp.pad(b_lin, (0, clsp - num_classes)).reshape(1, clsp)

    def _prep_input(self, x_nchw):
        x = jnp.transpose(x_nchw, (0, 2, 3, 1)).astype(jnp.bfloat16)            # NCHW -> NHWC, bf16 MXU path
        return jnp.pad(x, ((0, 0), (0, 0), (0, 0), (0, self.first_cinp - self.first_cin)))

    def __call__(self, x_nchw):
        x = self._prep_input(x_nchw)
        for blk in self.blocks:
            if blk == 'M':
                x = maxpool_2x2(x)
            else:
                w_folded, bias = blk
                x = conv_bn_relu(x, w_folded, bias)
        logits = head(x, self.w_lin_pad, self.b_lin_pad)                        # (N, CLS_p)
        return logits[:, :self.num_classes]

    # plain-JAX reference with the same bf16-operand / f32-accumulate quantisation
    def reference(self, x_nchw):
        x = self._prep_input(x_nchw)
        for blk in self.blocks:
            if blk == 'M':
                N, H, W, C = x.shape
                x = x.reshape(N, H // 2, 2, W // 2, 2, C).max(axis=(2, 4))
            else:
                w_folded, bias = blk
                N, H, W, _ = x.shape
                cout = w_folded.shape[-1]
                xp = jnp.pad(x, ((0, 0), (1, 1), (1, 1), (0, 0))).astype(jnp.float32)
                wf = w_folded.astype(jnp.float32)
                acc = jnp.zeros((N, H, W, cout), jnp.float32)
                for kh in range(3):
                    for kw in range(3):
                        acc = acc + jnp.einsum('nhwc,co->nhwo',
                                               xp[:, kh:kh + H, kw:kw + W, :], wf[kh, kw])
                y = jnp.maximum(acc + bias, 0.0)
                x = y.astype(jnp.bfloat16)
        pooled = x.astype(jnp.float32).mean(axis=(1, 2))
        logits = pooled @ self.w_lin_pad + self.b_lin_pad
        return logits[:, :self.num_classes]


# --------------------------- main ---------------------------------------------

if __name__ == "__main__":
    key = jax.random.PRNGKey(0)
    k_in, k_params = jax.random.split(key)

    cfg = [8, 'M', 16, 'M']          # small synthetic VGG config
    num_classes = 10
    x = jax.random.normal(k_in, (2, 3, 16, 16), jnp.float32)   # NCHW, like PyTorch

    model = VGGPallas(cfg, num_classes=num_classes, key=k_params)

    fwd = jax.jit(model.__call__)
    out = jax.block_until_ready(fwd(x))
    assert out.shape == (2, num_classes), out.shape

    ref = jax.block_until_ready(model.reference(x))
    assert jnp.all(jnp.isfinite(out))
    assert jnp.allclose(out, ref, rtol=2e-2, atol=2e-2), (out, ref)

    print("KERNEL_OK")
</pallas_src>

<mosaic_0001>
module attributes {stable_mosaic.version = 11 : i64} {
  func.func @_conv_bn_relu_kernel(%arg0: i32, %arg1: memref<1x18x18x128xbf16, #tpu.memory_space<vmem>>, %arg2: memref<3x3x128x128xbf16, #tpu.memory_space<vmem>>, %arg3: memref<1x128xf32, #tpu.memory_space<vmem>>, %arg4: memref<1x256x128xbf16, #tpu.memory_space<vmem>>) attributes {dimension_semantics = [#tpu.dimension_semantics<parallel>], iteration_bounds = array<i64: 2>, scalar_prefetch = 0 : i64, scratch_operands = 0 : i64, tpu.core_type = #tpu.core_type<tc>, window_params = [{transform_indices = @transform_0, window_bounds = array<i64: 1, 18, 18, 128>}, {pipeline_mode = #tpu.pipeline_mode<synchronous>, transform_indices = @transform_1, window_bounds = array<i64: 3, 3, 128, 128>}, {pipeline_mode = #tpu.pipeline_mode<synchronous>, transform_indices = @transform_2, window_bounds = array<i64: 1, 128>}, {transform_indices = @transform_3, window_bounds = array<i64: 1, 256, 128>}]} {
    %cst = arith.constant 0.000000e+00 : f32
    %0 = vector.broadcast %cst : f32 to vector<256x128xf32>
    %c0 = arith.constant 0 : index
    %c0_0 = arith.constant 0 : index
    %c0_1 = arith.constant 0 : index
    %c0_2 = arith.constant 0 : index
    %1 = vector.load %arg1[%c0, %c0_0, %c0_1, %c0_2] : memref<1x18x18x128xbf16, #tpu.memory_space<vmem>>, vector<1x16x16x128xbf16>
    %2 = vector.shape_cast %1 : vector<1x16x16x128xbf16> to vector<16x16x128xbf16>
    %3 = vector.shape_cast %2 : vector<16x16x128xbf16> to vector<256x128xbf16>
    %c0_3 = arith.constant 0 : index
    %c0_4 = arith.constant 0 : index
    %c0_5 = arith.constant 0 : index
    %c0_6 = arith.constant 0 : index
    %4 = vector.load %arg2[%c0_3, %c0_4, %c0_5, %c0_6] : memref<3x3x128x128xbf16, #tpu.memory_space<vmem>>, vector<1x1x128x128xbf16>
    %5 = vector.shape_cast %4 : vector<1x1x128x128xbf16> to vector<128x128xbf16>
    %cst_7 = arith.constant dense<0.000000e+00> : vector<256x128xf32>
    %6 = tpu.matmul %3, %5, %cst_7 {dimension_numbers = #tpu.dot_dimension_numbers<[1], [0], [0], [1], [0, 0, 1, 1], [], []>} : vector<256x128xbf16>, vector<128x128xbf16>, vector<256x128xf32> -> vector<256x128xf32>
    %7 = arith.addf %0, %6 : vector<256x128xf32>
    %c0_8 = arith.constant 0 : index
    %c0_9 = arith.constant 0 : index
    %c1 = arith.constant 1 : index
    %c0_10 = arith.constant 0 : index
    %8 = vector.load %arg1[%c0_8, %c0_9, %c1, %c0_10] : memref<1x18x18x128xbf16, #tpu.memory_space<vmem>>, vector<1x16x16x128xbf16>
    %9 = vector.shape_cast %8 : vector<1x16x16x128xbf16> to vector<16x16x128xbf16>
    %10 = vector.shape_cast %9 : vector<16x16x128xbf16> to vector<256x128xbf16>
    %c0_11 = arith.constant 0 : index
    %c1_12 = arith.constant 1 : index
    %c0_13 = arith.constant 0 : index
    %c0_14 = arith.constant 0 : index
    %11 = vector.load %arg2[%c0_11, %c1_12, %c0_13, %c0_14] : memref<3x3x128x128xbf16, #tpu.memory_space<vmem>>, vector<1x1x128x128xbf16>
    %12 = vector.shape_cast %11 : vector<1x1x128x128xbf16> to vector<128x128xbf16>
    %cst_15 = arith.constant dense<0.000000e+00> : vector<256x128xf32>
    %13 = tpu.matmul %10, %12, %cst_15 {dimension_numbers = #tpu.dot_dimension_numbers<[1], [0], [0], [1], [0, 0, 1, 1], [], []>} : vector<256x128xbf16>, vector<128x128xbf16>, vector<256x128xf32> -> vector<256x128xf32>
    %14 = arith.addf %7, %13 : vector<256x128xf32>
    %c0_16 = arith.constant 0 : index
    %c0_17 = arith.constant 0 : index
    %c2 = arith.constant 2 : index
    %c0_18 = arith.constant 0 : index
    %15 = vector.load %arg1[%c0_16, %c0_17, %c2, %c0_18] : memref<1x18x18x128xbf16, #tpu.memory_space<vmem>>, vector<1x16x16x128xbf16>
    %16 = vector.shape_cast %15 : vector<1x16x16x128xbf16> to vector<16x16x128xbf16>
    %17 = vector.shape_cast %16 : vector<16x16x128xbf16> to vector<256x128xbf16>
    %c0_19 = arith.constant 0 : index
    %c2_20 = arith.constant 2 : index
    %c0_21 = arith.constant 0 : index
    %c0_22 = arith.constant 0 : index
    %18 = vector.load %arg2[%c0_19, %c2_20, %c0_21, %c0_22] : memref<3x3x128x128xbf16, #tpu.memory_space<vmem>>, vector<1x1x128x128xbf16>
    %19 = vector.shape_cast %18 : vector<1x1x128x128xbf16> to vector<128x128xbf16>
    %cst_23 = arith.constant dense<0.000000e+00> : vector<256x128xf32>
    %20 = tpu.matmul %17, %19, %cst_23 {dimension_numbers = #tpu.dot_dimension_numbers<[1], [0], [0], [1], [0, 0, 1, 1], [], []>} : vector<256x128xbf16>, vector<128x128xbf16>, vector<256x128xf32> -> vector<256x128xf32>
    %21 = arith.addf %14, %20 : vector<256x128xf32>
    %c0_24 = arith.constant 0 : index
    %c1_25 = arith.constant 1 : index
    %c0_26 = arith.constant 0 : index
    %c0_27 = arith.constant 0 : index
    %22 = vector.load %arg1[%c0_24, %c1_25, %c0_26, %c0_27] : memref<1x18x18x128xbf16, #tpu.memory_space<vmem>>, vector<1x16x16x128xbf16>
    %23 = vector.shape_cast %22 : vector<1x16x16x128xbf16> to vector<16x16x128xbf16>
    %24 = vector.shape_cast %23 : vector<16x16x128xbf16> to vector<256x128xbf16>
    %c1_28 = arith.constant 1 : index
    %c0_29 = arith.constant 0 : index
    %c0_30 = arith.constant 0 : index
    %c0_31 = arith.constant 0 : index
    %25 = vector.load %arg2[%c1_28, %c0_29, %c0_30, %c0_31] : memref<3x3x128x128xbf16, #tpu.memory_space<vmem>>, vector<1x1x128x128xbf16>
    %26 = vector.shape_cast %25 : vector<1x1x128x128xbf16> to vector<128x128xbf16>
    %cst_32 = arith.constant dense<0.000000e+00> : vector<256x128xf32>
    %27 = tpu.matmul %24, %26, %cst_32 {dimension_numbers = #tpu.dot_dimension_numbers<[1], [0], [0], [1], [0, 0, 1, 1], [], []>} : vector<256x128xbf16>, vector<128x128xbf16>, vector<256x128xf32> -> vector<256x128xf32>
    %28 = arith.addf %21, %27 : vector<256x128xf32>
    %c0_33 = arith.constant 0 : index
    %c1_34 = arith.constant 1 : index
    %c1_35 = arith.constant 1 : index
    %c0_36 = arith.constant 0 : index
    %29 = vector.load %arg1[%c0_33, %c1_34, %c1_35, %c0_36] : memref<1x18x18x128xbf16, #tpu.memory_space<vmem>>, vector<1x16x16x128xbf16>
    %30 = vector.shape_cast %29 : vector<1x16x16x128xbf16> to vector<16x16x128xbf16>
    %31 = vector.shape_cast %30 : vector<16x16x128xbf16> to vector<256x128xbf16>
    %c1_37 = arith.constant 1 : index
    %c1_38 = arith.constant 1 : index
    %c0_39 = arith.constant 0 : index
    %c0_40 = arith.constant 0 : index
    %32 = vector.load %arg2[%c1_37, %c1_38, %c0_39, %c0_40] : memref<3x3x128x128xbf16, #tpu.memory_space<vmem>>, vector<1x1x128x128xbf16>
    %33 = vector.shape_cast %32 : vector<1x1x128x128xbf16> to vector<128x128xbf16>
    %cst_41 = arith.constant dense<0.000000e+00> : vector<256x128xf32>
    %34 = tpu.matmul %31, %33, %cst_41 {dimension_numbers = #tpu.dot_dimension_numbers<[1], [0], [0], [1], [0, 0, 1, 1], [], []>} : vector<256x128xbf16>, vector<128x128xbf16>, vector<256x128xf32> -> vector<256x128xf32>
    %35 = arith.addf %28, %34 : vector<256x128xf32>
    %c0_42 = arith.constant 0 : index
    %c1_43 = arith.constant 1 : index
    %c2_44 = arith.constant 2 : index
    %c0_45 = arith.constant 0 : index
    %36 = vector.load %arg1[%c0_42, %c1_43, %c2_44, %c0_45] : memref<1x18x18x128xbf16, #tpu.memory_space<vmem>>, vector<1x16x16x128xbf16>
    %37 = vector.shape_cast %36 : vector<1x16x16x128xbf16> to vector<16x16x128xbf16>
    %38 = vector.shape_cast %37 : vector<16x16x128xbf16> to vector<256x128xbf16>
    %c1_46 = arith.constant 1 : index
    %c2_47 = arith.constant 2 : index
    %c0_48 = arith.constant 0 : index
    %c0_49 = arith.constant 0 : index
    %39 = vector.load %arg2[%c1_46, %c2_47, %c0_48, %c0_49] : memref<3x3x128x128xbf16, #tpu.memory_space<vmem>>, vector<1x1x128x128xbf16>
    %40 = vector.shape_cast %39 : vector<1x1x128x128xbf16> to vector<128x128xbf16>
    %cst_50 = arith.constant dense<0.000000e+00> : vector<256x128xf32>
    %41 = tpu.matmul %38, %40, %cst_50 {dimension_numbers = #tpu.dot_dimension_numbers<[1], [0], [0], [1], [0, 0, 1, 1], [], []>} : vector<256x128xbf16>, vector<128x128xbf16>, vector<256x128xf32> -> vector<256x128xf32>
    %42 = arith.addf %35, %41 : vector<256x128xf32>
    %c0_51 = arith.constant 0 : index
    %c2_52 = arith.constant 2 : index
    %c0_53 = arith.constant 0 : index
    %c0_54 = arith.constant 0 : index
    %43 = vector.load %arg1[%c0_51, %c2_52, %c0_53, %c0_54] : memref<1x18x18x128xbf16, #tpu.memory_space<vmem>>, vector<1x16x16x128xbf16>
    %44 = vector.shape_cast %43 : vector<1x16x16x128xbf16> to vector<16x16x128xbf16>
    %45 = vector.shape_cast %44 : vector<16x16x128xbf16> to vector<256x128xbf16>
    %c2_55 = arith.constant 2 : index
    %c0_56 = arith.constant 0 : index
    %c0_57 = arith.constant 0 : index
    %c0_58 = arith.constant 0 : index
    %46 = vector.load %arg2[%c2_55, %c0_56, %c0_57, %c0_58] : memref<3x3x128x128xbf16, #tpu.memory_space<vmem>>, vector<1x1x128x128xbf16>
    %47 = vector.shape_cast %46 : vector<1x1x128x128xbf16> to vector<128x128xbf16>
    %cst_59 = arith.constant dense<0.000000e+00> : vector<256x128xf32>
    %48 = tpu.matmul %45, %47, %cst_59 {dimension_numbers = #tpu.dot_dimension_numbers<[1], [0], [0], [1], [0, 0, 1, 1], [], []>} : vector<256x128xbf16>, vector<128x128xbf16>, vector<256x128xf32> -> vector<256x128xf32>
    %49 = arith.addf %42, %48 : vector<256x128xf32>
    %c0_60 = arith.constant 0 : index
    %c2_61 = arith.constant 2 : index
    %c1_62 = arith.constant 1 : index
    %c0_63 = arith.constant 0 : index
    %50 = vector.load %arg1[%c0_60, %c2_61, %c1_62, %c0_63] : memref<1x18x18x128xbf16, #tpu.memory_space<vmem>>, vector<1x16x16x128xbf16>
    %51 = vector.shape_cast %50 : vector<1x16x16x128xbf16> to vector<16x16x128xbf16>
    %52 = vector.shape_cast %51 : vector<16x16x128xbf16> to vector<256x128xbf16>
    %c2_64 = arith.constant 2 : index
    %c1_65 = arith.constant 1 : index
    %c0_66 = arith.constant 0 : index
    %c0_67 = arith.constant 0 : index
    %53 = vector.load %arg2[%c2_64, %c1_65, %c0_66, %c0_67] : memref<3x3x128x128xbf16, #tpu.memory_space<vmem>>, vector<1x1x128x128xbf16>
    %54 = vector.shape_cast %53 : vector<1x1x128x128xbf16> to vector<128x128xbf16>
    %cst_68 = arith.constant dense<0.000000e+00> : vector<256x128xf32>
    %55 = tpu.matmul %52, %54, %cst_68 {dimension_numbers = #tpu.dot_dimension_numbers<[1], [0], [0], [1], [0, 0, 1, 1], [], []>} : vector<256x128xbf16>, vector<128x128xbf16>, vector<256x128xf32> -> vector<256x128xf32>
    %56 = arith.addf %49, %55 : vector<256x128xf32>
    %c0_69 = arith.constant 0 : index
    %c2_70 = arith.constant 2 : index
    %c2_71 = arith.constant 2 : index
    %c0_72 = arith.constant 0 : index
    %57 = vector.load %arg1[%c0_69, %c2_70, %c2_71, %c0_72] : memref<1x18x18x128xbf16, #tpu.memory_space<vmem>>, vector<1x16x16x128xbf16>
    %58 = vector.shape_cast %57 : vector<1x16x16x128xbf16> to vector<16x16x128xbf16>
    %59 = vector.shape_cast %58 : vector<16x16x128xbf16> to vector<256x128xbf16>
    %c2_73 = arith.constant 2 : index
    %c2_74 = arith.constant 2 : index
    %c0_75 = arith.constant 0 : index
    %c0_76 = arith.constant 0 : index
    %60 = vector.load %arg2[%c2_73, %c2_74, %c0_75, %c0_76] : memref<3x3x128x128xbf16, #tpu.memory_space<vmem>>, vector<1x1x128x128xbf16>
    %61 = vector.shape_cast %60 : vector<1x1x128x128xbf16> to vector<128x128xbf16>
    %cst_77 = arith.constant dense<0.000000e+00> : vector<256x128xf32>
    %62 = tpu.matmul %59, %61, %cst_77 {dimension_numbers = #tpu.dot_dimension_numbers<[1], [0], [0], [1], [0, 0, 1, 1], [], []>} : vector<256x128xbf16>, vector<128x128xbf16>, vector<256x128xf32> -> vector<256x128xf32>
    %63 = arith.addf %56, %62 : vector<256x128xf32>
    %c0_78 = arith.constant 0 : index
    %c0_79 = arith.constant 0 : index
    %64 = vector.load %arg3[%c0_78, %c0_79] : memref<1x128xf32, #tpu.memory_space<vmem>>, vector<1x128xf32>
    %65 = vector.broadcast %64 : vector<1x128xf32> to vector<256x128xf32>
    %66 = arith.addf %63, %65 : vector<256x128xf32>
    %cst_80 = arith.constant 0.000000e+00 : f32
    %67 = vector.broadcast %cst_80 : f32 to vector<256x128xf32>
    %68 = arith.maximumf %66, %67 : vector<256x128xf32>
    %69 = arith.truncf %68 : vector<256x128xf32> to vector<256x128xbf16>
    %c0_81 = arith.constant 0 : index
    %c0_82 = arith.constant 0 : index
    %c0_83 = arith.constant 0 : index
    %70 = vector.load %arg4[%c0_81, %c0_82, %c0_83] : memref<1x256x128xbf16, #tpu.memory_space<vmem>>, vector<1x256x128xbf16>
    %71 = vector.shape_cast %70 : vector<1x256x128xbf16> to vector<256x128xbf16>
    %72 = vector.shape_cast %69 : vector<256x128xbf16> to vector<1x256x128xbf16>
    tpu.vector_store %arg4[%c0_81, %c0_82, %c0_83], %72 {strides = array<i32>} : memref<1x256x128xbf16, #tpu.memory_space<vmem>>, vector<1x256x128xbf16>,
    return
  }
  func.func @transform_0(%arg0: i32) -> (i32, i32, i32, i32) {
    %c0_i32 = arith.constant 0 : i32
    %c0_i32_0 = arith.constant 0 : i32
    %c0_i32_1 = arith.constant 0 : i32
    %c0_i32_2 = arith.constant 0 : i32
    return %arg0, %c0_i32, %c0_i32_0, %c0_i32_1 : i32, i32, i32, i32
  }
  func.func @transform_1(%arg0: i32) -> (i32, i32, i32, i32) {
    %c0_i32 = arith.constant 0 : i32
    %c0_i32_0 = arith.constant 0 : i32
    %c0_i32_1 = arith.constant 0 : i32
    %c0_i32_2 = arith.constant 0 : i32
    %c0_i32_3 = arith.constant 0 : i32
    return %c0_i32, %c0_i32_0, %c0_i32_1, %c0_i32_2 : i32, i32, i32, i32
  }
  func.func @transform_2(%arg0: i32) -> (i32, i32) {
    %c0_i32 = arith.constant 0 : i32
    %c0_i32_0 = arith.constant 0 : i32
    %c0_i32_1 = arith.constant 0 : i32
    return %c0_i32, %c0_i32_0 : i32, i32
  }
  func.func @transform_3(%arg0: i32) -> (i32, i32, i32) {
    %c0_i32 = arith.constant 0 : i32
    %c0_i32_0 = arith.constant 0 : i32
    %c0_i32_1 = arith.constant 0 : i32
    return %arg0, %c0_i32, %c0_i32_0 : i32, i32, i32
  }
}

module attributes {stable_mosaic.version = 11 : i64} {
  func.func @_maxpool_kernel(%arg0: i32, %arg1: memref<8x2x8x256xbf16, #tpu.memory_space<vmem>>, %arg2: memref<8x8x128xbf16, #tpu.memory_space<vmem>>) attributes {dimension_semantics = [#tpu.dimension_semantics<parallel>], iteration_bounds = array<i64: 2>, scalar_prefetch = 0 : i64, scratch_operands = 0 : i64, tpu.core_type = #tpu.core_type<tc>, window_params = [{transform_indices = @transform_0, window_bounds = array<i64: 8, 2, 8, 256>}, {transform_indices = @transform_1, window_bounds = array<i64: 8, 8, 128>}]} {
    %c0 = arith.constant 0 : index
    %c0_0 = arith.constant 0 : index
    %c0_1 = arith.constant 0 : index
    %c0_2 = arith.constant 0 : index
    %0 = vector.load %arg1[%c0, %c0_0, %c0_1, %c0_2] : memref<8x2x8x256xbf16, #tpu.memory_space<vmem>>, vector<8x1x8x256xbf16>
    %1 = vector.shape_cast %0 : vector<8x1x8x256xbf16> to vector<8x8x256xbf16>
    %c0_3 = arith.constant 0 : index
    %c1 = arith.constant 1 : index
    %c0_4 = arith.constant 0 : index
    %c0_5 = arith.constant 0 : index
    %2 = vector.load %arg1[%c0_3, %c1, %c0_4, %c0_5] : memref<8x2x8x256xbf16, #tpu.memory_space<vmem>>, vector<8x1x8x256xbf16>
    %3 = vector.shape_cast %2 : vector<8x1x8x256xbf16> to vector<8x8x256xbf16>
    %4 = arith.maximumf %1, %3 : vector<8x8x256xbf16>
    %5 = vector.extract_strided_slice %4 {offsets = [0, 0, 0], sizes = [8, 8, 128], strides = [1, 1, 1]} : vector<8x8x256xbf16> to vector<8x8x128xbf16>
    %6 = vector.extract_strided_slice %4 {offsets = [0, 0, 128], sizes = [8, 8, 128], strides = [1, 1, 1]} : vector<8x8x256xbf16> to vector<8x8x128xbf16>
    %7 = arith.maximumf %5, %6 : vector<8x8x128xbf16>
    %c0_6 = arith.constant 0 : index
    %c0_7 = arith.constant 0 : index
    %c0_8 = arith.constant 0 : index
    %8 = vector.load %arg2[%c0_6, %c0_7, %c0_8] : memref<8x8x128xbf16, #tpu.memory_space<vmem>>, vector<8x8x128xbf16>
    tpu.vector_store %arg2[%c0_6, %c0_7, %c0_8], %7 {strides = array<i32>} : memref<8x8x128xbf16, #tpu.memory_space<vmem>>, vector<8x8x128xbf16>,
    return
  }
  func.func @transform_0(%arg0: i32) -> (i32, i32, i32, i32) {
    %c0_i32 = arith.constant 0 : i32
    %c0_i32_0 = arith.constant 0 : i32
    %c0_i32_1 = arith.constant 0 : i32
    %c0_i32_2 = arith.constant 0 : i32
    return %arg0, %c0_i32, %c0_i32_0, %c0_i32_1 : i32, i32, i32, i32
  }
  func.func @transform_1(%arg0: i32) -> (i32, i32, i32) {
    %c0_i32 = arith.constant 0 : i32
    %c0_i32_0 = arith.constant 0 : i32
    %c0_i32_1 = arith.constant 0 : i32
    return %arg0, %c0_i32, %c0_i32_0 : i32, i32, i32
  }
}

module attributes {stable_mosaic.version = 11 : i64} {
  func.func @_conv_bn_relu_kernel(%arg0: i32, %arg1: memref<1x10x10x128xbf16, #tpu.memory_space<vmem>>, %arg2: memref<3x3x128x128xbf16, #tpu.memory_space<vmem>>, %arg3: memref<1x128xf32, #tpu.memory_space<vmem>>, %arg4: memref<1x64x128xbf16, #tpu.memory_space<vmem>>) attributes {dimension_semantics = [#tpu.dimension_semantics<parallel>], iteration_bounds = array<i64: 2>, scalar_prefetch = 0 : i64, scratch_operands = 0 : i64, tpu.core_type = #tpu.core_type<tc>, window_params = [{transform_indices = @transform_0, window_bounds = array<i64: 1, 10, 10, 128>}, {pipeline_mode = #tpu.pipeline_mode<synchronous>, transform_indices = @transform_1, window_bounds = array<i64: 3, 3, 128, 128>}, {pipeline_mode = #tpu.pipeline_mode<synchronous>, transform_indices = @transform_2, window_bounds = array<i64: 1, 128>}, {transform_indices = @transform_3, window_bounds = array<i64: 1, 64, 128>}]} {
    %cst = arith.constant 0.000000e+00 : f32
    %0 = vector.broadcast %cst : f32 to vector<64x128xf32>
    %c0 = arith.constant 0 : index
    %c0_0 = arith.constant 0 : index
    %c0_1 = arith.constant 0 : index
    %c0_2 = arith.constant 0 : index
    %1 = vector.load %arg1[%c0, %c0_0, %c0_1, %c0_2] : memref<1x10x10x128xbf16, #tpu.memory_space<vmem>>, vector<1x8x8x128xbf16>
    %2 = vector.shape_cast %1 : vector<1x8x8x128xbf16> to vector<8x8x128xbf16>
    %3 = vector.shape_cast %2 : vector<8x8x128xbf16> to vector<64x128xbf16>
    %c0_3 = arith.constant 0 : index
    %c0_4 = arith.constant 0 : index
    %c0_5 = arith.constant 0 : index
    %c0_6 = arith.constant 0 : index
    %4 = vector.load %arg2[%c0_3, %c0_4, %c0_5, %c0_6] : memref<3x3x128x128xbf16, #tpu.memory_space<vmem>>, vector<1x1x128x128xbf16>
    %5 = vector.shape_cast %4 : vector<1x1x128x128xbf16> to vector<128x128xbf16>
    %cst_7 = arith.constant dense<0.000000e+00> : vector<64x128xf32>
    %6 = tpu.matmul %3, %5, %cst_7 {dimension_numbers = #tpu.dot_dimension_numbers<[1], [0], [0], [1], [0, 0, 1, 1], [], []>} : vector<64x128xbf16>, vector<128x128xbf16>, vector<64x128xf32> -> vector<64x128xf32>
    %7 = arith.addf %0, %6 : vector<64x128xf32>
    %c0_8 = arith.constant 0 : index
    %c0_9 = arith.constant 0 : index
    %c1 = arith.constant 1 : index
    %c0_10 = arith.constant 0 : index
    %8 = vector.load %arg1[%c0_8, %c0_9, %c1, %c0_10] : memref<1x10x10x128xbf16, #tpu.memory_space<vmem>>, vector<1x8x8x128xbf16>
    %9 = vector.shape_cast %8 : vector<1x8x8x128xbf16> to vector<8x8x128xbf16>
    %10 = vector.shape_cast %9 : vector<8x8x128xbf16> to vector<64x128xbf16>
    %c0_11 = arith.constant 0 : index
    %c1_12 = arith.constant 1 : index
    %c0_13 = arith.constant 0 : index
    %c0_14 = arith.constant 0 : index
    %11 = vector.load %arg2[%c0_11, %c1_12, %c0_13, %c0_14] : memref<3x3x128x128xbf16, #tpu.memory_space<vmem>>, vector<1x1x128x128xbf16>
    %12 = vector.shape_cast %11 : vector<1x1x128x128xbf16> to vector<128x128xbf16>
    %cst_15 = arith.constant dense<0.000000e+00> : vector<64x128xf32>
    %13 = tpu.matmul %10, %12, %cst_15 {dimension_numbers = #tpu.dot_dimension_numbers<[1], [0], [0], [1], [0, 0, 1, 1], [], []>} : vector<64x128xbf16>, vector<128x128xbf16>, vector<64x128xf32> -> vector<64x128xf32>
    %14 = arith.addf %7, %13 : vector<64x128xf32>
    %c0_16 = arith.constant 0 : index
    %c0_17 = arith.constant 0 : index
    %c2 = arith.constant 2 : index
    %c0_18 = arith.constant 0 : index
    %15 = vector.load %arg1[%c0_16, %c0_17, %c2, %c0_18] : memref<1x10x10x128xbf16, #tpu.memory_space<vmem>>, vector<1x8x8x128xbf16>
    %16 = vector.shape_cast %15 : vector<1x8x8x128xbf16> to vector<8x8x128xbf16>
    %17 = vector.shape_cast %16 : vector<8x8x128xbf16> to vector<64x128xbf16>
    %c0_19 = arith.constant 0 : index
    %c2_20 = arith.constant 2 : index
    %c0_21 = arith.constant 0 : index
    %c0_22 = arith.constant 0 : index
    %18 = vector.load %arg2[%c0_19, %c2_20, %c0_21, %c0_22] : memref<3x3x128x128xbf16, #tpu.memory_space<vmem>>, vector<1x1x128x128xbf16>
    %19 = vector.shape_cast %18 : vector<1x1x128x128xbf16> to vector<128x128xbf16>
    %cst_23 = arith.constant dense<0.000000e+00> : vector<64x128xf32>
    %20 = tpu.matmul %17, %19, %cst_23 {dimension_numbers = #tpu.dot_dimension_numbers<[1], [0], [0], [1], [0, 0, 1, 1], [], []>} : vector<64x128xbf16>, vector<128x128xbf16>, vector<64x128xf32> -> vector<64x128xf32>
    %21 = arith.addf %14, %20 : vector<64x128xf32>
    %c0_24 = arith.constant 0 : index
    %c1_25 = arith.constant 1 : index
    %c0_26 = arith.constant 0 : index
    %c0_27 = arith.constant 0 : index
    %22 = vector.load %arg1[%c0_24, %c1_25, %c0_26, %c0_27] : memref<1x10x10x128xbf16, #tpu.memory_space<vmem>>, vector<1x8x8x128xbf16>
    %23 = vector.shape_cast %22 : vector<1x8x8x128xbf16> to vector<8x8x128xbf16>
    %24 = vector.shape_cast %23 : vector<8x8x128xbf16> to vector<64x128xbf16>
    %c1_28 = arith.constant 1 : index
    %c0_29 = arith.constant 0 : index
    %c0_30 = arith.constant 0 : index
    %c0_31 = arith.constant 0 : index
    %25 = vector.load %arg2[%c1_28, %c0_29, %c0_30, %c0_31] : memref<3x3x128x128xbf16, #tpu.memory_space<vmem>>, vector<1x1x128x128xbf16>
    %26 = vector.shape_cast %25 : vector<1x1x128x128xbf16> to vector<128x128xbf16>
    %cst_32 = arith.constant dense<0.000000e+00> : vector<64x128xf32>
    %27 = tpu.matmul %24, %26, %cst_32 {dimension_numbers = #tpu.dot_dimension_numbers<[1], [0], [0], [1], [0, 0, 1, 1], [], []>} : vector<64x128xbf16>, vector<128x128xbf16>, vector<64x128xf32> -> vector<64x128xf32>
    %28 = arith.addf %21, %27 : vector<64x128xf32>
    %c0_33 = arith.constant 0 : index
    %c1_34 = arith.constant 1 : index
    %c1_35 = arith.constant 1 : index
    %c0_36 = arith.constant 0 : index
    %29 = vector.load %arg1[%c0_33, %c1_34, %c1_35, %c0_36] : memref<1x10x10x128xbf16, #tpu.memory_space<vmem>>, vector<1x8x8x128xbf16>
    %30 = vector.shape_cast %29 : vector<1x8x8x128xbf16> to vector<8x8x128xbf16>
    %31 = vector.shape_cast %30 : vector<8x8x128xbf16> to vector<64x128xbf16>
    %c1_37 = arith.constant 1 : index
    %c1_38 = arith.constant 1 : index
    %c0_39 = arith.constant 0 : index
    %c0_40 = arith.constant 0 : index
    %32 = vector.load %arg2[%c1_37, %c1_38, %c0_39, %c0_40] : memref<3x3x128x128xbf16, #tpu.memory_space<vmem>>, vector<1x1x128x128xbf16>
    %33 = vector.shape_cast %32 : vector<1x1x128x128xbf16> to vector<128x128xbf16>
    %cst_41 = arith.constant dense<0.000000e+00> : vector<64x128xf32>
    %34 = tpu.matmul %31, %33, %cst_41 {dimension_numbers = #tpu.dot_dimension_numbers<[1], [0], [0], [1], [0, 0, 1, 1], [], []>} : vector<64x128xbf16>, vector<128x128xbf16>, vector<64x128xf32> -> vector<64x128xf32>
    %35 = arith.addf %28, %34 : vector<64x128xf32>
    %c0_42 = arith.constant 0 : index
    %c1_43 = arith.constant 1 : index
    %c2_44 = arith.constant 2 : index
    %c0_45 = arith.constant 0 : index
    %36 = vector.load %arg1[%c0_42, %c1_43, %c2_44, %c0_45] : memref<1x10x10x128xbf16, #tpu.memory_space<vmem>>, vector<1x8x8x128xbf16>
    %37 = vector.shape_cast %36 : vector<1x8x8x128xbf16> to vector<8x8x128xbf16>
    %38 = vector.shape_cast %37 : vector<8x8x128xbf16> to vector<64x128xbf16>
    %c1_46 = arith.constant 1 : index
    %c2_47 = arith.constant 2 : index
    %c0_48 = arith.constant 0 : index
    %c0_49 = arith.constant 0 : index
    %39 = vector.load %arg2[%c1_46, %c2_47, %c0_48, %c0_49] : memref<3x3x128x128xbf16, #tpu.memory_space<vmem>>, vector<1x1x128x128xbf16>
    %40 = vector.shape_cast %39 : vector<1x1x128x128xbf16> to vector<128x128xbf16>
    %cst_50 = arith.constant dense<0.000000e+00> : vector<64x128xf32>
    %41 = tpu.matmul %38, %40, %cst_50 {dimension_numbers = #tpu.dot_dimension_numbers<[1], [0], [0], [1], [0, 0, 1, 1], [], []>} : vector<64x128xbf16>, vector<128x128xbf16>, vector<64x128xf32> -> vector<64x128xf32>
    %42 = arith.addf %35, %41 : vector<64x128xf32>
    %c0_51 = arith.constant 0 : index
    %c2_52 = arith.constant 2 : index
    %c0_53 = arith.constant 0 : index
    %c0_54 = arith.constant 0 : index
    %43 = vector.load %arg1[%c0_51, %c2_52, %c0_53, %c0_54] : memref<1x10x10x128xbf16, #tpu.memory_space<vmem>>, vector<1x8x8x128xbf16>
    %44 = vector.shape_cast %43 : vector<1x8x8x128xbf16> to vector<8x8x128xbf16>
    %45 = vector.shape_cast %44 : vector<8x8x128xbf16> to vector<64x128xbf16>
    %c2_55 = arith.constant 2 : index
    %c0_56 = arith.constant 0 : index
    %c0_57 = arith.constant 0 : index
    %c0_58 = arith.constant 0 : index
    %46 = vector.load %arg2[%c2_55, %c0_56, %c0_57, %c0_58] : memref<3x3x128x128xbf16, #tpu.memory_space<vmem>>, vector<1x1x128x128xbf16>
    %47 = vector.shape_cast %46 : vector<1x1x128x128xbf16> to vector<128x128xbf16>
    %cst_59 = arith.constant dense<0.000000e+00> : vector<64x128xf32>
    %48 = tpu.matmul %45, %47, %cst_59 {dimension_numbers = #tpu.dot_dimension_numbers<[1], [0], [0], [1], [0, 0, 1, 1], [], []>} : vector<64x128xbf16>, vector<128x128xbf16>, vector<64x128xf32> -> vector<64x128xf32>
    %49 = arith.addf %42, %48 : vector<64x128xf32>
    %c0_60 = arith.constant 0 : index
    %c2_61 = arith.constant 2 : index
    %c1_62 = arith.constant 1 : index
    %c0_63 = arith.constant 0 : index
    %50 = vector.load %arg1[%c0_60, %c2_61, %c1_62, %c0_63] : memref<1x10x10x128xbf16, #tpu.memory_space<vmem>>, vector<1x8x8x128xbf16>
    %51 = vector.shape_cast %50 : vector<1x8x8x128xbf16> to vector<8x8x128xbf16>
    %52 = vector.shape_cast %51 : vector<8x8x128xbf16> to vector<64x128xbf16>
    %c2_64 = arith.constant 2 : index
    %c1_65 = arith.constant 1 : index
    %c0_66 = arith.constant 0 : index
    %c0_67 = arith.constant 0 : index
    %53 = vector.load %arg2[%c2_64, %c1_65, %c0_66, %c0_67] : memref<3x3x128x128xbf16, #tpu.memory_space<vmem>>, vector<1x1x128x128xbf16>
    %54 = vector.shape_cast %53 : vector<1x1x128x128xbf16> to vector<128x128xbf16>
    %cst_68 = arith.constant dense<0.000000e+00> : vector<64x128xf32>
    %55 = tpu.matmul %52, %54, %cst_68 {dimension_numbers = #tpu.dot_dimension_numbers<[1], [0], [0], [1], [0, 0, 1, 1], [], []>} : vector<64x128xbf16>, vector<128x128xbf16>, vector<64x128xf32> -> vector<64x128xf32>
    %56 = arith.addf %49, %55 : vector<64x128xf32>
    %c0_69 = arith.constant 0 : index
    %c2_70 = arith.constant 2 : index
    %c2_71 = arith.constant 2 : index
    %c0_72 = arith.constant 0 : index
    %57 = vector.load %arg1[%c0_69, %c2_70, %c2_71, %c0_72] : memref<1x10x10x128xbf16, #tpu.memory_space<vmem>>, vector<1x8x8x128xbf16>
    %58 = vector.shape_cast %57 : vector<1x8x8x128xbf16> to vector<8x8x128xbf16>
    %59 = vector.shape_cast %58 : vector<8x8x128xbf16> to vector<64x128xbf16>
    %c2_73 = arith.constant 2 : index
    %c2_74 = arith.constant 2 : index
    %c0_75 = arith.constant 0 : index
    %c0_76 = arith.constant 0 : index
    %60 = vector.load %arg2[%c2_73, %c2_74, %c0_75, %c0_76] : memref<3x3x128x128xbf16, #tpu.memory_space<vmem>>, vector<1x1x128x128xbf16>
    %61 = vector.shape_cast %60 : vector<1x1x128x128xbf16> to vector<128x128xbf16>
    %cst_77 = arith.constant dense<0.000000e+00> : vector<64x128xf32>
    %62 = tpu.matmul %59, %61, %cst_77 {dimension_numbers = #tpu.dot_dimension_numbers<[1], [0], [0], [1], [0, 0, 1, 1], [], []>} : vector<64x128xbf16>, vector<128x128xbf16>, vector<64x128xf32> -> vector<64x128xf32>
    %63 = arith.addf %56, %62 : vector<64x128xf32>
    %c0_78 = arith.constant 0 : index
    %c0_79 = arith.constant 0 : index
    %64 = vector.load %arg3[%c0_78, %c0_79] : memref<1x128xf32, #tpu.memory_space<vmem>>, vector<1x128xf32>
    %65 = vector.broadcast %64 : vector<1x128xf32> to vector<64x128xf32>
    %66 = arith.addf %63, %65 : vector<64x128xf32>
    %cst_80 = arith.constant 0.000000e+00 : f32
    %67 = vector.broadcast %cst_80 : f32 to vector<64x128xf32>
    %68 = arith.maximumf %66, %67 : vector<64x128xf32>
    %69 = arith.truncf %68 : vector<64x128xf32> to vector<64x128xbf16>
    %c0_81 = arith.constant 0 : index
    %c0_82 = arith.constant 0 : index
    %c0_83 = arith.constant 0 : index
    %70 = vector.load %arg4[%c0_81, %c0_82, %c0_83] : memref<1x64x128xbf16, #tpu.memory_space<vmem>>, vector<1x64x128xbf16>
    %71 = vector.shape_cast %70 : vector<1x64x128xbf16> to vector<64x128xbf16>
    %72 = vector.shape_cast %69 : vector<64x128xbf16> to vector<1x64x128xbf16>
    tpu.vector_store %arg4[%c0_81, %c0_82, %c0_83], %72 {strides = array<i32>} : memref<1x64x128xbf16, #tpu.memory_space<vmem>>, vector<1x64x128xbf16>,
    return
  }
  func.func @transform_0(%arg0: i32) -> (i32, i32, i32, i32) {
    %c0_i32 = arith.constant 0 : i32
    %c0_i32_0 = arith.constant 0 : i32
    %c0_i32_1 = arith.constant 0 : i32
    %c0_i32_2 = arith.constant 0 : i32
    return %arg0, %c0_i32, %c0_i32_0, %c0_i32_1 : i32, i32, i32, i32
  }
  func.func @transform_1(%arg0: i32) -> (i32, i32, i32, i32) {
    %c0_i32 = arith.constant 0 : i32
    %c0_i32_0 = arith.constant 0 : i32
    %c0_i32_1 = arith.constant 0 : i32
    %c0_i32_2 = arith.constant 0 : i32
    %c0_i32_3 = arith.constant 0 : i32
    return %c0_i32, %c0_i32_0, %c0_i32_1, %c0_i32_2 : i32, i32, i32, i32
  }
  func.func @transform_2(%arg0: i32) -> (i32, i32) {
    %c0_i32 = arith.constant 0 : i32
    %c0_i32_0 = arith.constant 0 : i32
    %c0_i32_1 = arith.constant 0 : i32
    return %c0_i32, %c0_i32_0 : i32, i32
  }
  func.func @transform_3(%arg0: i32) -> (i32, i32, i32) {
    %c0_i32 = arith.constant 0 : i32
    %c0_i32_0 = arith.constant 0 : i32
    %c0_i32_1 = arith.constant 0 : i32
    return %arg0, %c0_i32, %c0_i32_0 : i32, i32, i32
  }
}

module attributes {stable_mosaic.version = 11 : i64} {
  func.func @_maxpool_kernel(%arg0: i32, %arg1: memref<4x2x4x256xbf16, #tpu.memory_space<vmem>>, %arg2: memref<4x4x128xbf16, #tpu.memory_space<vmem>>) attributes {dimension_semantics = [#tpu.dimension_semantics<parallel>], iteration_bounds = array<i64: 2>, scalar_prefetch = 0 : i64, scratch_operands = 0 : i64, tpu.core_type = #tpu.core_type<tc>, window_params = [{transform_indices = @transform_0, window_bounds = array<i64: 4, 2, 4, 256>}, {transform_indices = @transform_1, window_bounds = array<i64: 4, 4, 128>}]} {
    %c0 = arith.constant 0 : index
    %c0_0 = arith.constant 0 : index
    %c0_1 = arith.constant 0 : index
    %c0_2 = arith.constant 0 : index
    %0 = vector.load %arg1[%c0, %c0_0, %c0_1, %c0_2] : memref<4x2x4x256xbf16, #tpu.memory_space<vmem>>, vector<4x1x4x256xbf16>
    %1 = vector.shape_cast %0 : vector<4x1x4x256xbf16> to vector<4x4x256xbf16>
    %c0_3 = arith.constant 0 : index
    %c1 = arith.constant 1 : index
    %c0_4 = arith.constant 0 : index
    %c0_5 = arith.constant 0 : index
    %2 = vector.load %arg1[%c0_3, %c1, %c0_4, %c0_5] : memref<4x2x4x256xbf16, #tpu.memory_space<vmem>>, vector<4x1x4x256xbf16>
    %3 = vector.shape_cast %2 : vector<4x1x4x256xbf16> to vector<4x4x256xbf16>
    %4 = arith.maximumf %1, %3 : vector<4x4x256xbf16>
    %5 = vector.extract_strided_slice %4 {offsets = [0, 0, 0], sizes = [4, 4, 128], strides = [1, 1, 1]} : vector<4x4x256xbf16> to vector<4x4x128xbf16>
    %6 = vector.extract_strided_slice %4 {offsets = [0, 0, 128], sizes = [4, 4, 128], strides = [1, 1, 1]} : vector<4x4x256xbf16> to vector<4x4x128xbf16>
    %7 = arith.maximumf %5, %6 : vector<4x4x128xbf16>
    %c0_6 = arith.constant 0 : index
    %c0_7 = arith.constant 0 : index
    %c0_8 = arith.constant 0 : index
    %8 = vector.load %arg2[%c0_6, %c0_7, %c0_8] : memref<4x4x128xbf16, #tpu.memory_space<vmem>>, vector<4x4x128xbf16>
    tpu.vector_store %arg2[%c0_6, %c0_7, %c0_8], %7 {strides = array<i32>} : memref<4x4x128xbf16, #tpu.memory_space<vmem>>, vector<4x4x128xbf16>,
    return
  }
  func.func @transform_0(%arg0: i32) -> (i32, i32, i32, i32) {
    %c0_i32 = arith.constant 0 : i32
    %c0_i32_0 = arith.constant 0 : i32
    %c0_i32_1 = arith.constant 0 : i32
    %c0_i32_2 = arith.constant 0 : i32
    return %arg0, %c0_i32, %c0_i32_0, %c0_i32_1 : i32, i32, i32, i32
  }
  func.func @transform_1(%arg0: i32) -> (i32, i32, i32) {
    %c0_i32 = arith.constant 0 : i32
    %c0_i32_0 = arith.constant 0 : i32
    %c0_i32_1 = arith.constant 0 : i32
    return %arg0, %c0_i32, %c0_i32_0 : i32, i32, i32
  }
}

module attributes {stable_mosaic.version = 11 : i64} {
  func.func @_head_kernel(%arg0: memref<2x16x128xbf16, #tpu.memory_space<vmem>>, %arg1: memref<128x128xf32, #tpu.memory_space<vmem>>, %arg2: memref<1x128xf32, #tpu.memory_space<vmem>>, %arg3: memref<2x128xf32, #tpu.memory_space<vmem>>) attributes {dimension_semantics = [], scalar_prefetch = 0 : i64, scratch_operands = 0 : i64, tpu.core_type = #tpu.core_type<tc>} {
    %c0 = arith.constant 0 : index
    %c0_0 = arith.constant 0 : index
    %c0_1 = arith.constant 0 : index
    %0 = vector.load %arg0[%c0, %c0_0, %c0_1] : memref<2x16x128xbf16, #tpu.memory_space<vmem>>, vector<2x16x128xbf16>
    %1 = arith.extf %0 : vector<2x16x128xbf16> to vector<2x16x128xf32>
    %cst = arith.constant dense<0.000000e+00> : vector<2x128xf32>
    %2 = vector.multi_reduction <add>, %1, %cst [1] : vector<2x16x128xf32> to vector<2x128xf32>
    %cst_2 = arith.constant 6.250000e-02 : f32
    %3 = vector.broadcast %cst_2 : f32 to vector<2x128xf32>
    %4 = arith.mulf %2, %3 : vector<2x128xf32>
    %c0_3 = arith.constant 0 : index
    %c0_4 = arith.constant 0 : index
    %5 = vector.load %arg1[%c0_3, %c0_4] : memref<128x128xf32, #tpu.memory_space<vmem>>, vector<128x128xf32>
    %cst_5 = arith.constant dense<0.000000e+00> : vector<2x128xf32>
    %6 = tpu.matmul %4, %5, %cst_5 {dimension_numbers = #tpu.dot_dimension_numbers<[1], [0], [0], [1], [0, 0, 1, 1], [], []>} : vector<2x128xf32>, vector<128x128xf32>, vector<2x128xf32> -> vector<2x128xf32>
    %c0_6 = arith.constant 0 : index
    %c0_7 = arith.constant 0 : index
    %7 = vector.load %arg2[%c0_6, %c0_7] : memref<1x128xf32, #tpu.memory_space<vmem>>, vector<1x128xf32>
    %8 = vector.broadcast %7 : vector<1x128xf32> to vector<2x128xf32>
    %9 = arith.addf %6, %8 : vector<2x128xf32>
    %c0_8 = arith.constant 0 : index
    %c0_9 = arith.constant 0 : index
    %10 = vector.load %arg3[%c0_8, %c0_9] : memref<2x128xf32, #tpu.memory_space<vmem>>, vector<2x128xf32>
    tpu.vector_store %arg3[%c0_8, %c0_9], %9 {strides = array<i32>} : memref<2x128xf32, #tpu.memory_space<vmem>>, vector<2x128xf32>,
    return
  }
}

</mosaic_0001>

<bundles_post_ra>
// kernel: a_call__.6
= control target key start
LH: loop header
LB: loop body
LE: loop exit
PB: predicated region body
PF: predicated region fallthrough
CT: control target
= control target key end

     0   :  { %s318_s6 = smov 0   ;;  %s339_s0 = inlined_call_operand.vmem [shape: bf16[16,2,8,256], index: 0, kind: input, shape index: {}]   ;;  %s340_s1 = inlined_call_operand.vmem [shape: bf16[16,8,128], index: 1, kind: output, shape index: {}]  }
   0x1 LB: > { %s244_s7 = sadd.s32 4294967295, %s306_s6   ;;  %p248_p0 = scmp.ge.s32.totalorder %s306_s6, 1  ;;  %s306_s6 = sphi %s318_s6, %s11_s6  }
   0x2   : > { %p89_p1 = scmp.lt.s32.totalorder %s306_s6, 3 }
   0x4   : > { %p90_p2 = pnand %p248_p0, %p89_p1 }
   0x5   : > { %s249_s8 = sshll.u32 (!%p90_p2), %s244_s7, 3 }
   0x6   : > { %93 = sbr.rel (%p90_p2) target bundleno = 29 (0x1d), region = 24  ;;  %p111_p3 = scmp.lt.s32.totalorder (!%p90_p2), %s249_s8, 15 }
   0xb   : > { %s342_s8 = smov (!%p111_p3, %s249_s8), 15 }
   0xc   : > { %s264_s9 = sshll.u32 %s342_s8, 4  ;;  %s253_s13 = sshll.u32 %s342_s8, 2 }
   0xd   : > { %s115_s12 = scalar_lea.vmem %s339_s0, %s264_s9  ;;  %s121_s16 = scalar_lea.vmem %s340_s1, %s253_s13 }
   0xe   : > { %v123_v0 = vld [vmem:[%s115_s12] sm:$0xff]  ;;  %v124_v1 = vld [vmem:[%s115_s12 + $0x10] sm:$0xff]  ;;  %v254_v2 = vld [vmem:[%s115_s12 + $0x8] sm:$0xff] }
   0xf   : > { %v255_v3 = vld [vmem:[%s115_s12 + $0x18] sm:$0xff]  ;;  %v140_v4 = vmax.bf16 %v254_v2, %v123_v0  ;;  %v125_v5 = vld [vmem:[%s115_s12 + $0x20] sm:$0xff]  ;;  %v126_v6 = vld [vmem:[%s115_s12 + $0x30] sm:$0xff] }
  0x10   : > { %v141_v7 = vmax.bf16 %v255_v3, %v124_v1  ;;  %v256_v8 = vld [vmem:[%s115_s12 + $0x28] sm:$0xff]  ;;  %v257_v9 = vld [vmem:[%s115_s12 + $0x38] sm:$0xff]  ;;  %v127_v10 = vld [vmem:[%s115_s12 + $0x40] sm:$0xff] }
  0x11   : > { %v156_v11 = vrot.slane %v140_v4, 4  ;;  %v142_v12 = vmax.bf16 %v256_v8, %v125_v5  ;;  %v143_v13 = vmax.bf16 %v257_v9, %v126_v6  ;;  %v128_v14 = vld [vmem:[%s115_s12 + $0x50] sm:$0xff]  ;;  %v258_v15 = vld [vmem:[%s115_s12 + $0x48] sm:$0xff]  ;;  %v259_v16 = vld [vmem:[%s115_s12 + $0x58] sm:$0xff] }
  0x12   : > { %v157_v17 = vrot.slane %v141_v7, 4  ;;  %v144_v18 = vmax.bf16 %v258_v15, %v127_v10  ;;  %v145_v19 = vmax.bf16 %v259_v16, %v128_v14  ;;  %v129_v20 = vld [vmem:[%s115_s12 + $0x60] sm:$0xff]  ;;  %v130_v21 = vld [vmem:[%s115_s12 + $0x70] sm:$0xff]  ;;  %v260_v22 = vld [vmem:[%s115_s12 + $0x68] sm:$0xff] }
  0x13   : > { %v172_v23 = vmax.bf16 %v156_v11, %v140_v4  ;;  %v158_v24 = vrot.slane %v142_v12, 4  ;;  %v159_v25 = vrot.slane %v143_v13, 4  ;;  %v261_v26 = vld [vmem:[%s115_s12 + $0x78] sm:$0xff]  ;;  %v146_v27 = vmax.bf16 %v260_v22, %v129_v20 }
  0x14   : > { %v173_v28 = vmax.bf16 %v157_v17, %v141_v7  ;;  %v160_v29 = vrot.slane %v144_v18, 4  ;;  %v161_v30 = vrot.slane %v145_v19, 4  ;;  %v147_v31 = vmax.bf16 %v261_v26, %v130_v21 }
  0x15   : > { %v174_v32 = vmax.bf16 %v158_v24, %v142_v12  ;;  %v175_v33 = vmax.bf16 %v159_v25, %v143_v13  ;;  %v162_v34 = vrot.slane %v146_v27, 4 }
  0x16   : > { %v285_v35 = vcombine.low %v172_v23, %v173_v28  ;;  %v176_v36 = vmax.bf16 %v160_v29, %v144_v18  ;;  %v177_v37 = vmax.bf16 %v161_v30, %v145_v19  ;;  %v163_v38 = vrot.slane %v147_v31, 4 }
  0x17   : > { %v286_v39 = vcombine.low %v174_v32, %v175_v33  ;;  %v178_v40 = vmax.bf16 %v162_v34, %v146_v27 }
  0x18   : > { %269 = vst [vmem:[%s121_s16] sm:$0xff] %v285_v35   ;;  %v288_v41 = vcombine.low %v176_v36, %v177_v37  ;;  %v179_v42 = vmax.bf16 %v163_v38, %v147_v31 }
  0x19   : > { %287 = vst [vmem:[%s121_s16 + $0x8] sm:$0xff] %v286_v39  }
  0x1a   : > { %289 = vst [vmem:[%s121_s16 + $0x10] sm:$0xff] %v288_v41   ;;  %v290_v43 = vcombine.low %v178_v40, %v179_v42 }
  0x1c   : > { %291 = vst [vmem:[%s121_s16 + $0x18] sm:$0xff] %v290_v43  }
  0x1d PF: > { %s11_s6 = sadd.s32 1, %s306_s6  }
  0x1e   : > { %p8_p4 = scmp.ge.s32.totalorder %s11_s6, 4  }
  0x20   :  { %10 = sbr.rel (!%p8_p4) target bundleno = 1 (0x1), region = 55 }

// kernel: a_call__.8
= control target key start
LH: loop header
LB: loop body
LE: loop exit
PB: predicated region body
PF: predicated region fallthrough
CT: control target
= control target key end

     0   :  { %s255_s6 = smov 0   ;;  %s272_s0 = inlined_call_operand.vmem [shape: bf16[8,2,4,256], index: 0, kind: input, shape index: {}]   ;;  %s273_s1 = inlined_call_operand.vmem [shape: bf16[8,4,128], index: 1, kind: output, shape index: {}]  }
   0x1 LB: > { %s212_s7 = sadd.s32 4294967295, %s243_s6   ;;  %p216_p0 = scmp.ge.s32.totalorder %s243_s6, 1  ;;  %s243_s6 = sphi %s255_s6, %s11_s6  }
   0x2   : > { %p89_p1 = scmp.lt.s32.totalorder %s243_s6, 3 }
   0x4   : > { %p90_p2 = pnand %p216_p0, %p89_p1 }
   0x5   : > { %s217_s8 = sshll.u32 (!%p90_p2), %s212_s7, 2 }
   0x6   : > { %93 = sbr.rel (%p90_p2) target bundleno = 24 (0x18), region = 24  ;;  %p111_p3 = scmp.lt.s32.totalorder (!%p90_p2), %s217_s8, 7 }
   0xb   : > { %s275_s8 = smov (!%p111_p3, %s217_s8), 7 }
   0xc   : > { %s228_s9 = sshll.u32 %s275_s8, 3  ;;  %s221_s13 = sshll.u32 %s275_s8, 1 }
   0xd   : > { %s115_s12 = scalar_lea.vmem %s272_s0, %s228_s9  ;;  %s121_s16 = scalar_lea.vmem %s273_s1, %s221_s13 }
   0xe   : > { %v123_v0 = vld [vmem:[%s115_s12] sm:$0xf]  ;;  %v222_v1 = vld [vmem:[%s115_s12 + $0x4] sm:$0xf]  ;;  %v124_v2 = vld [vmem:[%s115_s12 + $0x8] sm:$0xf] }
   0xf   : > { %v132_v3 = vmax.bf16 %v222_v1, %v123_v0  ;;  %v223_v4 = vld [vmem:[%s115_s12 + $0xc] sm:$0xf]  ;;  %v125_v5 = vld [vmem:[%s115_s12 + $0x10] sm:$0xf]  ;;  %v224_v6 = vld [vmem:[%s115_s12 + $0x14] sm:$0xf] }
  0x10   : > { %v133_v7 = vmax.bf16 %v223_v4, %v124_v2  ;;  %v134_v8 = vmax.bf16 %v224_v6, %v125_v5  ;;  %v126_v9 = vld [vmem:[%s115_s12 + $0x18] sm:$0xf]  ;;  %v225_v10 = vld [vmem:[%s115_s12 + $0x1c] sm:$0xf] }
  0x11   : > { %v140_v11 = vrot.slane %v132_v3, 2  ;;  %v135_v12 = vmax.bf16 %v225_v10, %v126_v9 }
  0x12   : > { %v141_v13 = vrot.slane %v133_v7, 2  ;;  %v142_v14 = vrot.slane %v134_v8, 2 }
  0x13   : > { %v148_v15 = vmax.bf16 %v140_v11, %v132_v3  ;;  %v143_v16 = vrot.slane %v135_v12, 2 }
  0x14   : > { %v149_v17 = vmax.bf16 %v141_v13, %v133_v7  ;;  %v150_v18 = vmax.bf16 %v142_v14, %v134_v8 }
  0x15   : > { %152 = vst [vmem:[%s121_s16] sm:$0x3] %v148_v15  ;;  %v151_v19 = vmax.bf16 %v143_v16, %v135_v12 }
  0x16   : > { %153 = vst [vmem:[%s121_s16 + $0x2] sm:$0x3] %v149_v17  ;;  %154 = vst [vmem:[%s121_s16 + $0x4] sm:$0x3] %v150_v18 }
  0x17   : > { %155 = vst [vmem:[%s121_s16 + $0x6] sm:$0x3] %v151_v19 }
  0x18 PF: > { %s11_s6 = sadd.s32 1, %s243_s6  }
  0x19   : > { %p8_p4 = scmp.ge.s32.totalorder %s11_s6, 4  }
  0x1b   :  { %10 = sbr.rel (!%p8_p4) target bundleno = 1 (0x1), region = 55 }

// kernel: a_call__.9
= control target key start
LH: loop header
LB: loop body
LE: loop exit
PB: predicated region body
PF: predicated region fallthrough
CT: control target
= control target key end

     0   :  { %v239_v1 = vmov 0.0   ;;  %vm240_vm0 = vmmov 0   ;;  %s339_s0 = inlined_call_operand.vmem [shape: bf16[2,16,128], index: 0, kind: input, shape index: {}]   ;;  %s340_s1 = inlined_call_operand.vmem [shape: f32[128,128], index: 1, kind: input, shape index: {}]   ;;  %s341_s2 = inlined_call_operand.vmem [shape: f32[1,128], index: 2, kind: input, shape index: {}]   ;;  %s342_s3 = inlined_call_operand.hbm [shape: f32[2,128], index: 3, kind: output, shape index: {}]  }
   0x1   :  { %v54_v0 = vld [vmem:[%s340_s1 + $0x78] sm:$0xff]  ;;  %179 = vmatprep.subr.mxu0 %v239_v1  ;;  %v53_v2 = vld [vmem:[%s340_s1 + $0x70] sm:$0xff]  ;;  %211 = vmatprep.mubr.msk.f32.mxu0 %vm240_vm0, %v239_v1  ;;  %v52_v3 = vld [vmem:[%s340_s1 + $0x68] sm:$0xff] }
   0x2   :  { %180 = vmatpush3.msra.mxu0 %v54_v0  ;;  %v51_v4 = vld [vmem:[%s340_s1 + $0x60] sm:$0xff]  ;;  %v161_v6 = vld [vmem:[%s339_s0 + $0x8] sm:$0xff]  }
   0x3   :  { %181 = vmatprep.subr.mxu0 %v239_v1  ;;  %v154_v5 = vld [vmem:[%s339_s0] sm:$0xff]   ;;  %v159_v9 = vunpack.c.l.bf16 %v161_v6  ;;  %v160_v10 = vunpack.c.h.bf16 %v161_v6 }
   0x4   :  { %182 = vmatpush3.msra.mxu0 %v53_v2  ;;  %v155_v7 = vunpack.c.l.bf16 %v154_v5  ;;  %v156_v8 = vunpack.c.h.bf16 %v154_v5 }
   0x5   :  { %183 = vmatprep.subr.mxu0 %v239_v1 }
   0x6   :  { %184 = vmatpush3.msra.mxu0 %v52_v3 }
   0x7   :  { %8 = vsyncpa [#allocation3], 0  ;;  %185 = vmatprep.subr.mxu0 %v239_v1  ;;  %v50_v11 = vld [vmem:[%s340_s1 + $0x58] sm:$0xff]  ;;  %v23_v12 = vadd.f32 %v156_v8, %v155_v7  ;;  %v30_v13 = vadd.f32 %v160_v10, %v159_v9  ;;  %v49_v14 = vld [vmem:[%s340_s1 + $0x50] sm:$0xff]  ;;  %vm64_vm1 = vcmask 1041409   ;;  %s241_s22 = smov [#allocation2]  }
   0x8   :  { %186 = vmatpush3.msra.mxu0 %v51_v4  ;;  %v48_v17 = vld [vmem:[%s340_s1 + $0x48] sm:$0xff]  ;;  %v47_v20 = vld [vmem:[%s340_s1 + $0x40] sm:$0xff]  ;;  %v46_v23 = vld [vmem:[%s340_s1 + $0x38] sm:$0xff]  ;;  %s144_s23 = sshll.u32 %s241_s22, 4  ;;  %s145_s23 = int_to_ptr.vmem [resolvable:$true] %s144_s23 }
   0x9   :  { %187 = vmatprep.subr.mxu0 %v239_v1  ;;  %v24_v15 = vrot.slane %v23_v12, 4  ;;  %v31_v16 = vrot.slane %v30_v13, 4  ;;  %v45_v26 = vld [vmem:[%s340_s1 + $0x30] sm:$0xff]  ;;  %v44_v29 = vld [vmem:[%s340_s1 + $0x28] sm:$0xff]  ;;  %v43_v30 = vld [vmem:[%s340_s1 + $0x20] sm:$0xff]  ;;  %s217_s24 = scalar_lea.vmem %s145_s23, 32  ;;  %p222_p1 = scmp.lt.s32.totalorder %s145_s23, %s145_s23 }
   0xa   :  { %188 = vmatpush3.msra.mxu0 %v50_v11  ;;  %v42_v33 = vld [vmem:[%s340_s1 + $0x18] sm:$0xff]  ;;  %v41_v34 = vld [vmem:[%s340_s1 + $0x10] sm:$0xff]  ;;  %v40_v37 = vld [vmem:[%s340_s1 + $0x8] sm:$0xff]  ;;  %p218_p0 = scmp.ne.s32.totalorder %s145_s23, %s217_s24  ;;  %p223_p2 = scmp.lt.s32.totalorder %s217_s24, %s217_s24 }
   0xb   :  { %189 = vmatprep.subr.mxu0 %v239_v1  ;;  %v25_v18 = vadd.f32 %v24_v15, %v23_v12  ;;  %v32_v19 = vadd.f32 %v31_v16, %v30_v13  ;;  %v39_v38 = vld [vmem:[%s340_s1] sm:$0xff] }
   0xc   :  { %190 = vmatpush3.msra.mxu0 %v49_v14  ;;  %v152_v40 = vld [vmem:[%s341_s2] ss:$0 sm:$0xff]  ;;  %p224_p3 = por %p223_p2, %p222_p1 }
   0xd   :  { %191 = vmatprep.subr.mxu0 %v239_v1  ;;  %v26_v21 = vrot.slane %v25_v18, 2  ;;  %v33_v22 = vrot.slane %v32_v19, 2 }
   0xe   :  { %192 = vmatpush3.msra.mxu0 %v48_v17  ;;  %p225_p4 = pnand %p224_p3, %p218_p0 }
   0xf   :  { %193 = vmatprep.subr.mxu0 %v239_v1  ;;  %v27_v24 = vadd.f32 %v26_v21, %v25_v18  ;;  %v34_v25 = vadd.f32 %v33_v22, %v32_v19 }
  0x10   :  { %194 = vmatpush3.msra.mxu0 %v47_v20 }
  0x11   :  { %195 = vmatprep.subr.mxu0 %v239_v1  ;;  %v28_v27 = vrot.slane %v27_v24, 1  ;;  %v35_v28 = vrot.slane %v34_v25, 1 }
  0x12   :  { %196 = vmatpush3.msra.mxu0 %v46_v23 }
  0x13   :  { %197 = vmatprep.subr.mxu0 %v239_v1  ;;  %v29_v31 = vadd.f32 %v28_v27, %v27_v24  ;;  %v36_v32 = vadd.f32 %v35_v28, %v34_v25 }
  0x14   :  { %198 = vmatpush3.msra.mxu0 %v45_v26 }
  0x15   :  { %199 = vmatprep.subr.mxu0 %v239_v1  ;;  %v37_v35 = vmul.f32 0.0625, %v29_v31  ;;  %v38_v36 = vmul.f32 0.0625, %v36_v32 }
  0x16   :  { %200 = vmatpush3.msra.mxu0 %v44_v29 }
  0x17   :  { %201 = vmatprep.subr.mxu0 %v239_v1  ;;  %v65_v39 = vsel %vm64_vm1, %v38_v36, %v37_v35 }
  0x18   :  { %202 = vmatpush3.msra.mxu0 %v43_v30 }
  0x19   :  { %203 = vmatprep.subr.mxu0 %v239_v1 }
  0x1a   :  { %204 = vmatpush3.msra.mxu0 %v42_v33 }
  0x1b   :  { %205 = vmatprep.subr.mxu0 %v239_v1 }
  0x1c   :  { %206 = vmatpush3.msra.mxu0 %v41_v34 }
  0x1d   :  { %207 = vmatprep.subr.mxu0 %v239_v1 }
  0x1e   :  { %208 = vmatpush3.msra.mxu0 %v40_v37 }
  0x1f   :  { %209 = vmatprep.subr.mxu0 %v239_v1 }
  0x20   :  { %210 = vmatpush3.msra.mxu0 %v39_v38 }
  0x21   :  { %212 = vmatmul.mubr.f32.vlgmr.msra.gmra.mxu0 %v65_v39 }
  0xe1   :  { %v133_v41 = vpop.f32.mrf.mxu0 }
  0xe2   :  { %v134_v42 = vadd.f32 %v152_v40, %v133_v41 }
  0xe3   :  { %v213_v43 = vpop.f32.mrf.mxu0 }
  0xe4   :  { %137 = vst [vmem:[#allocation2] sm:$0x3] %v134_v42 }
  0xe5   :  { %228 = shalt.err (!%p225_p4)
}
  0xe6   :  { %147 = dma.vmem_to_hbm [thread:$0]  %s145_s23, 32, %s342_s3, [#allocation3]  }
  0xe7   :  { %237 = dma.done.wait [#allocation3], 32  }
  0xe8   :  { %238 = vsyncadd [#allocation3], 4294967264 }
  0xe9   :  { %151 = vsyncpa [#allocation3], 1 }

// kernel: a_call__.7
= control target key start
LH: loop header
LB: loop body
LE: loop exit
PB: predicated region body
PF: predicated region fallthrough
CT: control target
= control target key end

     0   :  { %s3095_s12 = smov 0   ;;  %s3641_s0 = inlined_call_operand.vmem [shape: bf16[2,10,10,128], index: 0, kind: input, shape index: {}]   ;;  %s3642_s1 = inlined_call_operand.vmem [shape: bf16[3,3,128,128], index: 1, kind: input, shape index: {}]   ;;  %s3643_s2 = inlined_call_operand.vmem [shape: f32[1,128], index: 2, kind: input, shape index: {}]   ;;  %s3644_s3 = inlined_call_operand.vmem [shape: bf16[2,64,128], index: 3, kind: output, shape index: {}]  }
   0x1 LB: > { %s2259_s13 = sadd.s32 4294967295, %s3073_s12   ;;  %p2263_p0 = scmp.ge.s32.totalorder %s3073_s12, 1  ;;  %s3073_s12 = sphi %s3095_s12, %s13_s12  }
   0x2   : > { %p137_p1 = scmp.lt.s32.totalorder %s3073_s12, 3 }
   0x4   : > { %p138_p2 = pnand %p2263_p0, %p137_p1 }
   0x6   : > { %141 = sbr.rel (%p138_p2) target bundleno = 381 (0x17d), region = 32 }
   0xb   : > { %v2983_v0 = vld [vmem:[%s3642_s1 + $0x78] sm:$0xff]   ;;  %p161_p3 = scmp.lt.s32.totalorder %s2259_s13, 1  ;;  %v2985_v2 = vld [vmem:[%s3642_s1 + $0x70] sm:$0xff]   ;;  %v2987_v4 = vld [vmem:[%s3642_s1 + $0x68] sm:$0xff]   ;;  %vm204_vm0 = vsmask.f32 3328 }
   0xc   : > { %v2984_v1 = vld [vmem:[%s3642_s1 + $0x38] sm:$0xff]   ;;  %2742 = vmatprep.subr.bf16.mxu0 %v2983_v0  ;;  %v2986_v3 = vld [vmem:[%s3642_s1 + $0x30] sm:$0xff]   ;;  %v2988_v5 = vld [vmem:[%s3642_s1 + $0x28] sm:$0xff]   ;;  %vm205_vm1 = vsmask.f32 7440  ;;  %vm626_vm3 = vcmask 1042432  }
   0xd   : > { %2766 = vmatprep.subr.bf16.mxu1 %v2984_v1  ;;  %2743 = vmatpush3.bf16.msra.mxu0 %v2983_v0  ;;  %s3656_s13 = smov (!%p161_p3, %s2259_s13), 1  ;;  %v2989_v6 = vld [vmem:[%s3642_s1 + $0x60] sm:$0xff]   ;;  %v2991_v8 = vld [vmem:[%s3642_s1 + $0x58] sm:$0xff]   ;;  %v2993_v10 = vld [vmem:[%s3642_s1 + $0x50] sm:$0xff]   ;;  %vm627_vm4 = vcmask 1046532  }
   0xe   : > { %2767 = vmatpush3.bf16.msra.mxu1 %v2984_v1  ;;  %2744 = vmatprep.subr.bf16.mxu0 %v2985_v2  ;;  %v2990_v7 = vld [vmem:[%s3642_s1 + $0x20] sm:$0xff]   ;;  %s2974_s30 = smul.u32 80, %s3656_s13  ;;  %v2992_v9 = vld [vmem:[%s3642_s1 + $0x18] sm:$0xff]   ;;  %v2994_v14 = vld [vmem:[%s3642_s1 + $0x10] sm:$0xff]   ;;  %s2602_s18 = sshll.u32 %s3656_s13, 5 }
   0xf   : > { %2768 = vmatprep.subr.bf16.mxu1 %v2986_v3  ;;  %v2995_v17 = vld [vmem:[%s3642_s1 + $0x48] sm:$0xff]   ;;  %vm3182_vm2 = vmor %vm204_vm0, %vm205_vm1  ;;  %v2997_v46 = vld [vmem:[%s3642_s1 + $0x40] sm:$0xff]   ;;  %s170_s21 = scalar_lea.vmem %s3644_s3, %s2602_s18 }
  0x10   : > { %s3139_s10 = scalar_lea.vmem %s3641_s0, %s2974_s30  ;;  %v2996_v23 = vld [vmem:[%s3642_s1 + $0x8] sm:$0xff]   ;;  %v2998_v50 = vld [vmem:[%s3642_s1] sm:$0xff]   ;;  %v3001_v59 = vld [vmem:[%s3642_s1 + $0xb8] sm:$0xff]  }
  0x11   : > { %2745 = vmatpush3.bf16.msra.mxu0 %v2985_v2  ;;  %v172_v11 = vld [vmem:[%s3139_s10] sm:$0xf]  ;;  %v173_v12 = vld [vmem:[%s3139_s10 + $0x8] sm:$0xf]  ;;  %v3147_v13 = vld [vmem:[%s3139_s10 + $0x4] sm:$0x1] }
  0x12   : > { %2769 = vmatpush3.bf16.msra.mxu1 %v2986_v3  ;;  %2746 = vmatprep.subr.bf16.mxu0 %v2987_v4  ;;  %v3153_v15 = vld [vmem:[%s3139_s10 + $0xc] sm:$0x1]  ;;  %v2295_v16 = vcombine.low %v172_v11, %v173_v12  ;;  %v208_v18 = vshrl.u32 %v172_v11, 16  ;;  %v211_v19 = vshll.u32 %v172_v11, 16  ;;  %v217_v20 = vshll.u32 %v3147_v13, 16  ;;  %v3002_v62 = vld [vmem:[%s3642_s1 + $0xf8] sm:$0xff]   ;;  %vm3265_vm5 = vmor %vm626_vm3, %vm627_vm4 }
  0x13   : > { %2770 = vmatprep.subr.bf16.mxu1 %v2988_v5  ;;  %v222_v21 = vshrl.u32 %v173_v12, 16  ;;  %v3160_v22 = vld [vmem:[%s3139_s10 + $0x10] sm:$0xf]  ;;  %v225_v24 = vshll.u32 %v173_v12, 16  ;;  %v231_v25 = vshll.u32 %v3153_v15, 16  ;;  %v3006_v11 = vld [vmem:[%s3642_s1 + $0xe8] sm:$0xff]  }
  0x14   : > { %2782 = vmatprep.mubr.bf16.mxu1 %v2295_v16  ;;  %v3167_v26 = vld [vmem:[%s3139_s10 + $0x18] sm:$0xf]  ;;  %v210_v27 = vrot.slane %v208_v18, 4  ;;  %v213_v28 = vrot.slane %v211_v19, 5  ;;  %v219_v29 = vrot.slane %v217_v20, 5  ;;  %v236_v35 = vshrl.u32 %v3160_v22, 16 }
  0x15   : > { %2747 = vmatpush3.bf16.msra.mxu0 %v2987_v4  ;;  %v224_v30 = vrot.slane %v222_v21, 4  ;;  %v3170_v31 = vld [vmem:[%s3139_s10 + $0x14] sm:$0x1]  ;;  %v227_v32 = vrot.slane %v225_v24, 5  ;;  %v233_v33 = vrot.slane %v231_v25, 5  ;;  %v239_v36 = vshll.u32 %v3160_v22, 16 }
  0x16   : > { %2771 = vmatpush3.bf16.msra.mxu1 %v2988_v5  ;;  %2748 = vmatprep.subr.bf16.mxu0 %v2989_v6  ;;  %v3173_v34 = vld [vmem:[%s3139_s10 + $0x1c] sm:$0x1]  ;;  %v214_v37 = vor.u32 %v213_v28, %v210_v27  ;;  %v245_v38 = vshll.u32 %v3170_v31, 16  ;;  %v250_v39 = vshrl.u32 %v3167_v26, 16  ;;  %v253_v40 = vshll.u32 %v3167_v26, 16  ;;  %v3003_v3 = vld [vmem:[%s3642_s1 + $0xb0] sm:$0xff]  }
  0x17   : > { %2772 = vmatprep.subr.bf16.mxu1 %v2990_v7  ;;  %v228_v42 = vor.u32 %v227_v32, %v224_v30  ;;  %v238_v43 = vrot.slane %v236_v35, 4  ;;  %v241_v44 = vrot.slane %v239_v36, 5  ;;  %v259_v45 = vshll.u32 %v3173_v34, 16  ;;  %v3004_v5 = vld [vmem:[%s3642_s1 + $0xf0] sm:$0xff]   ;;  %v3238_v28 = vld [vmem:[%s3139_s10 + $0x3c] sm:$0x1] }
  0x18   : > { %v215_v47 = vrot.slane %v214_v37, 4  ;;  %v252_v48 = vrot.slane %v250_v39, 4  ;;  %v255_v49 = vrot.slane %v253_v40, 5  ;;  %v247_v53 = vrot.slane %v245_v38, 5  ;;  %v178_v18 = vld [vmem:[%s3139_s10 + $0x30] sm:$0xf] }
  0x19   : > { %2749 = vmatpush3.bf16.msra.mxu0 %v2989_v6  ;;  %v229_v51 = vrot.slane %v228_v42, 4  ;;  %v242_v52 = vor.u32 %v241_v44, %v238_v43  ;;  %v261_v56 = vrot.slane %v259_v45, 5  ;;  %v2296_v2 = vcombine.low %v3160_v22, %v3167_v26  ;;  %v176_v6 = vld [vmem:[%s3139_s10 + $0x20] sm:$0xf]  ;;  %v179_v22 = vld [vmem:[%s3139_s10 + $0x38] sm:$0xf] }
  0x1a   : > { %2773 = vmatpush3.bf16.msra.mxu1 %v2990_v7  ;;  %2750 = vmatprep.subr.bf16.mxu0 %v2991_v8  ;;  %v220_v54 = vsel %vm3182_vm2, %v215_v47, %v219_v29  ;;  %v256_v55 = vor.u32 %v255_v49, %v252_v48  ;;  %v631_v4 = vrot.slane %v3147_v13, 5  ;;  %v3005_v7 = vld [vmem:[%s3642_s1 + $0xa8] sm:$0xff]   ;;  %v264_v12 = vshrl.u32 %v176_v6, 16  ;;  %v3007_v39 = vld [vmem:[%s3642_s1 + $0xa0] sm:$0xff]   ;;  %v605_v13 = vld [vmem:[%s3139_s10 + $0x18] sm:$0xe] }
  0x1b   : > { %2774 = vmatprep.subr.bf16.mxu1 %v2992_v9  ;;  %v234_v57 = vsel %vm3182_vm2, %v229_v51, %v233_v33  ;;  %v243_v58 = vrot.slane %v242_v52, 4  ;;  %v292_v32 = vshrl.u32 %v178_v18, 16  ;;  %v295_v33 = vshll.u32 %v178_v18, 16  ;;  %v3008_v45 = vld [vmem:[%s3642_s1 + $0xe0] sm:$0xff]  }
  0x1c   : > { %v2283_v60 = vcombine.low %v220_v54, %v234_v57  ;;  %v257_v61 = vrot.slane %v256_v55, 4  ;;  %v266_v24 = vrot.slane %v264_v12, 4  ;;  %v306_v37 = vshrl.u32 %v179_v22, 16  ;;  %v3009_v57 = vld [vmem:[%s3642_s1 + $0x98] sm:$0xff]  }
  0x1d   : > { %2751 = vmatpush3.bf16.msra.mxu0 %v2991_v8  ;;  %v248_v63 = vsel %vm3182_vm2, %v243_v58, %v247_v53  ;;  %v177_v8 = vld [vmem:[%s3139_s10 + $0x28] sm:$0xf]  ;;  %v309_v38 = vshll.u32 %v179_v22, 16  ;;  %v294_v42 = vrot.slane %v292_v32, 4  ;;  %v297_v43 = vrot.slane %v295_v33, 5 }
  0x1e   : > { %2775 = vmatpush3.bf16.msra.mxu1 %v2992_v9  ;;  %2752 = vmatprep.subr.bf16.mxu0 %v2993_v10  ;;  %v262_v0 = vsel %vm3182_vm2, %v257_v61, %v261_v56  ;;  %v3222_v9 = vld [vmem:[%s3139_s10 + $0x24] sm:$0x1]  ;;  %v281_v19 = vshll.u32 %v177_v8, 16  ;;  %v2297_v21 = vcombine.low %v176_v6, %v177_v8  ;;  %v315_v44 = vshll.u32 %v3238_v28, 16 }
  0x1f   : > { %2776 = vmatprep.subr.bf16.mxu1 %v2994_v14  ;;  %2758 = vmatprep.mubr.bf16.mxu0 %v2283_v60  ;;  %v2284_v1 = vcombine.low %v248_v63, %v262_v0  ;;  %v273_v16 = vshll.u32 %v3222_v9, 16  ;;  %v308_v47 = vrot.slane %v306_v37, 4  ;;  %v311_v48 = vrot.slane %v309_v38, 5  ;;  %v602_v63 = vld [vmem:[%s3139_s10] sm:$0xe] }
  0x20   : > { %v283_v29 = vrot.slane %v281_v19, 5  ;;  %v2298_v52 = vcombine.low %v178_v18, %v179_v22  ;;  %v635_v53 = vrot.slane %v3153_v15, 5  ;;  %v317_v56 = vrot.slane %v315_v44, 5  ;;  %v3010_v15 = vld [vmem:[%s3642_s1 + $0xd8] sm:$0xff]   ;;  %v603_v0 = vld [vmem:[%s3139_s10 + $0x8] sm:$0xe] }
  0x21   : > { %2753 = vmatpush3.bf16.msra.mxu0 %v2993_v10  ;;  %v3225_v10 = vld [vmem:[%s3139_s10 + $0x2c] sm:$0x1]  ;;  %v275_v26 = vrot.slane %v273_v16, 5  ;;  %v312_v55 = vor.u32 %v311_v48, %v308_v47  ;;  %v604_v18 = vld [vmem:[%s3139_s10 + $0x10] sm:$0xe]  ;;  %v639_v19 = vrot.slane %v3170_v31, 5 }
  0x22   : > { %2777 = vmatpush3.bf16.msra.mxu1 %v2994_v14  ;;  %2754 = vmatprep.subr.bf16.mxu0 %v2995_v17  ;;  %v267_v14 = vshll.u32 %v176_v6, 16  ;;  %v287_v20 = vshll.u32 %v3225_v10, 16  ;;  %v3015_v16 = vld [vmem:[%s3642_s1 + $0x88] sm:$0xff]   ;;  %v2310_v22 = vrot.slane %v605_v13, 9  ;;  %v3018_v31 = vld [vmem:[%s3642_s1 + $0xc0] sm:$0xff]  }
  0x23   : > { %2778 = vmatprep.subr.bf16.mxu1 %v2996_v23  ;;  %v313_v61 = vrot.slane %v312_v55, 4  ;;  %v3020_v37 = vld [vmem:[%s3139_s10 + $0x18] ss:$8 sps:$4 sm:$0xff]   ;;  %v3027_v48 = vld [vmem:[%s3139_s10 + $0x28] ss:$8 sps:$4 sm:$0xff]  }
  0x24   : > { %v269_v25 = vrot.slane %v267_v14, 5  ;;  %v289_v30 = vrot.slane %v287_v20, 5  ;;  %v643_v20 = vrot.slane %v3173_v34, 5  ;;  %v651_v34 = vrot.slane %v3225_v10, 5  ;;  %v3022_v10 = vld [vmem:[%s3642_s1 + $0x178] sm:$0xff]  }
  0x25   : > { %2755 = vmatpush3.bf16.msra.mxu0 %v2995_v17  ;;  %v278_v17 = vshrl.u32 %v177_v8, 16  ;;  %v3019_v8 = vld [vmem:[%s3139_s10 + $0x8] ss:$8 sps:$4 sm:$0xff]  }
  0x26   : > { %2779 = vmatpush3.bf16.msra.mxu1 %v2996_v23  ;;  %2756 = vmatprep.subr.bf16.mxu0 %v2997_v46  ;;  %v3235_v23 = vld [vmem:[%s3139_s10 + $0x34] sm:$0x1]  ;;  %v270_v35 = vor.u32 %v269_v25, %v266_v24  ;;  %v606_v24 = vld [vmem:[%s3139_s10 + $0x20] sm:$0xe]  ;;  %v607_v25 = vld [vmem:[%s3139_s10 + $0x28] sm:$0xe] }
  0x27   : > { %2780 = vmatprep.subr.bf16.mxu1 %v2998_v50  ;;  %v280_v27 = vrot.slane %v278_v17, 4  ;;  %v301_v36 = vshll.u32 %v3235_v23, 16  ;;  %v2312_v32 = vrot.slane %v607_v25, 9  ;;  %v655_v38 = vrot.slane %v3235_v23, 5  ;;  %v3024_v23 = vld [vmem:[%s3642_s1 + $0x170] sm:$0xff]  }
  0x28   : > { %v2379_v55 = vld [vmem:[%s3139_s10 + $0x8] sm:$0xf]  ;;  %v2386_v25 = vld [vmem:[%s3139_s10 + $0x24] sm:$0x1] }
  0x29   : > { %2757 = vmatpush3.bf16.msra.mxu0 %v2997_v46  ;;  %v284_v40 = vor.u32 %v283_v29, %v280_v27  ;;  %v271_v46 = vrot.slane %v270_v35, 4  ;;  %v303_v51 = vrot.slane %v301_v36, 5  ;;  %v647_v27 = vrot.slane %v3222_v9, 5  ;;  %v3021_v29 = vld [vmem:[%s3642_s1 + $0x138] sm:$0xff]   ;;  %v608_v35 = vld [vmem:[%s3139_s10 + $0x30] sm:$0xe] }
  0x2a   : > { %2781 = vmatpush3.bf16.msra.mxu1 %v2998_v50  ;;  %2790 = vmatprep.subr.bf16.mxu0 %v3001_v59  ;;  %v298_v50 = vor.u32 %v297_v43, %v294_v42  ;;  %v644_v9 = vsel %vm3265_vm5, %v2310_v22, %v643_v20  ;;  %v609_v36 = vld [vmem:[%s3139_s10 + $0x38] sm:$0xe]  ;;  %v652_v42 = vsel %vm3265_vm5, %v2312_v32, %v651_v34  ;;  %v659_v43 = vrot.slane %v3238_v28, 5  ;;  %v2384_v20 = vld [vmem:[%s3139_s10 + $0x1c] sm:$0x1] }
  0x2b   : > { %2814 = vmatprep.subr.bf16.mxu1 %v3002_v62  ;;  %v285_v49 = vrot.slane %v284_v40, 4  ;;  %v276_v54 = vsel %vm3182_vm2, %v271_v46, %v275_v26  ;;  %v3017_v26 = vld [vmem:[%s3642_s1 + $0x80] sm:$0xff]   ;;  %v2313_v44 = vrot.slane %v608_v35, 9  ;;  %v3023_v46 = vld [vmem:[%s3642_s1 + $0x130] sm:$0xff]   ;;  %v3031_v22 = vld [vmem:[%s3642_s1 + $0x118] sm:$0xff]  }
  0x2c   : > { %2759 = vmatmul.mubr.bf16.vlgmr.msra.gmra.mxu0 %v2284_v1  ;;  %v3032_v34 = vld [vmem:[%s3642_s1 + $0x158] sm:$0xff]   ;;  %v3033_v35 = vld [vmem:[%s3642_s1 + $0x110] sm:$0xff]  }
  0x2d   : > { %2783 = vmatmul.mubr.bf16.vlgmr.msra.gmra.mxu1 %v2296_v2  ;;  %2791 = vmatpush3.bf16.msra.mxu0 %v3001_v59  ;;  %v290_v58 = vsel %vm3182_vm2, %v285_v49, %v289_v30  ;;  %v299_v59 = vrot.slane %v298_v50, 4  ;;  %v318_v2 = vsel %vm3182_vm2, %v313_v61, %v317_v56  ;;  %v2311_v30 = vrot.slane %v606_v24, 9  ;;  %v3025_v50 = vld [vmem:[%s3642_s1 + $0x128] sm:$0xff]  }
  0x2e   : > { %2815 = vmatpush3.bf16.msra.mxu1 %v3002_v62  ;;  %2792 = vmatprep.subr.bf16.mxu0 %v3003_v3  ;;  %v2285_v60 = vcombine.low %v276_v54, %v290_v58  ;;  %v656_v28 = vsel %vm3265_vm5, %v2313_v44, %v655_v38  ;;  %v3029_v54 = vld [vmem:[%s3642_s1 + $0x120] sm:$0xff]   ;;  %v2380_v56 = vld [vmem:[%s3139_s10 + $0xc] sm:$0x1]  ;;  %v2381_v58 = vld [vmem:[%s3139_s10 + $0x10] sm:$0xf] }
  0x2f   : > { %2816 = vmatprep.subr.bf16.mxu1 %v3004_v5  ;;  %2786 = vmatprep.mubr.bf16.mxu1 %v2297_v21  ;;  %v304_v62 = vsel %vm3182_vm2, %v299_v59, %v303_v51  ;;  %v2309_v21 = vrot.slane %v604_v18, 9  ;;  %v648_v40 = vsel %vm3265_vm5, %v2311_v30, %v647_v27  ;;  %v3026_v51 = vld [vmem:[%s3642_s1 + $0x168] sm:$0xff]   ;;  %v2382_v59 = vld [vmem:[%s3139_s10 + $0x14] sm:$0x1]  ;;  %v1012_v61 = vshll.u32 %v2380_v56, 16 }
  0x30   : > { %2762 = vmatprep.mubr.bf16.mxu0 %v2285_v60  ;;  %v2286_v6 = vcombine.low %v304_v62, %v318_v2  ;;  %v2333_v47 = vcombine.low %v648_v40, %v652_v42  ;;  %v1006_v60 = vshll.u32 %v2379_v55, 16  ;;  %v1017_v62 = vshrl.u32 %v2381_v58, 16  ;;  %v2423_v2 = vld [vmem:[%s3139_s10 + $0x8] sm:$0xe]  ;;  %v3034_v40 = vld [vmem:[%s3642_s1 + $0x150] sm:$0xff]  }
  0x31   : > { %2793 = vmatpush3.bf16.msra.mxu0 %v3003_v3  ;;  %v2307_v3 = vrot.slane %v602_v63, 9  ;;  %v640_v33 = vsel %vm3265_vm5, %v2309_v21, %v639_v19  ;;  %v1020_v63 = vshll.u32 %v2381_v58, 16  ;;  %v1298_v19 = vrot.slane %v2382_v59, 5  ;;  %v2385_v21 = vld [vmem:[%s3139_s10 + $0x20] sm:$0xf] }
  0x32   : > { %2817 = vmatpush3.bf16.msra.mxu1 %v3004_v5  ;;  %2794 = vmatprep.subr.bf16.mxu0 %v3005_v7  ;;  %v2308_v5 = vrot.slane %v603_v0, 9  ;;  %v1026_v0 = vshll.u32 %v2382_v59, 16  ;;  %v1045_v32 = vshrl.u32 %v2385_v21, 16  ;;  %v2387_v59 = vld [vmem:[%s3139_s10 + $0x28] sm:$0xf] }
  0x33   : > { %2818 = vmatprep.subr.bf16.mxu1 %v3006_v11  ;;  %v632_v12 = vsel %vm3265_vm5, %v2307_v3, %v631_v4  ;;  %v3016_v4 = vld [vmem:[%s3642_s1 + $0xc8] sm:$0xff]  }
  0x34   : > { %v636_v14 = vsel %vm3265_vm5, %v2308_v5, %v635_v53  ;;  %2763 = vmatmul.mubr.bf16.gmra.mxu0 %v2286_v6  ;;  %v1008_v5 = vrot.slane %v1006_v60, 5  ;;  %v2424_v6 = vld [vmem:[%s3139_s10 + $0x10] sm:$0xe]  ;;  %v1047_v44 = vrot.slane %v1045_v32, 4 }
  0x35   : > { %2795 = vmatpush3.bf16.msra.mxu0 %v3005_v7  ;;  %2787 = vmatmul.mubr.bf16.gmra.mxu1 %v2298_v52  ;;  %v3013_v7 = vld [vmem:[%s3642_s1 + $0x90] sm:$0xff]   ;;  %v2331_v17 = vcombine.low %v632_v12, %v636_v14  ;;  %v3028_v52 = vld [vmem:[%s3139_s10 + $0x38] ss:$8 sps:$4 sm:$0xff]   ;;  %v1019_v12 = vrot.slane %v1017_v62, 4  ;;  %v1022_v14 = vrot.slane %v1020_v63, 5 }
  0x36   : > { %2819 = vmatpush3.bf16.msra.mxu1 %v3006_v11  ;;  %2796 = vmatprep.subr.bf16.mxu0 %v3007_v39  ;;  %v3014_v11 = vld [vmem:[%s3642_s1 + $0xd0] sm:$0xff]  }
  0x37   : > { %2820 = vmatprep.subr.bf16.mxu1 %v3008_v45  ;;  %2830 = vmatprep.mubr.bf16.mxu1 %v3019_v8  ;;  %v1294_v8 = vrot.slane %v2380_v56, 5  ;;  %v1023_v24 = vor.u32 %v1022_v14, %v1019_v12  ;;  %v3036_v56 = vld [vmem:[%s3642_s1 + $0x148] sm:$0xff]   ;;  %v2389_v60 = vld [vmem:[%s3139_s10 + $0x30] sm:$0xf]  ;;  %v3409_v63 = vld [vmem:[%s3139_s10 + $0x34] sm:$0x1] }
  0x38   : > { %2806 = vmatprep.mubr.bf16.mxu0 %v2331_v17  ;;  %v2383_v17 = vld [vmem:[%s3139_s10 + $0x18] sm:$0xf]  ;;  %v3420_v12 = vld [vmem:[%s3139_s10 + $0x3c] sm:$0x1] }
  0x39   : > { %2797 = vmatpush3.bf16.msra.mxu0 %v3007_v39  ;;  %v2332_v39 = vcombine.low %v640_v33, %v644_v9  ;;  %v1034_v27 = vshll.u32 %v2383_v17, 16  ;;  %v1048_v33 = vshll.u32 %v2385_v21, 16  ;;  %v2425_v9 = vld [vmem:[%s3139_s10 + $0x18] sm:$0xe]  ;;  %v3425_v21 = vld [vmem:[%s3139_s10 + $0x44] sm:$0x1] }
  0x3a   : > { %2821 = vmatpush3.bf16.msra.mxu1 %v3008_v45  ;;  %2798 = vmatprep.subr.bf16.mxu0 %v3009_v57  ;;  %v2314_v45 = vrot.slane %v609_v36, 9  ;;  %v1024_v36 = vrot.slane %v1023_v24, 4  ;;  %v3038_v24 = vld [vmem:[%s3642_s1 + $0x140] sm:$0xff]  }
  0x3b   : > { %2822 = vmatprep.subr.bf16.mxu1 %v3010_v15  ;;  %v1036_v38 = vrot.slane %v1034_v27, 5 }
  0x3c   : > { %v660_v49 = vsel %vm3265_vm5, %v2314_v45, %v659_v43  ;;  %v1050_v45 = vrot.slane %v1048_v33, 5 }
  0x3d   : > { %2799 = vmatpush3.bf16.msra.mxu0 %v3009_v57  ;;  %v2334_v53 = vcombine.low %v656_v28, %v660_v49  ;;  %v3030_v57 = vld [vmem:[%s3642_s1 + $0x160] sm:$0xff]  }
  0x3e   : > { %2823 = vmatpush3.bf16.msra.mxu1 %v3010_v15  ;;  %2800 = vmatprep.subr.bf16.mxu0 %v3013_v7  ;;  %v1003_v15 = vshrl.u32 %v2379_v55, 16  ;;  %v1051_v49 = vor.u32 %v1050_v45, %v1047_v44  ;;  %v1306_v55 = vrot.slane %v2386_v25, 5 }
  0x3f   : > { %2824 = vmatprep.subr.bf16.mxu1 %v3014_v11 }
  0x40   : > { %v1005_v3 = vrot.slane %v1003_v15, 4  ;;  %v3397_v15 = vld [vmem:[%s3139_s10 + $0x2c] sm:$0x1] }
  0x41   : > { %2801 = vmatpush3.bf16.msra.mxu0 %v3013_v7  ;;  %v2431_v7 = vrot.slane %v2423_v2, 9  ;;  %v1062_v2 = vshll.u32 %v2387_v59, 16 }
  0x42   : > { %2825 = vmatpush3.bf16.msra.mxu1 %v3014_v11  ;;  %2802 = vmatprep.subr.bf16.mxu0 %v3015_v16  ;;  %v1014_v11 = vrot.slane %v1012_v61, 5  ;;  %v1009_v18 = vor.u32 %v1008_v5, %v1005_v3  ;;  %v2391_v3 = vld [vmem:[%s3139_s10 + $0x38] sm:$0xf]  ;;  %v3037_v5 = vld [vmem:[%s3642_s1 + $0x100] sm:$0xff]  }
  0x43   : > { %2826 = vmatprep.subr.bf16.mxu1 %v3016_v4  ;;  %v1295_v13 = vsel %vm3265_vm5, %v2431_v7, %v1294_v8  ;;  %v1068_v7 = vshll.u32 %v3397_v15, 16  ;;  %v1073_v8 = vshrl.u32 %v2389_v60, 16 }
  0x45   : > { %2803 = vmatpush3.bf16.msra.mxu0 %v3015_v16  ;;  %v1028_v16 = vrot.slane %v1026_v0, 5  ;;  %v1059_v0 = vshrl.u32 %v2387_v59, 16 }
  0x46   : > { %2827 = vmatpush3.bf16.msra.mxu1 %v3016_v4  ;;  %2804 = vmatprep.subr.bf16.mxu0 %v3017_v26  ;;  %v2432_v4 = vrot.slane %v2424_v6, 9 }
  0x47   : > { %2828 = vmatprep.subr.bf16.mxu1 %v3018_v31  ;;  %v1061_v14 = vrot.slane %v1059_v0, 4  ;;  %v3043_v0 = vld [vmem:[%s3642_s1 + $0x1a8] sm:$0xff]  }
  0x48   : > { %v1299_v30 = vsel %vm3265_vm5, %v2432_v4, %v1298_v19  ;;  %v1070_v4 = vrot.slane %v1068_v7, 5  ;;  %v1075_v19 = vrot.slane %v1073_v8, 4  ;;  %v3044_v8 = vld [vmem:[%s3642_s1 + $0x1e8] sm:$0xff]  }
  0x49   : > { %2805 = vmatpush3.bf16.msra.mxu0 %v3017_v26  ;;  %v1031_v26 = vshrl.u32 %v2383_v17, 16  ;;  %v1082_v17 = vshll.u32 %v3409_v63, 16 }
  0x4a   : > { %2829 = vmatpush3.bf16.msra.mxu1 %v3018_v31  ;;  %2838 = vmatprep.subr.bf16.mxu0 %v3021_v29  ;;  %v1040_v31 = vshll.u32 %v2384_v20, 16 }
  0x4b   : > { %2862 = vmatprep.subr.bf16.mxu1 %v3022_v10 }
  0x4c   : > { %2807 = vmatmul.mubr.bf16.vlgmr.msra.gmra.mxu0 %v2332_v39  ;;  %v2426_v39 = vld [vmem:[%s3139_s10 + $0x20] sm:$0xe]  ;;  %v3377_v43 = vrot.slane %v1040_v31, 5  ;;  %v1096_v31 = vshll.u32 %v3420_v12, 16 }
  0x4d   : > { %2831 = vmatmul.mubr.bf16.vlgmr.msra.gmra.mxu1 %v3020_v37  ;;  %2839 = vmatpush3.bf16.msra.mxu0 %v3021_v29  ;;  %v1010_v29 = vrot.slane %v1009_v18, 4  ;;  %v2455_v37 = vcombine.low %v1295_v13, %v1299_v30  ;;  %v2393_v18 = vld [vmem:[%s3139_s10 + $0x40] sm:$0xf]  ;;  %v1087_v13 = vshrl.u32 %v2391_v3, 16 }
  0x4e   : > { %2863 = vmatpush3.bf16.msra.mxu1 %v3022_v10  ;;  %2840 = vmatprep.subr.bf16.mxu0 %v3023_v46  ;;  %v1033_v10 = vrot.slane %v1031_v26, 4  ;;  %v1084_v26 = vrot.slane %v1082_v17, 5  ;;  %v1101_v30 = vshrl.u32 %v2393_v18, 16  ;;  %v1104_v32 = vshll.u32 %v2393_v18, 16  ;;  %v3055_v17 = vld [vmem:[%s3139_s10 + $0x10] ss:$8 sps:$4 sm:$0xff]  }
  0x4f   : > { %2864 = vmatprep.subr.bf16.mxu1 %v3024_v23  ;;  %2810 = vmatprep.mubr.bf16.mxu0 %v2333_v47  ;;  %v1015_v42 = vsel %vm3182_vm2, %v1010_v29, %v1014_v11  ;;  %v1054_v47 = vshll.u32 %v2386_v25, 16  ;;  %v1076_v11 = vshll.u32 %v2389_v60, 16  ;;  %v1089_v27 = vrot.slane %v1087_v13, 4  ;;  %v3042_v60 = vld [vmem:[%s3642_s1 + $0x1f0] sm:$0xff]  }
  0x50   : > { %2834 = vmatprep.mubr.bf16.mxu1 %v3027_v48  ;;  %v2433_v48 = vrot.slane %v2425_v9, 9  ;;  %v3039_v9 = vld [vmem:[%s3642_s1 + $0x1b8] sm:$0xff]   ;;  %v1098_v45 = vrot.slane %v1096_v31, 5  ;;  %v2503_v18 = vld [vmem:[%s3139_s10 + $0x10] sm:$0xf] }
  0x51   : > { %2841 = vmatpush3.bf16.msra.mxu0 %v3023_v46  ;;  %v1029_v46 = vsel %vm3182_vm2, %v1024_v36, %v1028_v16  ;;  %v1064_v16 = vrot.slane %v1062_v2, 5  ;;  %v1110_v36 = vshll.u32 %v3425_v21, 16  ;;  %v3485_v13 = vld [vmem:[%s3139_s10 + $0x14] sm:$0x1] }
  0x52   : > { %2865 = vmatpush3.bf16.msra.mxu1 %v3024_v23  ;;  %2842 = vmatprep.subr.bf16.mxu0 %v3025_v50  ;;  %v1037_v23 = vor.u32 %v1036_v38, %v1033_v10  ;;  %v2411_v28 = vcombine.low %v1015_v42, %v1029_v46  ;;  %v3040_v10 = vld [vmem:[%s3642_s1 + $0x1f8] sm:$0xff]   ;;  %v1106_v42 = vrot.slane %v1104_v32, 5  ;;  %v2427_v46 = vld [vmem:[%s3139_s10 + $0x28] sm:$0xe] }
  0x53   : > { %2866 = vmatprep.subr.bf16.mxu1 %v3026_v51  ;;  %v1065_v25 = vor.u32 %v1064_v16, %v1061_v14  ;;  %v3045_v14 = vld [vmem:[%s3642_s1 + $0x1a0] sm:$0xff]  }
  0x54   : > { %2811 = vmatmul.mubr.bf16.gmra.mxu0 %v2334_v53  ;;  %v3384_v53 = vrot.slane %v1037_v23, 4  ;;  %v2428_v23 = vld [vmem:[%s3139_s10 + $0x30] sm:$0xe]  ;;  %v3046_v16 = vld [vmem:[%s3642_s1 + $0x1e0] sm:$0xff]  }
  0x55   : > { %2843 = vmatpush3.bf16.msra.mxu0 %v3025_v50  ;;  %2835 = vmatmul.mubr.bf16.gmra.mxu1 %v3028_v52  ;;  %v1302_v50 = vrot.slane %v2384_v20, 5  ;;  %v3035_v52 = vld [vmem:[%s3642_s1 + $0x108] sm:$0xff]   ;;  %v1078_v20 = vrot.slane %v1076_v11, 5 }
  0x56   : > { %2867 = vmatpush3.bf16.msra.mxu1 %v3026_v51  ;;  %2844 = vmatprep.subr.bf16.mxu0 %v3029_v54  ;;  %v2434_v51 = vrot.slane %v2426_v39, 9  ;;  %v1043_v61 = vsel %vm3182_vm2, %v3384_v53, %v3377_v43  ;;  %v2430_v53 = vld [vmem:[%s3139_s10 + $0x40] sm:$0xe] }
  0x57   : > { %2868 = vmatprep.subr.bf16.mxu1 %v3030_v57  ;;  %2878 = vmatprep.mubr.bf16.mxu1 %v2455_v37  ;;  %v3393_v58 = vsel %vm3265_vm5, %v2433_v48, %v1302_v50  ;;  %v1310_v37 = vrot.slane %v3397_v15, 5  ;;  %v3041_v48 = vld [vmem:[%s3642_s1 + $0x1b0] sm:$0xff]   ;;  %v1112_v50 = vrot.slane %v1110_v36, 5  ;;  %v2438_v15 = vrot.slane %v2430_v53, 9 }
  0x58   : > { %2854 = vmatprep.mubr.bf16.mxu0 %v2411_v28  ;;  %v3406_v62 = vsel %vm3265_vm5, %v2434_v51, %v1306_v55  ;;  %v2435_v51 = vrot.slane %v2427_v46, 9  ;;  %v2436_v55 = vrot.slane %v2428_v23, 9 }
  0x59   : > { %2845 = vmatpush3.bf16.msra.mxu0 %v3029_v54  ;;  %v3386_v54 = vrot.slane %v1054_v47, 5  ;;  %v2456_v33 = vcombine.low %v3393_v58, %v3406_v62  ;;  %v1314_v47 = vrot.slane %v3409_v63, 5  ;;  %v1322_v63 = vrot.slane %v3425_v21, 5 }
  0x5a   : > { %2869 = vmatpush3.bf16.msra.mxu1 %v3030_v57  ;;  %2846 = vmatprep.subr.bf16.mxu0 %v3031_v22  ;;  %v1052_v57 = vrot.slane %v1051_v49, 4  ;;  %v1311_v59 = vsel %vm3265_vm5, %v2435_v51, %v1310_v37  ;;  %v1669_v21 = vshll.u32 %v2503_v18, 16  ;;  %v3504_v37 = vld [vmem:[%s3139_s10 + $0x24] sm:$0x1] }
  0x5b   : > { %2870 = vmatprep.subr.bf16.mxu1 %v3032_v34  ;;  %v1315_v62 = vsel %vm3265_vm5, %v2436_v55, %v1314_v47  ;;  %v1323_v7 = vsel %vm3265_vm5, %v2438_v15, %v1322_v63  ;;  %v1703_v46 = vshll.u32 %v3504_v37, 16  ;;  %v2511_v63 = vld [vmem:[%s3139_s10 + $0x30] sm:$0xf] }
  0x5c   : > { %v1057_v6 = vsel %vm3182_vm2, %v1052_v57, %v3386_v54  ;;  %v1318_v57 = vrot.slane %v3420_v12, 5  ;;  %v2457_v2 = vcombine.low %v1311_v59, %v1315_v62 }
  0x5d   : > { %2847 = vmatpush3.bf16.msra.mxu0 %v3031_v22  ;;  %v1090_v22 = vshll.u32 %v2391_v3, 16  ;;  %v2412_v43 = vcombine.low %v1043_v61, %v1057_v6  ;;  %v1705_v59 = vrot.slane %v1703_v46, 5  ;;  %v3058_v46 = vld [vmem:[%s3642_s1 + $0x230] sm:$0xff]  }
  0x5e   : > { %2871 = vmatpush3.bf16.msra.mxu1 %v3032_v34  ;;  %2848 = vmatprep.subr.bf16.mxu0 %v3033_v35  ;;  %v1079_v34 = vor.u32 %v1078_v20, %v1075_v19  ;;  %v3489_v19 = vld [vmem:[%s3139_s10 + $0x1c] sm:$0x1]  ;;  %v1666_v20 = vshrl.u32 %v2503_v18, 16 }
  0x5f   : > { %2872 = vmatprep.subr.bf16.mxu1 %v3034_v40  ;;  %v1092_v29 = vrot.slane %v1090_v22, 5  ;;  %v1675_v22 = vshll.u32 %v3485_v13, 16 }
  0x60   : > { %v1080_v38 = vrot.slane %v1079_v34, 4  ;;  %v1668_v31 = vrot.slane %v1666_v20, 4  ;;  %v1671_v34 = vrot.slane %v1669_v21, 5 }
  0x61   : > { %2849 = vmatpush3.bf16.msra.mxu0 %v3033_v35  ;;  %v1066_v35 = vrot.slane %v1065_v25, 4  ;;  %v1093_v39 = vor.u32 %v1092_v29, %v1089_v27  ;;  %v3047_v27 = vld [vmem:[%s3642_s1 + $0x198] sm:$0xff]  }
  0x62   : > { %2873 = vmatpush3.bf16.msra.mxu1 %v3034_v40  ;;  %2850 = vmatprep.subr.bf16.mxu0 %v3035_v52  ;;  %v1103_v40 = vrot.slane %v1101_v30, 4  ;;  %v1085_v28 = vsel %vm3182_vm2, %v1080_v38, %v1084_v26  ;;  %v1689_v26 = vshll.u32 %v3489_v19, 16  ;;  %v3048_v29 = vld [vmem:[%s3642_s1 + $0x1d8] sm:$0xff]   ;;  %v1677_v30 = vrot.slane %v1675_v22, 5  ;;  %v3508_v38 = vld [vmem:[%s3139_s10 + $0x2c] sm:$0x1] }
  0x63   : > { %2874 = vmatprep.subr.bf16.mxu1 %v3036_v56  ;;  %v1071_v44 = vsel %vm3182_vm2, %v1066_v35, %v1070_v4  ;;  %v1094_v54 = vrot.slane %v1093_v39, 4  ;;  %v2505_v4 = vld [vmem:[%s3139_s10 + $0x18] sm:$0xf]  ;;  %v3049_v35 = vld [vmem:[%s3642_s1 + $0x190] sm:$0xff]   ;;  %v1672_v36 = vor.u32 %v1671_v34, %v1668_v31  ;;  %v3547_v22 = vld [vmem:[%s3139_s10 + $0x44] sm:$0x1] }
  0x64   : > { %v1107_v49 = vor.u32 %v1106_v42, %v1103_v40  ;;  %v2413_v61 = vcombine.low %v1071_v44, %v1085_v28  ;;  %v1683_v25 = vshll.u32 %v2505_v4, 16  ;;  %v3050_v39 = vld [vmem:[%s3642_s1 + $0x1d0] sm:$0xff]   ;;  %v1691_v42 = vrot.slane %v1689_v26, 5 }
  0x65   : > { %2851 = vmatpush3.bf16.msra.mxu0 %v3035_v52  ;;  %v2429_v52 = vld [vmem:[%s3139_s10 + $0x38] sm:$0xe]  ;;  %v1099_v3 = vsel %vm3182_vm2, %v1094_v54, %v1098_v45  ;;  %v1673_v45 = vrot.slane %v1672_v36, 4  ;;  %v3051_v54 = vld [vmem:[%s3642_s1 + $0x188] sm:$0xff]  }
  0x66   : > { %2875 = vmatpush3.bf16.msra.mxu1 %v3036_v56  ;;  %2852 = vmatprep.subr.bf16.mxu0 %v3037_v5  ;;  %v2437_v56 = vrot.slane %v2429_v52, 9  ;;  %v1108_v58 = vrot.slane %v1107_v49, 4 }
  0x67   : > { %2876 = vmatprep.subr.bf16.mxu1 %v3038_v24  ;;  %v1678_v51 = vsel %vm3182_vm2, %v1673_v45, %v1677_v30  ;;  %v3551_v30 = vld [vmem:[%s3139_s10 + $0x4c] sm:$0x1] }
  0x68   : > { %v1319_v6 = vsel %vm3265_vm5, %v2437_v56, %v1318_v57  ;;  %v3052_v57 = vld [vmem:[%s3642_s1 + $0x1c8] sm:$0xff]  }
  0x69   : > { %2853 = vmatpush3.bf16.msra.mxu0 %v3037_v5  ;;  %v1113_v5 = vsel %vm3182_vm2, %v1108_v58, %v1112_v50  ;;  %v2458_v12 = vcombine.low %v1319_v6, %v1323_v7  ;;  %v1717_v50 = vshll.u32 %v3508_v38, 16  ;;  %v1725_v6 = vshll.u32 %v2511_v63, 16  ;;  %v3053_v7 = vld [vmem:[%s3642_s1 + $0x180] sm:$0xff]  }
  0x6a   : > { %2877 = vmatpush3.bf16.msra.mxu1 %v3038_v24  ;;  %2886 = vmatprep.subr.bf16.mxu0 %v3039_v9  ;;  %v2414_v11 = vcombine.low %v1099_v3, %v1113_v5  ;;  %v1680_v24 = vshrl.u32 %v2505_v4, 16  ;;  %v3531_v3 = vld [vmem:[%s3139_s10 + $0x3c] sm:$0x1]  ;;  %v1722_v5 = vshrl.u32 %v2511_v63, 16 }
  0x6b   : > { %2910 = vmatprep.subr.bf16.mxu1 %v3040_v10  ;;  %v1727_v20 = vrot.slane %v1725_v6, 5  ;;  %v1745_v21 = vshll.u32 %v3531_v3, 16 }
  0x6c   : > { %2855 = vmatmul.mubr.bf16.vlgmr.msra.gmra.mxu0 %v2412_v43  ;;  %v1682_v32 = vrot.slane %v1680_v24, 4  ;;  %v1724_v4 = vrot.slane %v1722_v5, 4  ;;  %v2552_v5 = vld [vmem:[%s3139_s10 + $0x38] sm:$0xe] }
  0x6d   : > { %2879 = vmatmul.mubr.bf16.vlgmr.msra.gmra.mxu1 %v2456_v33  ;;  %2887 = vmatpush3.bf16.msra.mxu0 %v3039_v9  ;;  %v1685_v33 = vrot.slane %v1683_v25, 5  ;;  %v2507_v9 = vld [vmem:[%s3139_s10 + $0x20] sm:$0xf] }
  0x6e   : > { %2911 = vmatpush3.bf16.msra.mxu1 %v3040_v10  ;;  %2888 = vmatprep.subr.bf16.mxu0 %v3041_v48  ;;  %v2509_v10 = vld [vmem:[%s3139_s10 + $0x28] sm:$0xf]  ;;  %v1694_v43 = vshrl.u32 %v2507_v9, 16  ;;  %v1697_v44 = vshll.u32 %v2507_v9, 16  ;;  %v1728_v34 = vor.u32 %v1727_v20, %v1724_v4  ;;  %v3063_v20 = vld [vmem:[%s3642_s1 + $0x218] sm:$0xff]  }
  0x6f   : > { %2912 = vmatprep.subr.bf16.mxu1 %v3042_v60  ;;  %2858 = vmatprep.mubr.bf16.mxu0 %v2413_v61  ;;  %v1686_v40 = vor.u32 %v1685_v33, %v1682_v32  ;;  %v1708_v23 = vshrl.u32 %v2509_v10, 16  ;;  %v1711_v47 = vshll.u32 %v2509_v10, 16  ;;  %v1719_v61 = vrot.slane %v1717_v50, 5  ;;  %v3056_v9 = vld [vmem:[%s3139_s10 + $0x20] ss:$8 sps:$4 sm:$0xff]  }
  0x70   : > { %2882 = vmatprep.mubr.bf16.mxu1 %v2457_v2  ;;  %v1696_v28 = vrot.slane %v1694_v43, 4  ;;  %v1699_v49 = vrot.slane %v1697_v44, 5  ;;  %v2513_v2 = vld [vmem:[%s3139_s10 + $0x38] sm:$0xf]  ;;  %v1759_v33 = vshll.u32 %v3547_v22, 16  ;;  %v1773_v44 = vshll.u32 %v3551_v30, 16 }
  0x71   : > { %2889 = vmatpush3.bf16.msra.mxu0 %v3041_v48  ;;  %v1687_v48 = vrot.slane %v1686_v40, 4  ;;  %v1710_v52 = vrot.slane %v1708_v23, 4  ;;  %v1713_v53 = vrot.slane %v1711_v47, 5 }
  0x72   : > { %2913 = vmatpush3.bf16.msra.mxu1 %v3042_v60  ;;  %2890 = vmatprep.subr.bf16.mxu0 %v3043_v0  ;;  %v1700_v56 = vor.u32 %v1699_v49, %v1696_v28  ;;  %v3059_v28 = vld [vmem:[%s3139_s10 + $0x30] ss:$8 sps:$4 sm:$0xff]  }
  0x73   : > { %2914 = vmatprep.subr.bf16.mxu1 %v3044_v8  ;;  %v1692_v55 = vsel %vm3182_vm2, %v1687_v48, %v1691_v42  ;;  %v1714_v15 = vor.u32 %v1713_v53, %v1710_v52  ;;  %v1729_v42 = vrot.slane %v1728_v34, 4  ;;  %v1775_v52 = vrot.slane %v1773_v44, 5 }
  0x74   : > { %2859 = vmatmul.mubr.bf16.gmra.mxu0 %v2414_v11  ;;  %v2535_v58 = vcombine.low %v1678_v51, %v1692_v55  ;;  %v1701_v60 = vrot.slane %v1700_v56, 4  ;;  %v1761_v51 = vrot.slane %v1759_v33, 5  ;;  %v1957_v56 = vrot.slane %v3485_v13, 5  ;;  %v3061_v13 = vld [vmem:[%s3642_s1 + $0x228] sm:$0xff]  }
  0x75   : > { %2891 = vmatpush3.bf16.msra.mxu0 %v3043_v0  ;;  %2883 = vmatmul.mubr.bf16.gmra.mxu1 %v2458_v12  ;;  %v1715_v62 = vrot.slane %v1714_v15, 4  ;;  %v3527_v0 = vld [vmem:[%s3139_s10 + $0x34] sm:$0x1]  ;;  %v1736_v12 = vshrl.u32 %v2513_v2, 16  ;;  %v2548_v15 = vld [vmem:[%s3139_s10 + $0x18] sm:$0xe] }
  0x76   : > { %2915 = vmatpush3.bf16.msra.mxu1 %v3044_v8  ;;  %2892 = vmatprep.subr.bf16.mxu0 %v3045_v14  ;;  %v1706_v8 = vsel %vm3182_vm2, %v1701_v60, %v1705_v59  ;;  %v1731_v11 = vshll.u32 %v3527_v0, 16  ;;  %v2547_v59 = vld [vmem:[%s3139_s10 + $0x10] sm:$0xe]  ;;  %v1961_v60 = vrot.slane %v3489_v19, 5  ;;  %v2556_v63 = vrot.slane %v2548_v15, 9 }
  0x77   : > { %2916 = vmatprep.subr.bf16.mxu1 %v3046_v16  ;;  %2902 = vmatprep.mubr.bf16.mxu0 %v3055_v17  ;;  %v3054_v17 = vld [vmem:[%s3642_s1 + $0x1c0] sm:$0xff]   ;;  %v1720_v18 = vsel %vm3182_vm2, %v1715_v62, %v1719_v61  ;;  %v1738_v25 = vrot.slane %v1736_v12, 4  ;;  %v2555_v62 = vrot.slane %v2547_v59, 9  ;;  %v1969_v33 = vrot.slane %v3508_v38, 5 }
  0x78   : > { %2926 = vmatprep.mubr.bf16.mxu1 %v2535_v58  ;;  %v1733_v24 = vrot.slane %v1731_v11, 5  ;;  %v2536_v45 = vcombine.low %v1706_v8, %v1720_v18  ;;  %v2560_v8 = vrot.slane %v2552_v5, 9  ;;  %v1977_v11 = vrot.slane %v3531_v3, 5  ;;  %v3060_v12 = vld [vmem:[%s3139_s10 + $0x40] ss:$8 sps:$4 sm:$0xff]  }
  0x79   : > { %2893 = vmatpush3.bf16.msra.mxu0 %v3045_v14  ;;  %v1739_v14 = vshll.u32 %v2513_v2, 16  ;;  %v2551_v2 = vld [vmem:[%s3139_s10 + $0x30] sm:$0xe]  ;;  %v3062_v3 = vld [vmem:[%s3642_s1 + $0x220] sm:$0xff]  }
  0x7a   : > { %2917 = vmatpush3.bf16.msra.mxu1 %v3046_v16  ;;  %2894 = vmatprep.subr.bf16.mxu0 %v3047_v27  ;;  %v2515_v16 = vld [vmem:[%s3139_s10 + $0x40] sm:$0xf]  ;;  %v1734_v49 = vsel %vm3182_vm2, %v1729_v42, %v1733_v24  ;;  %v2559_v19 = vrot.slane %v2551_v2, 9  ;;  %v3065_v24 = vld [vmem:[%s3642_s1 + $0x208] sm:$0xff]  }
  0x7b   : > { %2918 = vmatprep.subr.bf16.mxu1 %v3048_v29  ;;  %v1741_v26 = vrot.slane %v1739_v14, 5  ;;  %v1750_v31 = vshrl.u32 %v2515_v16, 16  ;;  %v1753_v32 = vshll.u32 %v2515_v16, 16  ;;  %v1958_v14 = vsel %vm3265_vm5, %v2555_v62, %v1957_v56 }
  0x7c   : > { %v1962_v16 = vsel %vm3265_vm5, %v2556_v63, %v1961_v60 }
  0x7d   : > { %2895 = vmatpush3.bf16.msra.mxu0 %v3047_v27  ;;  %v2517_v27 = vld [vmem:[%s3139_s10 + $0x48] sm:$0xf]  ;;  %v1742_v36 = vor.u32 %v1741_v26, %v1738_v25  ;;  %v1752_v10 = vrot.slane %v1750_v31, 4  ;;  %v1755_v43 = vrot.slane %v1753_v32, 5  ;;  %v2579_v18 = vcombine.low %v1958_v14, %v1962_v16  ;;  %v2549_v25 = vld [vmem:[%s3139_s10 + $0x20] sm:$0xe] }
  0x7e   : > { %2919 = vmatpush3.bf16.msra.mxu1 %v3048_v29  ;;  %2896 = vmatprep.subr.bf16.mxu0 %v3049_v35  ;;  %v1747_v29 = vrot.slane %v1745_v21, 5  ;;  %v1767_v40 = vshll.u32 %v2517_v27, 16  ;;  %v3064_v21 = vld [vmem:[%s3642_s1 + $0x210] sm:$0xff]   ;;  %v2550_v26 = vld [vmem:[%s3139_s10 + $0x28] sm:$0xe]  ;;  %v2557_v34 = vrot.slane %v2549_v25, 9 }
  0x7f   : > { %2920 = vmatprep.subr.bf16.mxu1 %v3050_v39  ;;  %v1743_v23 = vrot.slane %v1742_v36, 4  ;;  %v1756_v50 = vor.u32 %v1755_v43, %v1752_v10  ;;  %v2554_v31 = vld [vmem:[%s3139_s10 + $0x48] sm:$0xe]  ;;  %v2558_v32 = vrot.slane %v2550_v26, 9  ;;  %v3066_v36 = vld [vmem:[%s3642_s1 + $0x200] sm:$0xff]  }
  0x80   : > { %v1769_v48 = vrot.slane %v1767_v40, 5 }
  0x81   : > { %2897 = vmatpush3.bf16.msra.mxu0 %v3049_v35  ;;  %v3057_v35 = vld [vmem:[%s3642_s1 + $0x238] sm:$0xff]   ;;  %v1748_v53 = vsel %vm3182_vm2, %v1743_v23, %v1747_v29  ;;  %v1757_v55 = vrot.slane %v1756_v50, 4  ;;  %v1965_v29 = vrot.slane %v3504_v37, 5  ;;  %v1970_v38 = vsel %vm3265_vm5, %v2558_v32, %v1969_v33 }
  0x82   : > { %2921 = vmatpush3.bf16.msra.mxu1 %v3050_v39  ;;  %2898 = vmatprep.subr.bf16.mxu0 %v3051_v54  ;;  %v1764_v39 = vshrl.u32 %v2517_v27, 16  ;;  %v2553_v27 = vld [vmem:[%s3139_s10 + $0x40] sm:$0xe] }
  0x83   : > { %2922 = vmatprep.subr.bf16.mxu1 %v3052_v57  ;;  %v1762_v61 = vsel %vm3182_vm2, %v1757_v55, %v1761_v51  ;;  %v2561_v10 = vrot.slane %v2553_v27, 9  ;;  %v1966_v37 = vsel %vm3265_vm5, %v2557_v34, %v1965_v29 }
  0x84   : > { %v1766_v47 = vrot.slane %v1764_v39, 4  ;;  %v2562_v39 = vrot.slane %v2554_v31, 9  ;;  %v2580_v40 = vcombine.low %v1966_v37, %v1970_v38 }
  0x85   : > { %2899 = vmatpush3.bf16.msra.mxu0 %v3051_v54 }
  0x86   : > { %2923 = vmatpush3.bf16.msra.mxu1 %v3052_v57  ;;  %2900 = vmatprep.subr.bf16.mxu0 %v3053_v7  ;;  %v1770_v54 = vor.u32 %v1769_v48, %v1766_v47  ;;  %v2537_v57 = vcombine.low %v1734_v49, %v1748_v53 }
  0x87   : > { %2924 = vmatprep.subr.bf16.mxu1 %v3054_v17 }
  0x88   : > { %v1771_v58 = vrot.slane %v1770_v54, 4 }
  0x89   : > { %2901 = vmatpush3.bf16.msra.mxu0 %v3053_v7  ;;  %v1973_v7 = vrot.slane %v3527_v0, 5  ;;  %v1978_v0 = vsel %vm3265_vm5, %v2560_v8, %v1977_v11 }
  0x8a   : > { %2925 = vmatpush3.bf16.msra.mxu1 %v3054_v17  ;;  %2934 = vmatprep.subr.bf16.mxu0 %v3057_v35  ;;  %v1776_v6 = vsel %vm3182_vm2, %v1771_v58, %v1775_v52 }
  0x8b   : > { %2958 = vmatprep.subr.bf16.mxu1 %v3057_v35  ;;  %v2538_v17 = vcombine.low %v1762_v61, %v1776_v6  ;;  %v1974_v41 = vsel %vm3265_vm5, %v2559_v19, %v1973_v7 }
  0x8c   : > { %2903 = vmatmul.mubr.bf16.vlgmr.msra.gmra.mxu0 %v3056_v9  ;;  %v2581_v4 = vcombine.low %v1974_v41, %v1978_v0  ;;  %v1981_v9 = vrot.slane %v3547_v22, 5 }
  0x8d   : > { %2927 = vmatmul.mubr.bf16.vlgmr.msra.gmra.mxu1 %v2536_v45  ;;  %2935 = vmatpush3.bf16.msra.mxu0 %v3057_v35 }
  0x8e   : > { %2966 = vmatpush3.bf16.msra.mxu1 %v3057_v35  ;;  %2936 = vmatprep.subr.bf16.mxu0 %v3058_v46  ;;  %v1985_v35 = vrot.slane %v3551_v30, 5  ;;  %v1982_v22 = vsel %vm3265_vm5, %v2561_v10, %v1981_v9 }
  0x8f   : > { %2959 = vmatprep.subr.bf16.mxu1 %v3058_v46  ;;  %2906 = vmatprep.mubr.bf16.mxu0 %v3059_v28 }
  0x90   : > { %2930 = vmatprep.mubr.bf16.mxu1 %v2537_v57  ;;  %v1986_v30 = vsel %vm3265_vm5, %v2562_v39, %v1985_v35 }
  0x91   : > { %2937 = vmatpush3.bf16.msra.mxu0 %v3058_v46  ;;  %v2582_v42 = vcombine.low %v1982_v22, %v1986_v30 }
  0x92   : > { %2967 = vmatpush3.bf16.msra.mxu1 %v3058_v46  ;;  %2938 = vmatprep.subr.bf16.mxu0 %v3061_v13 }
  0x93   : > { %2960 = vmatprep.subr.bf16.mxu1 %v3061_v13 }
  0x94   : > { %2907 = vmatmul.mubr.bf16.gmra.mxu0 %v3060_v12 }
  0x95   : > { %2939 = vmatpush3.bf16.msra.mxu0 %v3061_v13  ;;  %2931 = vmatmul.mubr.bf16.gmra.mxu1 %v2538_v17 }
  0x96   : > { %2968 = vmatpush3.bf16.msra.mxu1 %v3061_v13  ;;  %2940 = vmatprep.subr.bf16.mxu0 %v3062_v3 }
  0x97   : > { %2961 = vmatprep.subr.bf16.mxu1 %v3062_v3  ;;  %2950 = vmatprep.mubr.bf16.mxu0 %v2579_v18 }
  0x98   : > { %2954 = vmatprep.mubr.bf16.mxu1 %v2581_v4 }
  0x99   : > { %2941 = vmatpush3.bf16.msra.mxu0 %v3062_v3 }
  0x9a   : > { %2969 = vmatpush3.bf16.msra.mxu1 %v3062_v3  ;;  %2942 = vmatprep.subr.bf16.mxu0 %v3063_v20 }
  0x9b   : > { %2962 = vmatprep.subr.bf16.mxu1 %v3063_v20 }
  0x9d   : > { %2943 = vmatpush3.bf16.msra.mxu0 %v3063_v20 }
  0x9e   : > { %2970 = vmatpush3.bf16.msra.mxu1 %v3063_v20  ;;  %2944 = vmatprep.subr.bf16.mxu0 %v3064_v21 }
  0x9f   : > { %2963 = vmatprep.subr.bf16.mxu1 %v3064_v21 }
  0xa1   : > { %2945 = vmatpush3.bf16.msra.mxu0 %v3064_v21 }
  0xa2   : > { %2971 = vmatpush3.bf16.msra.mxu1 %v3064_v21  ;;  %2946 = vmatprep.subr.bf16.mxu0 %v3065_v24 }
  0xa3   : > { %2964 = vmatprep.subr.bf16.mxu1 %v3065_v24 }
  0xa5   : > { %2947 = vmatpush3.bf16.msra.mxu0 %v3065_v24 }
  0xa6   : > { %2972 = vmatpush3.bf16.msra.mxu1 %v3065_v24  ;;  %2948 = vmatprep.subr.bf16.mxu0 %v3066_v36 }
  0xa7   : > { %2965 = vmatprep.subr.bf16.mxu1 %v3066_v36 }
  0xa9   : > { %2949 = vmatpush3.bf16.msra.mxu0 %v3066_v36 }
  0xaa   : > { %2973 = vmatpush3.bf16.msra.mxu1 %v3066_v36 }
  0xac   : > { %2951 = vmatmul.mubr.bf16.vlgmr.msra.gmra.mxu0 %v2580_v40 }
  0xad   : > { %2955 = vmatmul.mubr.bf16.vlgmr.msra.gmra.mxu1 %v2582_v42 }
  0xec   : > { %v2760_v43 = vpop.f32.mrf.mxu0 }
  0xed   : > { %v2784_v45 = vpop.f32.mrf.mxu1 }
  0xee   : > { %v434_v44 = vpop.f32.mrf.mxu0  ;;  %v580_v9 = vadd.f32 %v2784_v45, %v2760_v43 }
  0xef   : > { %v571_v23 = vpop.f32.mrf.mxu1 }
  0xf0   : > { %v2761_v46 = vpop.f32.mrf.mxu0  ;;  %v572_v39 = vadd.f32 %v571_v23, %v434_v44 }
  0xf1   : > { %v2785_v28 = vpop.f32.mrf.mxu1 }
  0xf2   : > { %v437_v47 = vpop.f32.mrf.mxu0  ;;  %v583_v30 = vadd.f32 %v2785_v28, %v2761_v46 }
  0xf3   : > { %v574_v50 = vpop.f32.mrf.mxu1 }
  0xf4   : > { %v2764_v48 = vpop.f32.mrf.mxu0 }
  0xf5   : > { %v2788_v51 = vpop.f32.mrf.mxu1 }
  0xf6   : > { %v450_v49 = vpop.f32.mrf.mxu0  ;;  %v596_v36 = vadd.f32 %v2788_v51, %v2764_v48 }
  0xf7   : > { %v587_v52 = vpop.f32.mrf.mxu1 }
  0xf8   : > { %v2765_v1 = vpop.f32.mrf.mxu0  ;;  %v588_v38 = vadd.f32 %v587_v52, %v450_v49 }
  0xf9   : > { %v2789_v55 = vpop.f32.mrf.mxu1 }
  0xfa   : > { %v453_v53 = vpop.f32.mrf.mxu0 }
  0xfb   : > { %v590_v57 = vpop.f32.mrf.mxu1 }
  0xfc   : > { %v591_v44 = vadd.f32 %v590_v57, %v453_v53 }
 0x10c   : > { %v2808_v54 = vpop.f32.mrf.mxu0 }
 0x10d   : > { %v2832_v58 = vpop.f32.mrf.mxu1  ;;  %v809_v37 = vadd.f32 %v2808_v54, %v580_v9 }
 0x10e   : > { %v776_v56 = vpop.f32.mrf.mxu0 }
 0x10f   : > { %v947_v15 = vpop.f32.mrf.mxu1  ;;  %v807_v40 = vadd.f32 %v776_v56, %v572_v39  ;;  %v980_v48 = vadd.f32 %v2832_v58, %v809_v37 }
 0x110   : > { %v2809_v59 = vpop.f32.mrf.mxu0 }
 0x111   : > { %v2833_v61 = vpop.f32.mrf.mxu1  ;;  %v810_v51 = vadd.f32 %v2809_v59, %v583_v30  ;;  %v978_v49 = vadd.f32 %v947_v15, %v807_v40 }
 0x112   : > { %v779_v60 = vpop.f32.mrf.mxu0 }
 0x113   : > { %v950_v63 = vpop.f32.mrf.mxu1  ;;  %v981_v56 = vadd.f32 %v2833_v61, %v810_v51 }
 0x114   : > { %v2812_v62 = vpop.f32.mrf.mxu0 }
 0x115   : > { %v2836_v5 = vpop.f32.mrf.mxu1  ;;  %v813_v22 = vadd.f32 %v2812_v62, %v596_v36 }
 0x116   : > { %v792_v2 = vpop.f32.mrf.mxu0 }
 0x117   : > { %v963_v6 = vpop.f32.mrf.mxu1  ;;  %v811_v43 = vadd.f32 %v792_v2, %v588_v38  ;;  %v984_v9 = vadd.f32 %v2836_v5, %v813_v22 }
 0x118   : > { %v2813_v13 = vpop.f32.mrf.mxu0 }
 0x119   : > { %v2837_v7 = vpop.f32.mrf.mxu1  ;;  %v982_v62 = vadd.f32 %v963_v6, %v811_v43 }
 0x11a   : > { %v795_v19 = vpop.f32.mrf.mxu0 }
 0x11b   : > { %v966_v11 = vpop.f32.mrf.mxu1  ;;  %v812_v28 = vadd.f32 %v795_v19, %v591_v44 }
 0x11d   : > { %v983_v58 = vadd.f32 %v966_v11, %v812_v28 }
 0x12c   : > { %v2856_v8 = vpop.f32.mrf.mxu0 }
 0x12d   : > { %v2880_v14 = vpop.f32.mrf.mxu1  ;;  %v1262_v36 = vadd.f32 %v2856_v8, %v980_v48 }
 0x12e   : > { %v1229_v12 = vpop.f32.mrf.mxu0 }
 0x12f   : > { %v1439_v17 = vpop.f32.mrf.mxu1 }
 0x130   : > { %v2857_v16 = vpop.f32.mrf.mxu0 }
 0x131   : > { %v2881_v0 = vpop.f32.mrf.mxu1 }
 0x132   : > { %v1232_v41 = vpop.f32.mrf.mxu0 }
 0x133   : > { %v3622_v18 = vpop.f32.mrf.mxu1 }
 0x134   : > { %v2860_v3 = vpop.f32.mrf.mxu0  ;;  %3649 = vst [vmem:[#allocation2_spill] sm:$0xff] %v3622_v18  ;;  %v599_v18 = vadd.f32 %v2789_v55, %v2765_v1 }
 0x135   : > { %v2884_v4 = vpop.f32.mrf.mxu1  ;;  %v1266_v46 = vadd.f32 %v2860_v3, %v984_v9 }
 0x136   : > { %v1245_v20 = vpop.f32.mrf.mxu0  ;;  %v814_v54 = vadd.f32 %v2813_v13, %v599_v18 }
 0x137   : > { %v1455_v21 = vpop.f32.mrf.mxu1  ;;  %v1264_v2 = vadd.f32 %v1245_v20, %v982_v62  ;;  %v1476_v59 = vadd.f32 %v2884_v4, %v1266_v46 }
 0x138   : > { %v2861_v24 = vpop.f32.mrf.mxu0  ;;  %v985_v55 = vadd.f32 %v2837_v7, %v814_v54 }
 0x139   : > { %v2885_v25 = vpop.f32.mrf.mxu1  ;;  %v1474_v6 = vadd.f32 %v1455_v21, %v1264_v2 }
 0x13a   : > { %v1248_v26 = vpop.f32.mrf.mxu0  ;;  %v1267_v53 = vadd.f32 %v2861_v24, %v985_v55 }
 0x13b   : > { %v1458_v31 = vpop.f32.mrf.mxu1  ;;  %v1265_v19 = vadd.f32 %v1248_v26, %v983_v58  ;;  %v3652_v20 = vld [vmem:[#allocation2_spill] sm:$0xff] }
 0x13d   : > { %v1475_v4 = vadd.f32 %v1458_v31, %v1265_v19 }
 0x14c   : > { %v2904_v27 = vpop.f32.mrf.mxu0 }
 0x14d   : > { %v2928_v34 = vpop.f32.mrf.mxu1 }
 0x14e   : > { %v1610_v29 = vpop.f32.mrf.mxu0 }
 0x14f   : > { %v1892_v32 = vpop.f32.mrf.mxu1 }
 0x150   : > { %v2905_v33 = vpop.f32.mrf.mxu0 }
 0x151   : > { %v3624_v35 = vpop.f32.mrf.mxu1 }
 0x152   : > { %3650 = vst [vmem:[#allocation3_spill] sm:$0xff] %v3624_v35  ;;  %v1613_v10 = vpop.f32.mrf.mxu0  ;;  %v575_v35 = vadd.f32 %v574_v50, %v437_v47  ;;  %v1472_v47 = vadd.f32 %v2880_v14, %v1262_v36  ;;  %v1263_v50 = vadd.f32 %v2857_v16, %v981_v56 }
 0x153   : > { %v3626_v42 = vpop.f32.mrf.mxu1 }
 0x154   : > { %3651 = vst [vmem:[#allocation4_spill] sm:$0xff] %v3626_v42  ;;  %v2908_v45 = vpop.f32.mrf.mxu0  ;;  %v808_v52 = vadd.f32 %v779_v60, %v575_v35  ;;  %v1260_v42 = vadd.f32 %v1229_v12, %v978_v49  ;;  %v1643_v60 = vadd.f32 %v2904_v27, %v1472_v47  ;;  %v1473_v3 = vadd.f32 %v2881_v0, %v1263_v50  ;;  %v2591_v0 = vld [vmem:[%s3643_s2] ss:$0 sm:$0xff] }
 0x155   : > { %v2932_v23 = vpop.f32.mrf.mxu1  ;;  %v1647_v8 = vadd.f32 %v2908_v45, %v1476_v59  ;;  %v1477_v12 = vadd.f32 %v2885_v25, %v1267_v53 }
 0x156   : > { %v1626_v39 = vpop.f32.mrf.mxu0  ;;  %v979_v38 = vadd.f32 %v950_v63, %v808_v52  ;;  %v1470_v5 = vadd.f32 %v1439_v17, %v1260_v42  ;;  %v1925_v14 = vadd.f32 %v2928_v34, %v1643_v60  ;;  %v1644_v16 = vadd.f32 %v2905_v33, %v1473_v3 }
 0x157   : > { %v1908_v1 = vpop.f32.mrf.mxu1  ;;  %v1645_v18 = vadd.f32 %v1626_v39, %v1474_v6  ;;  %v1929_v24 = vadd.f32 %v2932_v23, %v1647_v8 }
 0x158   : > { %v2909_v57 = vpop.f32.mrf.mxu0  ;;  %v1261_v15 = vadd.f32 %v1232_v41, %v979_v38  ;;  %v1641_v61 = vadd.f32 %v1610_v29, %v1470_v5 }
 0x159   : > { %v2933_v13 = vpop.f32.mrf.mxu1  ;;  %v1648_v35 = vadd.f32 %v2909_v57, %v1477_v12  ;;  %v1927_v26 = vadd.f32 %v1908_v1, %v1645_v18  ;;  %v3653_v30 = vld [vmem:[#allocation3_spill] sm:$0xff] }
 0x15a   : > { %v1629_v7 = vpop.f32.mrf.mxu0  ;;  %v1471_v63 = vadd.f32 %v3652_v20, %v1261_v15  ;;  %v1923_v41 = vadd.f32 %v1892_v32, %v1641_v61  ;;  %v1926_v34 = vadd.f32 %v3653_v30, %v1644_v16 }
 0x15b   : > { %v1911_v11 = vpop.f32.mrf.mxu1  ;;  %v1646_v22 = vadd.f32 %v1629_v7, %v1475_v4  ;;  %v1930_v40 = vadd.f32 %v2933_v13, %v1648_v35  ;;  %v3654_v32 = vld [vmem:[#allocation4_spill] sm:$0xff] }
 0x15c   : > { %v1642_v27 = vadd.f32 %v1613_v10, %v1471_v63 }
 0x15d   : > { %v1928_v23 = vadd.f32 %v1911_v11, %v1646_v22 }
 0x15e   : > { %v1924_v10 = vadd.f32 %v3654_v32, %v1642_v27 }
 0x16c   : > { %v2952_v17 = vpop.f32.mrf.mxu0 }
 0x16d   : > { %v2135_v37 = vadd.f32 %v2952_v17, %v1925_v14  ;;  %v2956_v21 = vpop.f32.mrf.mxu1 }
 0x16e   : > { %v2139_v25 = vadd.f32 %v2956_v21, %v1929_v24  ;;  %v2102_v29 = vpop.f32.mrf.mxu0 }
 0x16f   : > { %v2133_v33 = vadd.f32 %v2102_v29, %v1923_v41  ;;  %v2118_v31 = vpop.f32.mrf.mxu1  ;;  %v2150_v45 = vadd.f32 %v2591_v0, %v2135_v37 }
 0x170   : > { %v2137_v42 = vadd.f32 %v2118_v31, %v1927_v26  ;;  %v2953_v43 = vpop.f32.mrf.mxu0  ;;  %v2154_v44 = vadd.f32 %v2591_v0, %v2139_v25 }
 0x171   : > { %v2136_v48 = vadd.f32 %v2953_v43, %v1926_v34  ;;  %v2957_v51 = vpop.f32.mrf.mxu1  ;;  %v2148_v49 = vadd.f32 %v2591_v0, %v2133_v33  ;;  %v2158_v56 = vmax.f32 %v2150_v45, 0.0 }
 0x172   : > { %v2140_v9 = vadd.f32 %v2957_v51, %v1930_v40  ;;  %v2105_v54 = vpop.f32.mrf.mxu0  ;;  %v2152_v28 = vadd.f32 %v2591_v0, %v2137_v42  ;;  %v2162_v2 = vmax.f32 %v2154_v44, 0.0 }
 0x173   : > { %v2151_v52 = vadd.f32 %v2591_v0, %v2136_v48  ;;  %v2134_v36 = vadd.f32 %v2105_v54, %v1924_v10  ;;  %v2121_v62 = vpop.f32.mrf.mxu1  ;;  %v2156_v50 = vmax.f32 %v2148_v49, 0.0 }
 0x174   : > { %v2155_v46 = vadd.f32 %v2591_v0, %v2140_v9  ;;  %v2138_v39 = vadd.f32 %v2121_v62, %v1928_v23  ;;  %v2160_v53 = vmax.f32 %v2152_v28, 0.0 }
 0x175   : > { %v2159_v1 = vmax.f32 %v2151_v52, 0.0  ;;  %v2149_v55 = vadd.f32 %v2591_v0, %v2134_v36 }
 0x176   : > { %v2163_v38 = vmax.f32 %v2155_v46, 0.0  ;;  %v2153_v47 = vadd.f32 %v2591_v0, %v2138_v39 }
 0x177   : > { %v2619_v58 = vpack.c.bf16 %v2159_v1, %v2158_v56  ;;  %v2157_v59 = vmax.f32 %v2149_v55, 0.0 }
 0x178   : > { %v2629_v57 = vpack.c.bf16 %v2163_v38, %v2162_v2  ;;  %v2161_v5 = vmax.f32 %v2153_v47, 0.0 }
 0x179   : > { %2631 = vst [vmem:[%s170_s21 + $0x8] sm:$0xff] %v2619_v58   ;;  %v2614_v15 = vpack.c.bf16 %v2157_v59, %v2156_v50 }
 0x17a   : > { %2633 = vst [vmem:[%s170_s21 + $0x18] sm:$0xff] %v2629_v57   ;;  %v2624_v60 = vpack.c.bf16 %v2161_v5, %v2160_v53 }
 0x17b   : > { %2615 = vst [vmem:[%s170_s21] sm:$0xff] %v2614_v15  }
 0x17c   : > { %2632 = vst [vmem:[%s170_s21 + $0x10] sm:$0xff] %v2624_v60  }
 0x17d PF: > { %s13_s12 = sadd.s32 1, %s3073_s12  }
 0x17e   : > { %p10_p4 = scmp.ge.s32.totalorder %s13_s12, 4  }
 0x180   :  { %12 = sbr.rel (!%p10_p4) target bundleno = 1 (0x1), region = 72 }

// kernel: a_call__.5
= control target key start
LH: loop header
LB: loop body
LE: loop exit
PB: predicated region body
PF: predicated region fallthrough
CT: control target
= control target key end

     0   :  { %s6852_s12 = smov 0   ;;  %s9519_s0 = inlined_call_operand.vmem [shape: bf16[2,18,18,128], index: 0, kind: input, shape index: {}]   ;;  %s9520_s1 = inlined_call_operand.vmem [shape: bf16[3,3,128,128], index: 1, kind: input, shape index: {}]   ;;  %s9521_s2 = inlined_call_operand.vmem [shape: f32[1,128], index: 2, kind: input, shape index: {}]   ;;  %s9522_s3 = inlined_call_operand.vmem [shape: bf16[2,256,128], index: 3, kind: output, shape index: {}]  }
   0x1 LB: > { %s5267_s13 = sadd.s32 4294967295, %s6830_s12   ;;  %p5271_p0 = scmp.ge.s32.totalorder %s6830_s12, 1  ;;  %s6830_s12 = sphi %s6852_s12, %s13_s12  }
   0x2   : > { %p137_p1 = scmp.lt.s32.totalorder %s6830_s12, 3 }
   0x4   : > { %p138_p2 = pnand %p5271_p0, %p137_p1 }
   0x6   : > { %141 = sbr.rel (%p138_p2) target bundleno = 558 (0x22e), region = 32 }
   0xb   : > { %v6695_v0 = vld [vmem:[%s9520_s1 + $0x78] sm:$0xff]   ;;  %p161_p3 = scmp.lt.s32.totalorder %s5267_s13, 1  ;;  %v6696_v1 = vld [vmem:[%s9520_s1 + $0x70] sm:$0xff]   ;;  %v6697_v2 = vld [vmem:[%s9520_s1 + $0x68] sm:$0xff]   ;;  %vm236_vm0 = vsmask.f32 3328 }
   0xc   : > { %6238 = vmatprep.subr.bf16.mxu0 %v6695_v0  ;;  %6670 = vmatprep.subr.bf16.mxu1 %v6695_v0  ;;  %v6698_v3 = vld [vmem:[%s9520_s1 + $0x60] sm:$0xff]   ;;  %vm237_vm1 = vsmask.f32 7440  ;;  %v6699_v17 = vld [vmem:[%s9520_s1 + $0x58] sm:$0xff]   ;;  %v6700_v33 = vld [vmem:[%s9520_s1 + $0x50] sm:$0xff]   ;;  %vm1266_vm3 = vcmask 1042432  }
   0xd   : > { %s9715_s13 = smov (!%p161_p3, %s5267_s13), 1  ;;  %6239 = vmatpush3.bf16.msra.mxu0 %v6695_v0  ;;  %6678 = vmatpush3.bf16.msra.mxu1 %v6695_v0  ;;  %vm6906_vm2 = vmor %vm236_vm0, %vm237_vm1  ;;  %v6701_v58 = vld [vmem:[%s9520_s1 + $0x48] sm:$0xff]   ;;  %vm1267_vm4 = vcmask 1046532  }
   0xe   : > { %6240 = vmatprep.subr.bf16.mxu0 %v6696_v1  ;;  %6671 = vmatprep.subr.bf16.mxu1 %v6696_v1  ;;  %s6686_s20 = smul.u32 216, %s9715_s13  ;;  %vm7217_vm5 = vmor %vm1266_vm3, %vm1267_vm4  ;;  %s5894_s18 = sshll.u32 %s9715_s13, 7 }
  0x10   : > { %s6875_s23 = scalar_lea.vmem %s9519_s0, %s6686_s20  ;;  %s9422_s20 = scalar_lea.vmem %s9522_s3, %s5894_s18 }
  0x11   : > { %6241 = vmatpush3.bf16.msra.mxu0 %v6696_v1  ;;  %6679 = vmatpush3.bf16.msra.mxu1 %v6696_v1  ;;  %v6881_v4 = vld [vmem:[%s6875_s23] sm:$0xf]  ;;  %v6884_v5 = vld [vmem:[%s6875_s23 + $0x4] sm:$0xf]  ;;  %v6887_v6 = vld [vmem:[%s6875_s23 + $0x8] sm:$0x1] }
  0x12   : > { %6242 = vmatprep.subr.bf16.mxu0 %v6697_v2  ;;  %6672 = vmatprep.subr.bf16.mxu1 %v6697_v2  ;;  %v240_v7 = vshrl.u32 %v6881_v4, 16  ;;  %v243_v8 = vshll.u32 %v6881_v4, 16  ;;  %v249_v9 = vshll.u32 %v6884_v5, 16  ;;  %v253_v10 = vshrl.u32 %v6884_v5, 16  ;;  %v188_v12 = vld [vmem:[%s6875_s23 + $0x60] sm:$0xf] }
  0x13   : > { %v259_v11 = vshll.u32 %v6887_v6, 16  ;;  %v189_v15 = vld [vmem:[%s6875_s23 + $0x64] sm:$0xf]  ;;  %v228_v16 = vld [vmem:[%s6875_s23 + $0x68] sm:$0x1]  ;;  %v432_v21 = vshrl.u32 %v188_v12, 16 }
  0x14   : > { %v242_v13 = vrot.slane %v240_v7, 4  ;;  %v245_v14 = vrot.slane %v243_v8, 5  ;;  %v251_v18 = vrot.slane %v249_v9, 5  ;;  %v255_v19 = vrot.slane %v253_v10, 4  ;;  %v6902_v26 = vld [vmem:[%s6875_s23 + $0xc] sm:$0xf] }
  0x15   : > { %6243 = vmatpush3.bf16.msra.mxu0 %v6697_v2  ;;  %6680 = vmatpush3.bf16.msra.mxu1 %v6697_v2  ;;  %v435_v23 = vshll.u32 %v188_v12, 16  ;;  %v441_v24 = vshll.u32 %v189_v15, 16  ;;  %v445_v25 = vshrl.u32 %v189_v15, 16  ;;  %v261_v29 = vrot.slane %v259_v11, 5  ;;  %v6911_v32 = vld [vmem:[%s6875_s23 + $0x10] sm:$0xf] }
  0x16   : > { %6244 = vmatprep.subr.bf16.mxu0 %v6698_v3  ;;  %6673 = vmatprep.subr.bf16.mxu1 %v6698_v3  ;;  %v246_v22 = vor.u32 %v245_v14, %v242_v13  ;;  %v256_v28 = vor.u32 %v255_v19, %v251_v18  ;;  %v434_v30 = vrot.slane %v432_v21, 4  ;;  %v451_v31 = vshll.u32 %v228_v16, 16  ;;  %v6917_v40 = vld [vmem:[%s6875_s23 + $0x14] sm:$0x1]  ;;  %v190_v47 = vld [vmem:[%s6875_s23 + $0x6c] sm:$0xf] }
  0x17   : > { %v437_v35 = vrot.slane %v435_v23, 5  ;;  %v443_v36 = vrot.slane %v441_v24, 5  ;;  %v447_v37 = vrot.slane %v445_v25, 4  ;;  %v264_v41 = vshrl.u32 %v6902_v26, 16  ;;  %v191_v52 = vld [vmem:[%s6875_s23 + $0x70] sm:$0xf] }
  0x18   : > { %v247_v34 = vrot.slane %v246_v22, 4  ;;  %v257_v38 = vrot.slane %v256_v28, 4  ;;  %v453_v39 = vrot.slane %v451_v31, 5  ;;  %v267_v42 = vshll.u32 %v6902_v26, 16  ;;  %v229_v57 = vld [vmem:[%s6875_s23 + $0x74] sm:$0x1] }
  0x19   : > { %6245 = vmatpush3.bf16.msra.mxu0 %v6698_v3  ;;  %6681 = vmatpush3.bf16.msra.mxu1 %v6698_v3  ;;  %v438_v44 = vor.u32 %v437_v35, %v434_v30  ;;  %v448_v45 = vor.u32 %v447_v37, %v443_v36  ;;  %v273_v46 = vshll.u32 %v6911_v32, 16  ;;  %v266_v49 = vrot.slane %v264_v41, 4  ;;  %v6940_v14 = vld [vmem:[%s6875_s23 + $0x18] sm:$0xf]  ;;  %v6702_v15 = vld [vmem:[%s9520_s1 + $0x40] sm:$0xff]  }
  0x1a   : > { %6246 = vmatprep.subr.bf16.mxu0 %v6699_v17  ;;  %6674 = vmatprep.subr.bf16.mxu1 %v6699_v17  ;;  %v252_v43 = vsel %vm6906_vm2, %v247_v34, %v251_v18  ;;  %v262_v48 = vsel %vm6906_vm2, %v257_v38, %v261_v29  ;;  %v269_v50 = vrot.slane %v267_v42, 5  ;;  %v277_v51 = vshrl.u32 %v6911_v32, 16  ;;  %v6948_v19 = vld [vmem:[%s6875_s23 + $0x1c] sm:$0xf]  ;;  %v6953_v25 = vld [vmem:[%s6875_s23 + $0x20] sm:$0x1] }
  0x1b   : > { %v5291_v53 = vcombine.low %v252_v43, %v262_v48  ;;  %v439_v54 = vrot.slane %v438_v44, 4  ;;  %v449_v55 = vrot.slane %v448_v45, 4  ;;  %v275_v56 = vrot.slane %v273_v46, 5  ;;  %v192_v34 = vld [vmem:[%s6875_s23 + $0x78] sm:$0xf] }
  0x1c   : > { %v270_v59 = vor.u32 %v269_v50, %v266_v49  ;;  %v279_v60 = vrot.slane %v277_v51, 4  ;;  %v283_v61 = vshll.u32 %v6917_v40, 16  ;;  %v456_v1 = vshrl.u32 %v190_v47, 16  ;;  %v6703_v41 = vld [vmem:[%s9520_s1 + $0x38] sm:$0xff]   ;;  %v230_v49 = vld [vmem:[%s6875_s23 + $0x80] sm:$0x1] }
  0x1d   : > { %6247 = vmatpush3.bf16.msra.mxu0 %v6699_v17  ;;  %6682 = vmatpush3.bf16.msra.mxu1 %v6699_v17  ;;  %v444_v63 = vsel %vm6906_vm2, %v439_v54, %v443_v36  ;;  %v454_v0 = vsel %vm6906_vm2, %v449_v55, %v453_v39  ;;  %v459_v2 = vshll.u32 %v190_v47, 16  ;;  %v465_v12 = vshll.u32 %v191_v52, 16  ;;  %v6962_v39 = vld [vmem:[%s6875_s23 + $0x7c] sm:$0xf] }
  0x1e   : > { %6248 = vmatprep.subr.bf16.mxu0 %v6700_v33  ;;  %6675 = vmatprep.subr.bf16.mxu1 %v6700_v33  ;;  %v5299_v3 = vcombine.low %v444_v63, %v454_v0  ;;  %v271_v7 = vrot.slane %v270_v59, 4  ;;  %v280_v8 = vor.u32 %v279_v60, %v275_v56  ;;  %v285_v9 = vrot.slane %v283_v61, 5  ;;  %v6704_v42 = vld [vmem:[%s9520_s1 + $0xb8] sm:$0xff]   ;;  %v6706_v59 = vld [vmem:[%s9520_s1 + $0xb0] sm:$0xff]   ;;  %v6989_v0 = vld [vmem:[%s6875_s23 + $0x28] sm:$0xf] }
  0x1f   : > { %6254 = vmatprep.mubr.bf16.mxu0 %v5291_v53  ;;  %v458_v10 = vrot.slane %v456_v1, 4  ;;  %v461_v11 = vrot.slane %v459_v2, 5  ;;  %v469_v13 = vshrl.u32 %v191_v52, 16  ;;  %v475_v18 = vshll.u32 %v229_v57, 16  ;;  %v6705_v52 = vld [vmem:[%s9520_s1 + $0x30] sm:$0xff]  }
  0x20   : > { %v276_v16 = vsel %vm6906_vm2, %v271_v7, %v275_v56  ;;  %v281_v17 = vrot.slane %v280_v8, 4  ;;  %6270 = vmatprep.mubr.bf16.mxu1 %v5299_v3  ;;  %v467_v23 = vrot.slane %v465_v12, 5  ;;  %v288_v28 = vshrl.u32 %v6940_v14, 16  ;;  %v6980_v57 = vld [vmem:[%s6875_s23 + $0x24] sm:$0xf] }
  0x21   : > { %6249 = vmatpush3.bf16.msra.mxu0 %v6700_v33  ;;  %6683 = vmatpush3.bf16.msra.mxu1 %v6700_v33  ;;  %v462_v22 = vor.u32 %v461_v11, %v458_v10  ;;  %v471_v24 = vrot.slane %v469_v13, 4  ;;  %v477_v30 = vrot.slane %v475_v18, 5  ;;  %v291_v31 = vshll.u32 %v6940_v14, 16  ;;  %v6992_v8 = vld [vmem:[%s6875_s23 + $0x2c] sm:$0x1] }
  0x22   : > { %6250 = vmatprep.subr.bf16.mxu0 %v6701_v58  ;;  %6676 = vmatprep.subr.bf16.mxu1 %v6701_v58  ;;  %v286_v29 = vsel %vm6906_vm2, %v281_v17, %v285_v9  ;;  %v297_v33 = vshll.u32 %v6948_v19, 16  ;;  %v290_v38 = vrot.slane %v288_v28, 4  ;;  %v301_v45 = vshrl.u32 %v6948_v19, 16  ;;  %v6996_v13 = vld [vmem:[%s6875_s23 + $0x84] sm:$0xf] }
  0x23   : > { %v5292_v35 = vcombine.low %v276_v16, %v286_v29  ;;  %v463_v36 = vrot.slane %v462_v22, 4  ;;  %v472_v37 = vor.u32 %v471_v24, %v467_v23  ;;  %v293_v43 = vrot.slane %v291_v31, 5  ;;  %v7003_v22 = vld [vmem:[%s6875_s23 + $0x88] sm:$0xf] }
  0x24   : > { %v299_v44 = vrot.slane %v297_v33, 5  ;;  %v307_v46 = vshll.u32 %v6953_v25, 16  ;;  %v480_v50 = vshrl.u32 %v192_v34, 16  ;;  %v483_v51 = vshll.u32 %v192_v34, 16 }
  0x25   : > { %6251 = vmatpush3.bf16.msra.mxu0 %v6701_v58  ;;  %6684 = vmatpush3.bf16.msra.mxu1 %v6701_v58  ;;  %v468_v47 = vsel %vm6906_vm2, %v463_v36, %v467_v23  ;;  %v473_v48 = vrot.slane %v472_v37, 4  ;;  %v294_v53 = vor.u32 %v293_v43, %v290_v38  ;;  %v303_v54 = vrot.slane %v301_v45, 4  ;;  %v7012_v36 = vld [vmem:[%s6875_s23 + $0x8c] sm:$0x1] }
  0x26   : > { %6252 = vmatprep.subr.bf16.mxu0 %v6702_v15  ;;  %6677 = vmatprep.subr.bf16.mxu1 %v6702_v15  ;;  %v309_v55 = vrot.slane %v307_v46, 5  ;;  %v489_v56 = vshll.u32 %v6962_v39, 16  ;;  %v482_v60 = vrot.slane %v480_v50, 4  ;;  %v485_v61 = vrot.slane %v483_v51, 5  ;;  %v6708_v37 = vld [vmem:[%s9520_s1 + $0xa8] sm:$0xff]  }
  0x27   : > { %v478_v58 = vsel %vm6906_vm2, %v473_v48, %v477_v30  ;;  %v493_v63 = vshrl.u32 %v6962_v39, 16  ;;  %v295_v2 = vrot.slane %v294_v53, 4  ;;  %v304_v3 = vor.u32 %v303_v54, %v299_v44  ;;  %v6707_v30 = vld [vmem:[%s9520_s1 + $0x28] sm:$0xff]   ;;  %v7027_v53 = vld [vmem:[%s6875_s23 + $0x30] sm:$0xf] }
  0x28   : > { %v5300_v1 = vcombine.low %v468_v47, %v478_v58  ;;  %v491_v7 = vrot.slane %v489_v56, 5  ;;  %v486_v9 = vor.u32 %v485_v61, %v482_v60  ;;  %v499_v11 = vshll.u32 %v230_v49, 16  ;;  %v7036_v60 = vld [vmem:[%s6875_s23 + $0x34] sm:$0xf] }
  0x29   : > { %6253 = vmatpush3.bf16.msra.mxu0 %v6702_v15  ;;  %6685 = vmatpush3.bf16.msra.mxu1 %v6702_v15  ;;  %v495_v10 = vrot.slane %v493_v63, 4  ;;  %v312_v12 = vshrl.u32 %v6980_v57, 16  ;;  %v300_v15 = vsel %vm6906_vm2, %v295_v2, %v299_v44  ;;  %v305_v16 = vrot.slane %v304_v3, 4 }
  0x2a   : > { %6286 = vmatprep.subr.bf16.mxu1 %v6703_v41  ;;  %6334 = vmatprep.subr.bf16.mxu0 %v6704_v42  ;;  %v315_v17 = vshll.u32 %v6980_v57, 16  ;;  %v321_v18 = vshll.u32 %v6989_v0, 16  ;;  %v487_v23 = vrot.slane %v486_v9, 4  ;;  %v501_v28 = vrot.slane %v499_v11, 5 }
  0x2b   : > { %v496_v24 = vor.u32 %v495_v10, %v491_v7  ;;  %v314_v29 = vrot.slane %v312_v12, 4  ;;  %v310_v31 = vsel %vm6906_vm2, %v305_v16, %v309_v55  ;;  %v331_v43 = vshll.u32 %v6992_v8, 16  ;;  %v7044_v16 = vld [vmem:[%s6875_s23 + $0x38] sm:$0x1] }
  0x2c   : > { %6255 = vmatmul.mubr.bf16.vlgmr.msra.gmra.mxu0 %v5292_v35  ;;  %6271 = vmatmul.mubr.bf16.vlgmr.msra.gmra.mxu1 %v5300_v1  ;;  %v317_v33 = vrot.slane %v315_v17, 5  ;;  %v323_v34 = vrot.slane %v321_v18, 5  ;;  %v325_v35 = vshrl.u32 %v6989_v0, 16  ;;  %v5293_v38 = vcombine.low %v300_v15, %v310_v31  ;;  %v7048_v18 = vld [vmem:[%s6875_s23 + $0x90] sm:$0xf] }
  0x2d   : > { %6287 = vmatpush3.bf16.msra.mxu1 %v6703_v41  ;;  %6335 = vmatpush3.bf16.msra.mxu0 %v6704_v42  ;;  %v492_v41 = vsel %vm6906_vm2, %v487_v23, %v491_v7  ;;  %v497_v42 = vrot.slane %v496_v24, 4  ;;  %v504_v46 = vshrl.u32 %v6996_v13, 16  ;;  %v507_v47 = vshll.u32 %v6996_v13, 16  ;;  %v7054_v31 = vld [vmem:[%s6875_s23 + $0x94] sm:$0xf] }
  0x2e   : > { %6288 = vmatprep.subr.bf16.mxu1 %v6705_v52  ;;  %6336 = vmatprep.subr.bf16.mxu0 %v6706_v59  ;;  %v318_v44 = vor.u32 %v317_v33, %v314_v29  ;;  %v327_v45 = vrot.slane %v325_v35, 4  ;;  %v333_v49 = vrot.slane %v331_v43, 5  ;;  %v513_v50 = vshll.u32 %v7003_v22, 16 }
  0x2f   : > { %v502_v48 = vsel %vm6906_vm2, %v497_v42, %v501_v28  ;;  %v517_v51 = vshrl.u32 %v7003_v22, 16  ;;  %6258 = vmatprep.mubr.bf16.mxu0 %v5293_v38  ;;  %v506_v58 = vrot.slane %v504_v46, 4  ;;  %v509_v61 = vrot.slane %v507_v47, 5  ;;  %v6712_v38 = vld [vmem:[%s9520_s1 + $0x98] sm:$0xff]   ;;  %v6713_v46 = vld [vmem:[%s9520_s1 + $0x10] sm:$0xff]  }
  0x30   : > { %v5301_v54 = vcombine.low %v492_v41, %v502_v48  ;;  %v319_v55 = vrot.slane %v318_v44, 4  ;;  %v328_v56 = vor.u32 %v327_v45, %v323_v34  ;;  %v515_v63 = vrot.slane %v513_v50, 5  ;;  %v7064_v44 = vld [vmem:[%s6875_s23 + $0x98] sm:$0x1] }
  0x31   : > { %6289 = vmatpush3.bf16.msra.mxu1 %v6705_v52  ;;  %6337 = vmatpush3.bf16.msra.mxu0 %v6706_v59  ;;  %v6709_v52 = vld [vmem:[%s9520_s1 + $0x20] sm:$0xff]   ;;  %v519_v1 = vrot.slane %v517_v51, 4  ;;  %v523_v2 = vshll.u32 %v7012_v36, 16  ;;  %v336_v9 = vshrl.u32 %v7027_v53, 16  ;;  %v339_v10 = vshll.u32 %v7027_v53, 16 }
  0x32   : > { %6290 = vmatprep.subr.bf16.mxu1 %v6707_v30  ;;  %v6710_v59 = vld [vmem:[%s9520_s1 + $0xa0] sm:$0xff]   ;;  %6338 = vmatprep.subr.bf16.mxu0 %v6708_v37  ;;  %v324_v3 = vsel %vm6906_vm2, %v319_v55, %v323_v34  ;;  %v329_v7 = vrot.slane %v328_v56, 4  ;;  %v510_v11 = vor.u32 %v509_v61, %v506_v58  ;;  %v345_v17 = vshll.u32 %v7036_v60, 16  ;;  %v7077_v51 = vld [vmem:[%s6875_s23 + $0x3c] sm:$0xf]  ;;  %v6714_v55 = vld [vmem:[%s9520_s1 + $0x90] sm:$0xff]  }
  0x33   : > { %6274 = vmatprep.mubr.bf16.mxu1 %v5301_v54  ;;  %v520_v12 = vor.u32 %v519_v1, %v515_v63  ;;  %v525_v15 = vrot.slane %v523_v2, 5  ;;  %v338_v24 = vrot.slane %v336_v9, 4  ;;  %v341_v28 = vrot.slane %v339_v10, 5  ;;  %v7080_v54 = vld [vmem:[%s6875_s23 + $0x40] sm:$0xf] }
  0x34   : > { %v334_v23 = vsel %vm6906_vm2, %v329_v7, %v333_v49  ;;  %v349_v29 = vshrl.u32 %v7036_v60, 16  ;;  %v511_v34 = vrot.slane %v510_v11, 4  ;;  %v355_v43 = vshll.u32 %v7044_v16, 16  ;;  %v7087_v7 = vld [vmem:[%s6875_s23 + $0x44] sm:$0x1] }
  0x35   : > { %6291 = vmatpush3.bf16.msra.mxu1 %v6707_v30  ;;  %6339 = vmatpush3.bf16.msra.mxu0 %v6708_v37  ;;  %v6711_v30 = vld [vmem:[%s9520_s1 + $0x18] sm:$0xff]   ;;  %v5294_v33 = vcombine.low %v324_v3, %v334_v23  ;;  %v521_v35 = vrot.slane %v520_v12, 4  ;;  %v347_v37 = vrot.slane %v345_v17, 5  ;;  %v342_v41 = vor.u32 %v341_v28, %v338_v24  ;;  %v7099_v28 = vld [vmem:[%s6875_s23 + $0xa0] sm:$0xf] }
  0x36   : > { %6292 = vmatprep.subr.bf16.mxu1 %v6709_v52  ;;  %6340 = vmatprep.subr.bf16.mxu0 %v6710_v59  ;;  %v351_v42 = vrot.slane %v349_v29, 4  ;;  %v528_v45 = vshrl.u32 %v7048_v18, 16  ;;  %v516_v47 = vsel %vm6906_vm2, %v511_v34, %v515_v63  ;;  %v531_v49 = vshll.u32 %v7048_v18, 16  ;;  %v7090_v9 = vld [vmem:[%s6875_s23 + $0x9c] sm:$0xf]  ;;  %v6715_v29 = vld [vmem:[%s9520_s1 + $0x8] sm:$0xff]  }
  0x37   : > { %6259 = vmatmul.mubr.bf16.gmra.mxu0 %v5294_v33  ;;  %v526_v48 = vsel %vm6906_vm2, %v521_v35, %v525_v15  ;;  %v537_v50 = vshll.u32 %v7054_v31, 16  ;;  %v343_v58 = vrot.slane %v342_v41, 4  ;;  %v357_v63 = vrot.slane %v355_v43, 5  ;;  %v6716_v41 = vld [vmem:[%s9520_s1 + $0x88] sm:$0xff]  }
  0x38   : > { %v5302_v56 = vcombine.low %v516_v47, %v526_v48  ;;  %v352_v61 = vor.u32 %v351_v42, %v347_v37  ;;  %v533_v1 = vrot.slane %v531_v49, 5  ;;  %v541_v3 = vshrl.u32 %v7054_v31, 16 }
  0x39   : > { %6293 = vmatpush3.bf16.msra.mxu1 %v6709_v52  ;;  %6341 = vmatpush3.bf16.msra.mxu0 %v6710_v59  ;;  %v530_v52 = vrot.slane %v528_v45, 4  ;;  %v539_v2 = vrot.slane %v537_v50, 5  ;;  %v348_v10 = vsel %vm6906_vm2, %v343_v58, %v347_v37  ;;  %v547_v11 = vshll.u32 %v7064_v44, 16 }
  0x3a   : > { %6294 = vmatprep.subr.bf16.mxu1 %v6711_v30  ;;  %6342 = vmatprep.subr.bf16.mxu0 %v6712_v38  ;;  %v353_v59 = vrot.slane %v352_v61, 4  ;;  %v360_v12 = vshrl.u32 %v7077_v51, 16  ;;  %v543_v17 = vrot.slane %v541_v3, 4  ;;  %v363_v23 = vshll.u32 %v7077_v51, 16  ;;  %v7115_v61 = vld [vmem:[%s6875_s23 + $0xa4] sm:$0x1] }
  0x3b   : > { %6275 = vmatmul.mubr.bf16.gmra.mxu1 %v5302_v56  ;;  %v534_v15 = vor.u32 %v533_v1, %v530_v52  ;;  %v369_v24 = vshll.u32 %v7080_v54, 16  ;;  %v549_v34 = vrot.slane %v547_v11, 5  ;;  %v373_v37 = vshrl.u32 %v7080_v54, 16 }
  0x3c   : > { %v358_v33 = vsel %vm6906_vm2, %v353_v59, %v357_v63  ;;  %v362_v35 = vrot.slane %v360_v12, 4  ;;  %v544_v43 = vor.u32 %v543_v17, %v539_v2  ;;  %v365_v45 = vrot.slane %v363_v23, 5  ;;  %v7120_v59 = vld [vmem:[%s6875_s23 + $0x48] sm:$0xf]  ;;  %v7129_v17 = vld [vmem:[%s6875_s23 + $0x4c] sm:$0xf] }
  0x3d   : > { %6295 = vmatpush3.bf16.msra.mxu1 %v6711_v30  ;;  %6343 = vmatpush3.bf16.msra.mxu0 %v6712_v38  ;;  %v5295_v42 = vcombine.low %v348_v10, %v358_v33  ;;  %v535_v30 = vrot.slane %v534_v15, 4  ;;  %v371_v47 = vrot.slane %v369_v24, 5  ;;  %v375_v48 = vrot.slane %v373_v37, 4 }
  0x3e   : > { %6296 = vmatprep.subr.bf16.mxu1 %v6713_v46  ;;  %6344 = vmatprep.subr.bf16.mxu0 %v6714_v55  ;;  %v379_v49 = vshll.u32 %v7087_v7, 16  ;;  %v552_v50 = vshrl.u32 %v7090_v9, 16  ;;  %v545_v56 = vrot.slane %v544_v43, 4  ;;  %v366_v58 = vor.u32 %v365_v45, %v362_v35 }
  0x3f   : > { %6262 = vmatprep.mubr.bf16.mxu0 %v5295_v42  ;;  %v540_v38 = vsel %vm6906_vm2, %v535_v30, %v539_v2  ;;  %v555_v63 = vshll.u32 %v7090_v9, 16  ;;  %v376_v52 = vor.u32 %v375_v48, %v371_v47  ;;  %v561_v10 = vshll.u32 %v7099_v28, 16  ;;  %v6717_v2 = vld [vmem:[%s9520_s1] sm:$0xff]   ;;  %v7138_v30 = vld [vmem:[%s6875_s23 + $0x50] sm:$0x1] }
  0x40   : > { %v381_v1 = vrot.slane %v379_v49, 5  ;;  %v554_v3 = vrot.slane %v552_v50, 4  ;;  %v550_v11 = vsel %vm6906_vm2, %v545_v56, %v549_v34  ;;  %v367_v12 = vrot.slane %v366_v58, 4 }
  0x41   : > { %6297 = vmatpush3.bf16.msra.mxu1 %v6713_v46  ;;  %6345 = vmatpush3.bf16.msra.mxu0 %v6714_v55  ;;  %v557_v15 = vrot.slane %v555_v63, 5  ;;  %v565_v46 = vshrl.u32 %v7099_v28, 16  ;;  %v6718_v55 = vld [vmem:[%s9520_s1 + $0x80] sm:$0xff]   ;;  %v5303_v23 = vcombine.low %v540_v38, %v550_v11  ;;  %v377_v24 = vrot.slane %v376_v52, 4  ;;  %v7146_v38 = vld [vmem:[%s6875_s23 + $0xa8] sm:$0xf] }
  0x42   : > { %6298 = vmatprep.subr.bf16.mxu1 %v6715_v29  ;;  %6346 = vmatprep.subr.bf16.mxu0 %v6716_v41  ;;  %v563_v33 = vrot.slane %v561_v10, 5  ;;  %v571_v35 = vshll.u32 %v7115_v61, 16  ;;  %v372_v34 = vsel %vm6906_vm2, %v367_v12, %v371_v47  ;;  %v384_v43 = vshrl.u32 %v7120_v59, 16  ;;  %9549 = vst [vmem:[#allocation2_spill] sm:$0xff] %v7146_v38  ;;  %v7151_v47 = vld [vmem:[%s9520_s1 + $0xf8] sm:$0xff]  }
  0x43   : > { %v558_v37 = vor.u32 %v557_v15, %v554_v3  ;;  %v567_v42 = vrot.slane %v565_v46, 4  ;;  %6278 = vmatprep.mubr.bf16.mxu1 %v5303_v23  ;;  %v382_v45 = vsel %vm6906_vm2, %v377_v24, %v381_v1  ;;  %v387_v49 = vshll.u32 %v7120_v59, 16  ;;  %v7154_v52 = vld [vmem:[%s6875_s23 + $0xac] sm:$0xf]  ;;  %v7159_v1 = vld [vmem:[%s9520_s1 + $0x138] sm:$0xff]  }
  0x44   : > { %v573_v48 = vrot.slane %v571_v35, 5  ;;  %v393_v50 = vshll.u32 %v7129_v17, 16  ;;  %v386_v63 = vrot.slane %v384_v43, 4  ;;  %v397_v10 = vshrl.u32 %v7129_v17, 16  ;;  %v7164_v12 = vld [vmem:[%s6875_s23 + $0xb0] sm:$0x1] }
  0x45   : > { %6299 = vmatpush3.bf16.msra.mxu1 %v6715_v29  ;;  %6347 = vmatpush3.bf16.msra.mxu0 %v6716_v41  ;;  %v5296_v29 = vcombine.low %v372_v34, %v382_v45  ;;  %v559_v56 = vrot.slane %v558_v37, 4  ;;  %v568_v58 = vor.u32 %v567_v42, %v563_v33  ;;  %v389_v41 = vrot.slane %v387_v49, 5  ;;  %9550 = vst [vmem:[#allocation3_spill] sm:$0xff] %v7164_v12  ;;  %v7167_v15 = vld [vmem:[%s6875_s23 + $0x54] sm:$0xf] }
  0x46   : > { %6300 = vmatprep.subr.bf16.mxu1 %v6717_v2  ;;  %6348 = vmatprep.subr.bf16.mxu0 %v6718_v55  ;;  %v395_v3 = vrot.slane %v393_v50, 5  ;;  %v403_v11 = vshll.u32 %v7138_v30, 16  ;;  %v576_v24 = vshrl.u32 %v7146_v38, 16  ;;  %v579_v35 = vshll.u32 %v7146_v38, 16  ;;  %v7174_v34 = vld [vmem:[%s6875_s23 + $0x58] sm:$0xf] }
  0x47   : > { %6263 = vmatmul.mubr.bf16.gmra.mxu0 %v5296_v29  ;;  %v564_v46 = vsel %vm6906_vm2, %v559_v56, %v563_v33  ;;  %v569_v23 = vrot.slane %v568_v58, 4  ;;  %v390_v37 = vor.u32 %v389_v41, %v386_v63  ;;  %v399_v42 = vrot.slane %v397_v10, 4 }
  0x48   : > { %v405_v43 = vrot.slane %v403_v11, 5  ;;  %v585_v45 = vshll.u32 %v7154_v52, 16  ;;  %v578_v49 = vrot.slane %v576_v24, 4  ;;  %v581_v50 = vrot.slane %v579_v35, 5 }
  0x49   : > { %6301 = vmatpush3.bf16.msra.mxu1 %v6717_v2  ;;  %6349 = vmatpush3.bf16.msra.mxu0 %v6718_v55  ;;  %v574_v33 = vsel %vm6906_vm2, %v569_v23, %v573_v48  ;;  %v589_v29 = vshrl.u32 %v7154_v52, 16  ;;  %v391_v56 = vrot.slane %v390_v37, 4  ;;  %v400_v58 = vor.u32 %v399_v42, %v395_v3  ;;  %v7183_v55 = vld [vmem:[%s6875_s23 + $0x5c] sm:$0x1]  ;;  %v7188_v48 = vld [vmem:[%s6875_s23 + $0xb4] sm:$0xf] }
  0x4a   : > { %6382 = vmatprep.subr.bf16.mxu1 %v7151_v47  ;;  %6430 = vmatprep.subr.bf16.mxu0 %v7159_v1  ;;  %v5304_v2 = vcombine.low %v564_v46, %v574_v33  ;;  %v587_v63 = vrot.slane %v585_v45, 5  ;;  %v582_v41 = vor.u32 %v581_v50, %v578_v49  ;;  %v595_v11 = vshll.u32 %v7164_v12, 16  ;;  %9551 = vst [vmem:[#allocation4_spill] sm:$0xff] %v7188_v48  ;;  %v7195_v37 = vld [vmem:[%s6875_s23 + $0xb8] sm:$0xf] }
  0x4b   : > { %v591_v10 = vrot.slane %v589_v29, 4  ;;  %v408_v21 = vshrl.u32 %v7167_v15, 16  ;;  %v396_v23 = vsel %vm6906_vm2, %v391_v56, %v395_v3  ;;  %v401_v24 = vrot.slane %v400_v58, 4  ;;  %9552 = vst [vmem:[#allocation5_spill] sm:$0xff] %v7195_v37  ;;  %v7201_v3 = vld [vmem:[%s6875_s23 + $0xbc] sm:$0x1] }
  0x4c   : > { %6279 = vmatmul.mubr.bf16.gmra.mxu1 %v5304_v2  ;;  %v411_v46 = vshll.u32 %v7167_v15, 16  ;;  %v417_v35 = vshll.u32 %v7174_v34, 16  ;;  %v583_v42 = vrot.slane %v582_v41, 4  ;;  %v597_v33 = vrot.slane %v595_v11, 5  ;;  %9553 = vst [vmem:[#allocation6_spill] sm:$0xff] %v7201_v3 }
  0x4d   : > { %v592_v45 = vor.u32 %v591_v10, %v587_v63  ;;  %v410_v49 = vrot.slane %v408_v21, 4  ;;  %v406_v50 = vsel %vm6906_vm2, %v401_v24, %v405_v43  ;;  %v421_v62 = vshrl.u32 %v7174_v34, 16  ;;  %v1218_v10 = vld [vmem:[%s6875_s23] sm:$0xe] }
  0x4e   : > { %v413_v29 = vrot.slane %v411_v46, 5  ;;  %v419_v2 = vrot.slane %v417_v35, 5  ;;  %v5297_v56 = vcombine.low %v396_v23, %v406_v50  ;;  %v588_v58 = vsel %vm6906_vm2, %v583_v42, %v587_v63 }
  0x4f   : > { %v593_v20 = vrot.slane %v592_v45, 4  ;;  %v427_v41 = vshll.u32 %v7183_v55, 16  ;;  %v423_v21 = vrot.slane %v421_v62, 4  ;;  %v600_v12 = vshrl.u32 %v7188_v48, 16 }
  0x50   : > { %v414_v11 = vor.u32 %v413_v29, %v410_v49  ;;  %v603_v43 = vshll.u32 %v7188_v48, 16  ;;  %6266 = vmatprep.mubr.bf16.mxu0 %v5297_v56  ;;  %v609_v46 = vshll.u32 %v7195_v37, 16  ;;  %v613_v63 = vshrl.u32 %v7195_v37, 16  ;;  %v1219_v49 = vld [vmem:[%s6875_s23 + $0xc] sm:$0xe] }
  0x51   : > { %v598_v24 = vsel %vm6906_vm2, %v593_v20, %v597_v33  ;;  %v429_v23 = vrot.slane %v427_v41, 5  ;;  %v424_v45 = vor.u32 %v423_v21, %v419_v2  ;;  %v602_v50 = vrot.slane %v600_v12, 4  ;;  %v1220_v20 = vld [vmem:[%s6875_s23 + $0x18] sm:$0xe] }
  0x52   : > { %v5305_v35 = vcombine.low %v588_v58, %v598_v24  ;;  %v415_v42 = vrot.slane %v414_v11, 4  ;;  %v605_v62 = vrot.slane %v603_v43, 5  ;;  %v611_v29 = vrot.slane %v609_v46, 5 }
  0x53   : > { %v615_v38 = vrot.slane %v613_v63, 4  ;;  %v619_v48 = vshll.u32 %v7201_v3, 16  ;;  %v425_v58 = vrot.slane %v424_v45, 4  ;;  %v5339_v41 = vrot.slane %v1218_v10, 9 }
  0x54   : > { %6282 = vmatprep.mubr.bf16.mxu1 %v5305_v35  ;;  %v420_v33 = vsel %vm6906_vm2, %v415_v42, %v419_v2  ;;  %v1271_v12 = vrot.slane %v6884_v5, 5  ;;  %v606_v11 = vor.u32 %v605_v62, %v602_v50  ;;  %v5340_v24 = vrot.slane %v1219_v49, 9 }
  0x55   : > { %v616_v21 = vor.u32 %v615_v38, %v611_v29  ;;  %v621_v43 = vrot.slane %v619_v48, 5  ;;  %v430_v46 = vsel %vm6906_vm2, %v425_v58, %v429_v23  ;;  %v1278_v35 = vrot.slane %v6911_v32, 5 }
  0x56   : > { %v1272_v63 = vsel %vm7217_vm5, %v5339_v41, %v1271_v12  ;;  %v1273_v3 = vrot.slane %v1271_v12, 4  ;;  %v5298_v37 = vcombine.low %v420_v33, %v430_v46  ;;  %v607_v2 = vrot.slane %v606_v11, 4  ;;  %v1222_v12 = vld [vmem:[%s6875_s23 + $0x30] sm:$0xe]  ;;  %v1224_v46 = vld [vmem:[%s6875_s23 + $0x48] sm:$0xe] }
  0x57   : > { %v617_v42 = vrot.slane %v616_v21, 4  ;;  %v5315_v10 = vcombine.low %v6881_v4, %v6884_v5  ;;  %v9556_v38 = vrot.slane %v6887_v6, 5  ;;  %v1280_v45 = vrot.slane %v1278_v35, 4 }
  0x58   : > { %v5341_v23 = vrot.slane %v1220_v20, 9  ;;  %6267 = vmatmul.mubr.bf16.gmra.mxu0 %v5298_v37  ;;  %v612_v50 = vsel %vm6906_vm2, %v607_v2, %v611_v29  ;;  %v1285_v33 = vrot.slane %v6948_v19, 5  ;;  %v1279_v4 = vsel %vm7217_vm5, %v5340_v24, %v1278_v35  ;;  %v1223_v24 = vld [vmem:[%s6875_s23 + $0x3c] sm:$0xe] }
  0x59   : > { %v1275_v48 = vsel %vm7217_vm5, %v1273_v3, %v9556_v38  ;;  %v622_v49 = vsel %vm6906_vm2, %v617_v42, %v621_v43  ;;  %v9557_v5 = vrot.slane %v6917_v40, 5  ;;  %v1288_v37 = vrot.slane %v6953_v25, 5  ;;  %v1221_v3 = vld [vmem:[%s6875_s23 + $0x24] sm:$0xe]  ;;  %v6726_v25 = vld [vmem:[%s9520_s1 + $0x130] sm:$0xff]  }
  0x5a   : > { %v5371_v62 = vcombine.low %v1272_v63, %v1275_v48  ;;  %v5306_v58 = vcombine.low %v612_v50, %v622_v49  ;;  %v1286_v29 = vsel %vm7217_vm5, %v5341_v23, %v1285_v33  ;;  %v1287_v20 = vrot.slane %v1285_v33, 4  ;;  %v6725_v23 = vld [vmem:[%s9520_s1 + $0xf0] sm:$0xff]  }
  0x5b   : > { %v1282_v6 = vsel %vm7217_vm5, %v1280_v45, %v9557_v5  ;;  %v1292_v41 = vrot.slane %v6989_v0, 5  ;;  %v5342_v21 = vrot.slane %v1221_v3, 9  ;;  %v1299_v43 = vrot.slane %v7036_v60, 5  ;;  %v7292_v3 = vld [vmem:[%s6875_s23 + $0x68] sm:$0x1] }
  0x5c   : > { %6350 = vmatprep.mubr.bf16.mxu0 %v5371_v62  ;;  %6283 = vmatmul.mubr.bf16.gmra.mxu1 %v5306_v58  ;;  %v5372_v11 = vcombine.low %v1279_v4, %v1282_v6  ;;  %v1289_v40 = vsel %vm7217_vm5, %v1287_v20, %v1288_v37  ;;  %v1295_v2 = vrot.slane %v6992_v8, 5  ;;  %v5343_v42 = vrot.slane %v1222_v12, 9  ;;  %v1225_v37 = vld [vmem:[%s6875_s23 + $0x54] sm:$0xe]  ;;  %v7316_v12 = vld [vmem:[%s6875_s23 + $0x60] sm:$0xe] }
  0x5d   : > { %6302 = vmatprep.mubr.bf16.mxu1 %v5315_v10  ;;  %v5373_v63 = vcombine.low %v1286_v29, %v1289_v40  ;;  %v1294_v35 = vrot.slane %v1292_v41, 4  ;;  %v1301_v38 = vrot.slane %v1299_v43, 4  ;;  %v1302_v10 = vrot.slane %v7044_v16, 5 }
  0x5e   : > { %v1306_v48 = vrot.slane %v7080_v54, 5  ;;  %v5317_v45 = vcombine.low %v6940_v14, %v6948_v19  ;;  %v1313_v50 = vrot.slane %v7129_v17, 5  ;;  %v5344_v49 = vrot.slane %v1223_v24, 9  ;;  %v6734_v24 = vld [vmem:[%s9520_s1 + $0x120] sm:$0xff]  }
  0x5f   : > { %v1309_v8 = vrot.slane %v7087_v7, 5  ;;  %v5345_v33 = vrot.slane %v1224_v46, 9  ;;  %v1293_v14 = vsel %vm7217_vm5, %v5342_v21, %v1292_v41  ;;  %v1296_v19 = vsel %vm7217_vm5, %v1294_v35, %v1295_v2  ;;  %v7328_v46 = vld [vmem:[%s6875_s23 + $0x78] sm:$0xe]  ;;  %v6733_v2 = vld [vmem:[%s9520_s1 + $0xe0] sm:$0xff]  }
  0x60   : > { %6351 = vmatmul.mubr.bf16.vlgmr.msra.gmra.mxu0 %v5372_v11  ;;  %v1308_v62 = vrot.slane %v1306_v48, 4  ;;  %v1315_v16 = vrot.slane %v1313_v50, 4  ;;  %v1316_v58 = vrot.slane %v7138_v30, 5  ;;  %v1300_v4 = vsel %vm7217_vm5, %v5343_v42, %v1299_v43  ;;  %v7319_v11 = vld [vmem:[%s6875_s23 + $0x6c] sm:$0xe] }
  0x61   : > { %6431 = vmatpush3.bf16.msra.mxu0 %v7159_v1  ;;  %6354 = vmatprep.mubr.bf16.mxu0 %v5373_v63  ;;  %v1303_v7 = vsel %vm7217_vm5, %v1301_v38, %v1302_v10  ;;  %v6730_v1 = vld [vmem:[%s9520_s1 + $0x128] sm:$0xff]   ;;  %v1320_v5 = vrot.slane %v7174_v34, 5  ;;  %v9558_v6 = vcombine.low %v6902_v26, %v6911_v32  ;;  %v5318_v30 = vcombine.low %v6980_v57, %v6989_v0  ;;  %v1229_v63 = vld [vmem:[%s6875_s23 + $0x84] sm:$0xe]  ;;  %v1230_v42 = vld [vmem:[%s6875_s23 + $0x90] sm:$0xe] }
  0x62   : > { %6432 = vmatprep.subr.bf16.mxu0 %v6726_v25  ;;  %v1330_v29 = vrot.slane %v7292_v3, 5  ;;  %v5374_v20 = vcombine.low %v1293_v14, %v1296_v19  ;;  %v7298_v41 = vsel %vm7217_vm5, %v5344_v49, %v1306_v48  ;;  %v7302_v26 = vsel %vm7217_vm5, %v1308_v62, %v1309_v8  ;;  %v6729_v32 = vld [vmem:[%s9520_s1 + $0xe8] sm:$0xff]   ;;  %v7347_v48 = vld [vmem:[%s6875_s23 + $0x64] sm:$0xf]  ;;  %v1231_v49 = vld [vmem:[%s6875_s23 + $0x9c] sm:$0xe] }
  0x63   : > { %v5375_v57 = vcombine.low %v1300_v4, %v1303_v7  ;;  %v7309_v0 = vsel %vm7217_vm5, %v5345_v33, %v1313_v50  ;;  %v5319_v40 = vcombine.low %v7027_v53, %v7036_v60  ;;  %v5346_v21 = vrot.slane %v1225_v37, 9  ;;  %v7369_v4 = vld [vmem:[%s6875_s23 + $0x74] sm:$0x1] }
  0x64   : > { %6303 = vmatmul.mubr.bf16.vlgmr.msra.gmra.mxu1 %v9558_v6  ;;  %v1323_v43 = vrot.slane %v7183_v55, 5  ;;  %v5320_v35 = vcombine.low %v7077_v51, %v7080_v54  ;;  %v5376_v53 = vcombine.low %v7298_v41, %v7302_v26  ;;  %v5321_v60 = vcombine.low %v7120_v59, %v7129_v17  ;;  %v6819_v54 = vld [vmem:[%s6875_s23 + $0x80] sm:$0x1] }
  0x65   : > { %6383 = vmatpush3.bf16.msra.mxu1 %v7151_v47  ;;  %6306 = vmatprep.mubr.bf16.mxu1 %v5317_v45  ;;  %v7313_v47 = vsel %vm7217_vm5, %v1315_v16, %v1316_v58  ;;  %v5322_v55 = vcombine.low %v7167_v15, %v7174_v34  ;;  %v5347_v10 = vrot.slane %v7316_v12, 9  ;;  %v1327_v45 = vrot.slane %v7347_v48, 5  ;;  %v7365_v16 = vld [vmem:[%s6875_s23 + $0x70] sm:$0xf]  ;;  %v6820_v17 = vld [vmem:[%s6875_s23 + $0x60] sm:$0xf] }
  0x66   : > { %6384 = vmatprep.subr.bf16.mxu1 %v6725_v23  ;;  %6433 = vmatpush3.bf16.msra.mxu0 %v6726_v25  ;;  %v1322_v25 = vrot.slane %v1320_v5, 4  ;;  %v5377_v38 = vcombine.low %v7309_v0, %v7313_v47  ;;  %v5348_v62 = vrot.slane %v7319_v11, 9  ;;  %v1348_v8 = vrot.slane %v7003_v22, 5  ;;  %v1232_v0 = vld [vmem:[%s6875_s23 + $0xa8] sm:$0xe]  ;;  %v7549_v15 = vld [vmem:[%s9520_s1 + $0x1b8] sm:$0xff]  }
  0x67   : > { %6434 = vmatprep.subr.bf16.mxu0 %v6730_v1  ;;  %v1351_v33 = vrot.slane %v7012_v36, 5  ;;  %v7358_v14 = vsel %vm7217_vm5, %v5346_v21, %v1320_v5  ;;  %v1334_v58 = vrot.slane %v7365_v16, 5  ;;  %v1337_v7 = vrot.slane %v7369_v4, 5  ;;  %v6737_v36 = vld [vmem:[%s9520_s1 + $0xd8] sm:$0xff]  }
  0x68   : > { %6355 = vmatmul.mubr.bf16.gmra.mxu0 %v5374_v20  ;;  %v7362_v19 = vsel %vm7217_vm5, %v1322_v25, %v1323_v43  ;;  %v5349_v5 = vrot.slane %v7328_v46, 9  ;;  %v1350_v37 = vrot.slane %v1348_v8, 4  ;;  %v5351_v41 = vrot.slane %v1230_v42, 9  ;;  %v5467_v42 = vld [vmem:[%s6875_s23 + $0xc] sm:$0xf] }
  0x69   : > { %6385 = vmatpush3.bf16.msra.mxu1 %v6725_v23  ;;  %6358 = vmatprep.mubr.bf16.mxu0 %v5375_v57  ;;  %v5350_v23 = vrot.slane %v1229_v63, 9  ;;  %v1355_v26 = vrot.slane %v7054_v31, 5  ;;  %v1358_v57 = vrot.slane %v7064_v44, 5  ;;  %v1341_v47 = vrot.slane %v6962_v39, 5 }
  0x6a   : > { %6386 = vmatprep.subr.bf16.mxu1 %v6729_v32  ;;  %6435 = vmatpush3.bf16.msra.mxu0 %v6730_v1  ;;  %v6738_v1 = vld [vmem:[%s9520_s1 + $0x118] sm:$0xff]   ;;  %v7393_v21 = vsel %vm7217_vm5, %v1350_v37, %v1351_v33  ;;  %v1362_v63 = vrot.slane %v7099_v28, 5  ;;  %v5353_v33 = vrot.slane %v1232_v0, 9  ;;  %v1369_v37 = vrot.slane %v7154_v52, 5  ;;  %v6741_v0 = vld [vmem:[%s9520_s1 + $0xd0] sm:$0xff]  }
  0x6b   : > { %6436 = vmatprep.subr.bf16.mxu0 %v6734_v24  ;;  %v7381_v6 = vsel %vm7217_vm5, %v5350_v23, %v1348_v8  ;;  %v7401_v44 = vsel %vm7217_vm5, %v5351_v41, %v1355_v26  ;;  %v1357_v43 = vrot.slane %v1355_v26, 4  ;;  %v6742_v23 = vld [vmem:[%s9520_s1 + $0x110] sm:$0xff]   ;;  %v1365_v8 = vrot.slane %v7115_v61, 5  ;;  %v9560_v61 = vld [vmem:[#allocation3_spill] sm:$0xff] }
  0x6c   : > { %6307 = vmatmul.mubr.bf16.gmra.mxu1 %v5318_v30  ;;  %v1329_v30 = vrot.slane %v1327_v45, 4  ;;  %v1364_v20 = vrot.slane %v1362_v63, 4  ;;  %v1372_v50 = vrot.slane %v9560_v61, 5  ;;  %v1328_v61 = vsel %vm7217_vm5, %v5347_v10, %v1327_v45  ;;  %v5470_v45 = vld [vmem:[%s6875_s23 + $0x18] sm:$0xf] }
  0x6d   : > { %6310 = vmatprep.mubr.bf16.mxu1 %v5319_v40  ;;  %6387 = vmatpush3.bf16.msra.mxu1 %v6729_v32  ;;  %v5352_v40 = vrot.slane %v1231_v49, 9  ;;  %v7413_v32 = vld [vmem:[%s6875_s23 + $0x10] sm:$0xf]  ;;  %v7417_v41 = vsel %vm7217_vm5, %v1357_v43, %v1358_v57  ;;  %v1371_v57 = vrot.slane %v1369_v37, 4  ;;  %v2139_v12 = vshrl.u32 %v5467_v42, 16 }
  0x6e   : > { %6388 = vmatprep.subr.bf16.mxu1 %v6733_v2  ;;  %6437 = vmatpush3.bf16.msra.mxu0 %v6734_v24  ;;  %v9559_v24 = vld [vmem:[#allocation2_spill] sm:$0xff]  ;;  %v9562_v43 = vld [vmem:[#allocation4_spill] sm:$0xff]  ;;  %v2142_v10 = vshll.u32 %v5467_v42, 16  ;;  %v1336_v51 = vrot.slane %v1334_v58, 4  ;;  %v2148_v59 = vshll.u32 %v7413_v32, 16  ;;  %v1342_v4 = vsel %vm7217_vm5, %v5349_v5, %v1341_v47 }
  0x6f   : > { %6438 = vmatprep.subr.bf16.mxu0 %v6738_v1  ;;  %v7421_v26 = vsel %vm7217_vm5, %v5352_v40, %v1362_v63  ;;  %v9561_v40 = vld [vmem:[#allocation5_spill] sm:$0xff]  ;;  %v7487_v42 = vld [vmem:[%s6875_s23 + $0x14] sm:$0x1]  ;;  %v2141_v63 = vrot.slane %v2139_v12, 4  ;;  %v9564_v5 = vld [vmem:[#allocation6_spill] sm:$0xff] }
  0x70   : > { %6359 = vmatmul.mubr.bf16.gmra.mxu0 %v5376_v53  ;;  %v2144_v49 = vrot.slane %v2142_v10, 5  ;;  %v5473_v53 = vld [vmem:[%s6875_s23 + $0x24] sm:$0xf]  ;;  %v1338_v11 = vsel %vm7217_vm5, %v1336_v51, %v1337_v7 }
  0x71   : > { %6389 = vmatpush3.bf16.msra.mxu1 %v6733_v2  ;;  %6362 = vmatprep.mubr.bf16.mxu0 %v5377_v38  ;;  %v7431_v2 = vsel %vm7217_vm5, %v5353_v33, %v1369_v37  ;;  %v5378_v38 = vcombine.low %v7358_v14, %v7362_v19  ;;  %v1331_v33 = vsel %vm7217_vm5, %v1329_v30, %v1330_v29  ;;  %v6746_v14 = vld [vmem:[%s9520_s1 + $0x108] sm:$0xff]   ;;  %v6750_v30 = vld [vmem:[%s9520_s1 + $0x100] sm:$0xff]   ;;  %v7506_v19 = vrot.slane %v2148_v59, 5 }
  0x72   : > { %6390 = vmatprep.subr.bf16.mxu1 %v6737_v36  ;;  %6439 = vmatpush3.bf16.msra.mxu0 %v6738_v1  ;;  %v7449_v37 = vsel %vm7217_vm5, %v1364_v20, %v1365_v8  ;;  %v7461_v29 = vsel %vm7217_vm5, %v1371_v57, %v1372_v50  ;;  %v6745_v50 = vld [vmem:[%s9520_s1 + $0xc8] sm:$0xff]   ;;  %v7476_v1 = vld [vmem:[%s6875_s23 + $0xb4] sm:$0xe]  ;;  %v5379_v20 = vcombine.low %v1328_v61, %v1331_v33  ;;  %v2152_v8 = vshrl.u32 %v7413_v32, 16  ;;  %v7504_v61 = vld [vmem:[%s6875_s23 + $0x1c] sm:$0xf] }
  0x73   : > { %6440 = vmatprep.subr.bf16.mxu0 %v6742_v23  ;;  %v7491_v57 = vld [vmem:[%s6875_s23 + $0x6c] sm:$0xf]  ;;  %v2163_v33 = vshrl.u32 %v5470_v45, 16  ;;  %v2172_v51 = vshll.u32 %v7504_v61, 16  ;;  %v2176_v39 = vshrl.u32 %v7504_v61, 16  ;;  %v2187_v59 = vshrl.u32 %v5473_v53, 16 }
  0x74   : > { %6311 = vmatmul.mubr.bf16.gmra.mxu1 %v5320_v35  ;;  %v1344_v35 = vrot.slane %v6819_v54, 5  ;;  %v5324_v54 = vcombine.low %v7491_v57, %v7365_v16  ;;  %v2154_v3 = vrot.slane %v2152_v8, 4  ;;  %v2190_v46 = vshll.u32 %v5473_v53, 16  ;;  %v6823_v8 = vld [vmem:[%s6875_s23 + $0x7c] sm:$0xf] }
  0x75   : > { %6314 = vmatprep.mubr.bf16.mxu1 %v5321_v60  ;;  %6391 = vmatpush3.bf16.msra.mxu1 %v6737_v36  ;;  %v5323_v60 = vcombine.low %v6820_v17, %v7347_v48  ;;  %v1343_v36 = vrot.slane %v1341_v47, 4  ;;  %v7501_v48 = vsel %vm7217_vm5, %v5348_v62, %v1334_v58  ;;  %v2166_v17 = vshll.u32 %v5470_v45, 16  ;;  %v6749_v58 = vld [vmem:[%s9520_s1 + $0xc0] sm:$0xff]   ;;  %v7531_v45 = vld [vmem:[%s6875_s23 + $0x28] sm:$0xf] }
  0x76   : > { %6392 = vmatprep.subr.bf16.mxu1 %v6741_v0  ;;  %6441 = vmatpush3.bf16.msra.mxu0 %v6742_v23  ;;  %v9532_v62 = vrot.slane %v9561_v40, 5  ;;  %v7518_v23 = vld [vmem:[%s6875_s23 + $0x20] sm:$0x1]  ;;  %v2165_v12 = vrot.slane %v2163_v33, 4  ;;  %9563 = vst [vmem:[#allocation2_spill] sm:$0xff] %v7531_v45  ;;  %v5380_v34 = vcombine.low %v7501_v48, %v1338_v11  ;;  %v2196_v53 = vshll.u32 %v7531_v45, 16 }
  0x77   : > { %6442 = vmatprep.subr.bf16.mxu0 %v6746_v14  ;;  %v2168_v10 = vrot.slane %v2166_v17, 5  ;;  %v1345_v7 = vsel %vm7217_vm5, %v1343_v36, %v1344_v35  ;;  %v2145_v35 = vor.u32 %v2144_v49, %v2141_v63  ;;  %v7544_v36 = vld [vmem:[%s9520_s1 + $0x178] sm:$0xff]   ;;  %v5476_v63 = vld [vmem:[%s6875_s23 + $0x30] sm:$0xf]  ;;  %v7565_v48 = vld [vmem:[%s6875_s23 + $0x34] sm:$0xf] }
  0x78   : > { %6363 = vmatmul.mubr.bf16.gmra.mxu0 %v5378_v38  ;;  %v2158_v38 = vshll.u32 %v7487_v42, 16  ;;  %v5381_v17 = vcombine.low %v1342_v4, %v1345_v7  ;;  %9566 = vst [vmem:[#allocation5_spill] sm:$0xff] %v7565_v48  ;;  %v7567_v11 = vrot.slane %v2172_v51, 5  ;;  %v2192_v47 = vrot.slane %v2190_v46, 5  ;;  %v7586_v46 = vld [vmem:[%s6875_s23 + $0x40] sm:$0xf] }
  0x79   : > { %6393 = vmatpush3.bf16.msra.mxu1 %v6741_v0  ;;  %6366 = vmatprep.mubr.bf16.mxu0 %v5379_v20  ;;  %v2155_v20 = vor.u32 %v2154_v3, %v7506_v19  ;;  %v2169_v49 = vor.u32 %v2168_v10, %v2165_v12  ;;  %v6822_v3 = vld [vmem:[%s6875_s23 + $0x78] sm:$0xf]  ;;  %v2178_v12 = vrot.slane %v2176_v39, 4  ;;  %v2189_v10 = vrot.slane %v2187_v59, 4  ;;  %9567 = vst [vmem:[#allocation4_spill] sm:$0xff] %v7586_v46 }
  0x7a   : > { %6394 = vmatprep.subr.bf16.mxu1 %v6745_v50  ;;  %6443 = vmatpush3.bf16.msra.mxu0 %v6746_v14  ;;  %v2182_v14 = vshll.u32 %v7518_v23, 16  ;;  %v5325_v33 = vcombine.low %v6822_v3, %v6823_v8  ;;  %v7558_v25 = vrot.slane %v2158_v38, 5  ;;  %v7570_v0 = vld [vmem:[%s6875_s23 + $0x38] sm:$0x1]  ;;  %v7572_v4 = vrot.slane %v2145_v35, 4 }
  0x7b   : > { %6444 = vmatprep.subr.bf16.mxu0 %v6750_v30  ;;  %v7574_v7 = vrot.slane %v2155_v20, 4  ;;  %v2211_v3 = vshrl.u32 %v5476_v63, 16  ;;  %v5479_v8 = vld [vmem:[%s6875_s23 + $0x3c] sm:$0xf]  ;;  %v7582_v51 = vrot.slane %v2196_v53, 5  ;;  %v2214_v39 = vshll.u32 %v5476_v63, 16 }
  0x7c   : > { %6315 = vmatmul.mubr.bf16.gmra.mxu1 %v5322_v55  ;;  %v1378_v55 = vrot.slane %v9532_v62, 4  ;;  %v7576_v38 = vrot.slane %v2182_v14, 5  ;;  %v2220_v59 = vshll.u32 %v7565_v48, 16  ;;  %v2224_v20 = vshrl.u32 %v7565_v48, 16 }
  0x7d   : > { %6318 = vmatprep.mubr.bf16.mxu1 %v5323_v60  ;;  %6395 = vmatpush3.bf16.msra.mxu1 %v6745_v50  ;;  %v7561_v60 = vld [vmem:[%s6875_s23 + $0x2c] sm:$0x1]  ;;  %v2200_v50 = vshrl.u32 %v7531_v45, 16  ;;  %v2179_v14 = vor.u32 %v2178_v12, %v7567_v11  ;;  %v2213_v53 = vrot.slane %v2211_v3, 4  ;;  %v2216_v63 = vrot.slane %v2214_v39, 5 }
  0x7e   : > { %6396 = vmatprep.subr.bf16.mxu1 %v6749_v58  ;;  %9565 = vst [vmem:[#allocation3_spill] sm:$0xff] %v7561_v60  ;;  %6445 = vmatpush3.bf16.msra.mxu0 %v6750_v30  ;;  %v7580_v30 = vrot.slane %v2169_v49, 4  ;;  %v2235_v49 = vshrl.u32 %v5479_v8, 16  ;;  %v2238_v62 = vshll.u32 %v5479_v8, 16  ;;  %v2226_v48 = vrot.slane %v2224_v20, 4 }
  0x7f   : > { %6526 = vmatprep.subr.bf16.mxu0 %v7549_v15  ;;  %v2202_v35 = vrot.slane %v2200_v50, 4  ;;  %v7596_v50 = vrot.slane %v2220_v59, 5  ;;  %v7599_v45 = vld [vmem:[%s6875_s23 + $0x44] sm:$0x1]  ;;  %v2248_v12 = vshrl.u32 %v7586_v46, 16  ;;  %v9568_v16 = vrot.slane %v9561_v40, 5 }
  0x80   : > { %6367 = vmatmul.mubr.bf16.gmra.mxu0 %v5380_v34  ;;  %v2206_v34 = vshll.u32 %v7561_v60, 16  ;;  %v9569_v57 = vrot.slane %v7476_v1, 9  ;;  %v7620_v39 = vld [vmem:[%s6875_s23 + $0x4c] sm:$0xf]  ;;  %v2237_v59 = vrot.slane %v2235_v49, 4  ;;  %v2240_v20 = vrot.slane %v2238_v62, 5 }
  0x81   : > { %6397 = vmatpush3.bf16.msra.mxu1 %v6749_v58  ;;  %6370 = vmatprep.mubr.bf16.mxu0 %v5381_v17  ;;  %v2193_v58 = vor.u32 %v2192_v47, %v2189_v10  ;;  %v2230_v17 = vshll.u32 %v7570_v0, 16  ;;  %v2244_v47 = vshll.u32 %v7586_v46, 16  ;;  %v5482_v10 = vld [vmem:[%s6875_s23 + $0x48] sm:$0xf]  ;;  %v2203_v8 = vor.u32 %v2202_v35, %v7582_v51 }
  0x82   : > { %6478 = vmatprep.subr.bf16.mxu1 %v7544_v36  ;;  %v2250_v1 = vrot.slane %v2248_v12, 4  ;;  %v7624_v46 = vrot.slane %v2179_v14, 4  ;;  %v2151_v62 = vsel %vm6906_vm2, %v7572_v4, %v7506_v19  ;;  %v2161_v35 = vsel %vm6906_vm2, %v7574_v7, %v7558_v25  ;;  %v5485_v4 = vld [vmem:[%s6875_s23 + $0x54] sm:$0xf] }
  0x83   : > { %v7622_v60 = vrot.slane %v2244_v47, 5  ;;  %v2262_v14 = vshll.u32 %v5482_v10, 16  ;;  %v2254_v49 = vshll.u32 %v7599_v45, 16  ;;  %v2272_v19 = vshrl.u32 %v7620_v39, 16 }
  0x84   : > { %6319 = vmatmul.mubr.bf16.gmra.mxu1 %v5324_v54  ;;  %v7610_v54 = vsel %vm7217_vm5, %v9569_v57, %v9568_v16  ;;  %v7626_v16 = vrot.slane %v2193_v58, 4  ;;  %v7628_v57 = vrot.slane %v2206_v34, 5  ;;  %v2268_v58 = vshll.u32 %v7620_v39, 16 }
  0x85   : > { %6322 = vmatprep.mubr.bf16.mxu1 %v5325_v33  ;;  %v9570_v33 = vrot.slane %v9564_v5, 5  ;;  %v2259_v5 = vshrl.u32 %v5482_v10, 16  ;;  %v9572_v34 = vcombine.low %v7401_v44, %v7417_v41  ;;  %v7649_v47 = vrot.slane %v2203_v8, 4  ;;  %v7655_v10 = vld [vmem:[%s6875_s23 + $0x58] sm:$0xf] }
  0x86   : > { %v7651_v12 = vrot.slane %v2230_v17, 5  ;;  %v2241_v25 = vor.u32 %v2240_v20, %v2237_v59  ;;  %v2251_v7 = vor.u32 %v2250_v1, %v7622_v60  ;;  %v9573_v44 = vcombine.low %v6996_v13, %v7003_v22  ;;  %v7661_v41 = vld [vmem:[%s6875_s23 + $0x50] sm:$0x1] }
  0x87   : > { %v7616_v3 = vsel %vm7217_vm5, %v1378_v55, %v9570_v33  ;;  %v9571_v55 = vcombine.low %v7381_v6, %v7393_v21  ;;  %v2217_v6 = vor.u32 %v2216_v63, %v2213_v53  ;;  %v2227_v21 = vor.u32 %v2226_v48, %v7596_v50 }
  0x88   : > { %v2261_v48 = vrot.slane %v2259_v5, 4  ;;  %v2264_v53 = vrot.slane %v2262_v14, 5  ;;  %v7663_v63 = vrot.slane %v2268_v58, 5  ;;  %v2274_v17 = vrot.slane %v2272_v19, 4  ;;  %v5488_v5 = vld [vmem:[%s6875_s23 + $0x60] sm:$0xf] }
  0x89   : > { %6371 = vmatmul.mubr.bf16.gmra.mxu0 %v9571_v55  ;;  %v9574_v33 = vcombine.low %v7048_v18, %v7054_v31  ;;  %v2283_v8 = vshrl.u32 %v5485_v4, 16  ;;  %v2286_v59 = vshll.u32 %v5485_v4, 16  ;;  %v7668_v20 = vrot.slane %v2217_v6, 4  ;;  %v7685_v31 = vld [vmem:[%s6875_s23 + $0x64] sm:$0xf] }
  0x8a   : > { %6374 = vmatprep.mubr.bf16.mxu0 %v9572_v34  ;;  %v7670_v1 = vrot.slane %v2227_v21, 4  ;;  %v7672_v13 = vrot.slane %v2254_v49, 5  ;;  %v2292_v22 = vshll.u32 %v7655_v10, 16  ;;  %v5386_v55 = vcombine.low %v7610_v54, %v7616_v3  ;;  %v7681_v34 = vld [vmem:[%s6875_s23 + $0x5c] sm:$0x1] }
  0x8b   : > { %v5531_v14 = vcombine.low %v2151_v62, %v2161_v35  ;;  %v7678_v58 = vrot.slane %v2241_v25, 4  ;;  %v2296_v18 = vshrl.u32 %v7655_v10, 16  ;;  %v7687_v6 = vrot.slane %v2251_v7, 4 }
  0x8c   : > { %6323 = vmatmul.mubr.bf16.gmra.mxu1 %v9573_v44  ;;  %v2278_v21 = vshll.u32 %v7661_v41, 16  ;;  %v2307_v49 = vshrl.u32 %v5488_v5, 16  ;;  %v2310_v19 = vshll.u32 %v5488_v5, 16  ;;  %v9575_v4 = vcombine.low %v7421_v26, %v7449_v37 }
  0x8d   : > { %6326 = vmatprep.mubr.bf16.mxu1 %v9574_v33  ;;  %v2265_v54 = vor.u32 %v2264_v53, %v2261_v48  ;;  %v2275_v3 = vor.u32 %v2274_v17, %v7663_v63  ;;  %v2285_v62 = vrot.slane %v2283_v8, 4  ;;  %v2288_v35 = vrot.slane %v2286_v59, 5  ;;  %v7725_v8 = vld [vmem:[%s6875_s23 + $0x70] sm:$0xf] }
  0x8e   : > { %v9576_v25 = vcombine.low %v7431_v2, %v7461_v29  ;;  %v7697_v7 = vrot.slane %v2292_v22, 5  ;;  %v2298_v44 = vrot.slane %v2296_v18, 4  ;;  %v2302_v33 = vshll.u32 %v7681_v34, 16 }
  0x8f   : > { %v2316_v26 = vshll.u32 %v7685_v31, 16  ;;  %v2175_v37 = vsel %vm6906_vm2, %v7580_v30, %v7567_v11  ;;  %v2185_v2 = vsel %vm6906_vm2, %v7624_v46, %v7576_v38  ;;  %v2309_v29 = vrot.slane %v2307_v49, 4  ;;  %v5491_v46 = vld [vmem:[%s6875_s23 + $0x6c] sm:$0xf] }
  0x90   : > { %v2312_v48 = vrot.slane %v2310_v19, 5  ;;  %v9577_v53 = vcombine.low %v7090_v9, %v7099_v28  ;;  %v2199_v17 = vsel %vm6906_vm2, %v7626_v16, %v7582_v51  ;;  %v2209_v11 = vsel %vm6906_vm2, %v7649_v47, %v7628_v57  ;;  %v7733_v16 = vld [vmem:[%s6875_s23 + $0x68] sm:$0x1] }
  0x91   : > { %6375 = vmatmul.mubr.bf16.gmra.mxu0 %v9575_v4  ;;  %v7720_v30 = vrot.slane %v2278_v21, 5  ;;  %v2320_v38 = vshrl.u32 %v7685_v31, 16  ;;  %v9578_v9 = vcombine.low %v9559_v24, %v7154_v52  ;;  %v7730_v28 = vrot.slane %v2265_v54, 4  ;;  %v6751_v52 = vld [vmem:[%s6875_s23 + $0xc] sm:$0xff]  }
  0x92   : > { %6378 = vmatprep.mubr.bf16.mxu0 %v9576_v25  ;;  %v2289_v51 = vor.u32 %v2288_v35, %v2285_v62  ;;  %v2331_v59 = vshrl.u32 %v5491_v46, 16  ;;  %v2334_v57 = vshll.u32 %v5491_v46, 16  ;;  %v7735_v47 = vrot.slane %v2275_v3, 4  ;;  %v7746_v62 = vld [vmem:[%s6875_s23 + $0x74] sm:$0x1] }
  0x93   : > { %v2299_v22 = vor.u32 %v2298_v44, %v7697_v7  ;;  %v7738_v5 = vrot.slane %v2302_v33, 5  ;;  %v2340_v18 = vshll.u32 %v7725_v8, 16  ;;  %v2313_v24 = vor.u32 %v2312_v48, %v2309_v29  ;;  %v5494_v25 = vld [vmem:[%s6875_s23 + $0x78] sm:$0xf]  ;;  %v7750_v44 = vld [vmem:[%s6875_s23 + $0x7c] sm:$0xf] }
  0x94   : > { %6327 = vmatmul.mubr.bf16.gmra.mxu1 %v9577_v53  ;;  %v7742_v21 = vrot.slane %v2316_v26, 5  ;;  %v2322_v49 = vrot.slane %v2320_v38, 4  ;;  %v2344_v19 = vshrl.u32 %v7725_v8, 16  ;;  %v5532_v4 = vcombine.low %v2175_v37, %v2185_v2  ;;  %v7757_v26 = vld [vmem:[%s6875_s23 + $0x80] sm:$0x1] }
  0x95   : > { %6330 = vmatprep.mubr.bf16.mxu1 %v9578_v9  ;;  %v5533_v54 = vcombine.low %v2199_v17, %v2209_v11  ;;  %v2333_v3 = vrot.slane %v2331_v59, 4  ;;  %v2336_v35 = vrot.slane %v2334_v57, 5  ;;  %v7752_v33 = vrot.slane %v2289_v51, 4 }
  0x96   : > { %v7754_v53 = vrot.slane %v2340_v18, 5  ;;  %v2346_v29 = vrot.slane %v2344_v19, 4  ;;  %v2355_v48 = vshrl.u32 %v5494_v25, 16  ;;  %v2326_v37 = vshll.u32 %v7733_v16, 16  ;;  %v5497_v19 = vld [vmem:[%s6875_s23 + $0x84] sm:$0xf] }
  0x97   : > { %v2358_v2 = vshll.u32 %v5494_v25, 16  ;;  %v2364_v17 = vshll.u32 %v7750_v44, 16  ;;  %v2368_v11 = vshrl.u32 %v7750_v44, 16  ;;  %v7762_v38 = vrot.slane %v2299_v22, 4  ;;  %v6755_v25 = vld [vmem:[%s6875_s23 + $0x24] sm:$0xff]  }
  0x98   : > { %v7764_v46 = vrot.slane %v2313_v24, 4  ;;  %v2357_v9 = vrot.slane %v2355_v48, 4  ;;  %v9579_v51 = vcombine.low %v9562_v43, %v9561_v40  ;;  %v2223_v22 = vsel %vm6906_vm2, %v7668_v20, %v7596_v50 }
  0x99   : > { %6379 = vmatmul.mubr.bf16.gmra.mxu0 %v5386_v55  ;;  %v2323_v55 = vor.u32 %v2322_v49, %v7742_v21  ;;  %v2360_v59 = vrot.slane %v2358_v2, 5  ;;  %v7770_v57 = vrot.slane %v2364_v17, 5  ;;  %v2370_v18 = vrot.slane %v2368_v11, 4  ;;  %v7819_v17 = vld [vmem:[%s6875_s23 + $0x8c] sm:$0x1] }
  0x9a   : > { %6446 = vmatprep.mubr.bf16.mxu0 %v5531_v14  ;;  %v2337_v14 = vor.u32 %v2336_v35, %v2333_v3  ;;  %v2347_v24 = vor.u32 %v2346_v29, %v7754_v53  ;;  %v2350_v49 = vshll.u32 %v7746_v62, 16  ;;  %v2374_v40 = vshll.u32 %v7757_v26, 16  ;;  %v7793_v3 = vld [vmem:[%s6875_s23 + $0x88] sm:$0xf]  ;;  %v6752_v35 = vld [vmem:[%s6875_s23 + $0x18] sm:$0xff]  }
  0x9b   : > { %v2233_v43 = vsel %vm6906_vm2, %v7670_v1, %v7651_v12  ;;  %v2257_v50 = vsel %vm6906_vm2, %v7687_v6, %v7672_v13  ;;  %v2361_v20 = vor.u32 %v2360_v59, %v2357_v9  ;;  %v6758_v12 = vld [vmem:[%s9520_s1 + $0x1b0] sm:$0xff]   ;;  %v7800_v1 = vrot.slane %v2326_v37, 5  ;;  %v7824_v11 = vld [vmem:[%s9520_s1 + $0x1a8] sm:$0xff]  }
  0x9c   : > { %6331 = vmatmul.mubr.bf16.gmra.mxu1 %v9579_v51  ;;  %v2382_v29 = vshll.u32 %v5497_v19, 16  ;;  %v6757_v13 = vld [vmem:[%s9520_s1 + $0x170] sm:$0xff]   ;;  %v2271_v6 = vsel %vm6906_vm2, %v7730_v28, %v7663_v63  ;;  %v2281_v48 = vsel %vm6906_vm2, %v7735_v47, %v7720_v30  ;;  %v7814_v37 = vrot.slane %v2323_v55, 4 }
  0x9d   : > { %6398 = vmatprep.mubr.bf16.mxu1 %v6751_v52  ;;  %v2247_v52 = vsel %vm6906_vm2, %v7678_v58, %v7622_v60  ;;  %v2371_v60 = vor.u32 %v2370_v18, %v7770_v57  ;;  %v2379_v58 = vshrl.u32 %v5497_v19, 16  ;;  %v7816_v2 = vrot.slane %v2337_v14, 4  ;;  %v5500_v14 = vld [vmem:[%s6875_s23 + $0x90] sm:$0xf]  ;;  %v7847_v59 = vld [vmem:[%s6875_s23 + $0x94] sm:$0xf] }
  0x9e   : > { %v7826_v63 = vrot.slane %v2347_v24, 4  ;;  %v7828_v28 = vrot.slane %v2350_v49, 5  ;;  %v2388_v30 = vshll.u32 %v7793_v3, 16  ;;  %v2392_v47 = vshrl.u32 %v7793_v3, 16  ;;  %9580 = vst [vmem:[#allocation6_spill] sm:$0xff] %v7847_v59 }
  0x9f   : > { %v2305_v55 = vsel %vm6906_vm2, %v7762_v38, %v7738_v5  ;;  %v7841_v9 = vrot.slane %v2361_v20, 4  ;;  %v7843_v51 = vrot.slane %v2374_v40, 5  ;;  %v2384_v18 = vrot.slane %v2382_v29, 5  ;;  %v6761_v5 = vld [vmem:[%s9520_s1 + $0x168] sm:$0xff]  }
  0xa0   : > { %v2406_v38 = vshll.u32 %v5500_v14, 16  ;;  %v2412_v24 = vshll.u32 %v7847_v59, 16  ;;  %v2416_v49 = vshrl.u32 %v7847_v59, 16  ;;  %v5534_v40 = vcombine.low %v2223_v22, %v2233_v43 }
  0xa1   : > { %6447 = vmatmul.mubr.bf16.vlgmr.msra.gmra.mxu0 %v5532_v4  ;;  %v2295_v4 = vsel %vm6906_vm2, %v7752_v33, %v7697_v7  ;;  %v2398_v7 = vshll.u32 %v7819_v17, 16  ;;  %v2403_v33 = vshrl.u32 %v5500_v14, 16  ;;  %v5535_v20 = vcombine.low %v2247_v52, %v2257_v50 }
  0xa2   : > { %6527 = vmatpush3.bf16.msra.mxu0 %v7549_v15  ;;  %6450 = vmatprep.mubr.bf16.mxu0 %v5533_v54  ;;  %v7849_v15 = vrot.slane %v2371_v60, 4  ;;  %v2381_v54 = vrot.slane %v2379_v58, 4  ;;  %v7858_v19 = vrot.slane %v2388_v30, 5  ;;  %v6756_v60 = vld [vmem:[%s6875_s23 + $0x30] sm:$0xff]   ;;  %v6766_v58 = vld [vmem:[%s9520_s1 + $0x1a0] sm:$0xff]   ;;  %v2408_v14 = vrot.slane %v2406_v38, 5 }
  0xa3   : > { %6528 = vmatprep.subr.bf16.mxu0 %v6758_v12  ;;  %v2405_v29 = vrot.slane %v2403_v33, 4  ;;  %v2418_v22 = vrot.slane %v2416_v49, 4  ;;  %v7866_v43 = vcombine.low %v2271_v6, %v2281_v48  ;;  %v7869_v52 = vcombine.low %v2295_v4, %v2305_v55  ;;  %v5503_v30 = vld [vmem:[%s6875_s23 + $0x9c] sm:$0xf]  ;;  %v7891_v4 = vld [vmem:[%s6875_s23 + $0xa4] sm:$0x1] }
  0xa4   : > { %6399 = vmatmul.mubr.bf16.vlgmr.msra.gmra.mxu1 %v6752_v35  ;;  %v2394_v35 = vrot.slane %v2392_v47, 4  ;;  %v2385_v48 = vor.u32 %v2384_v18, %v2381_v54  ;;  %v7888_v47 = vld [vmem:[%s6875_s23 + $0xa0] sm:$0xf]  ;;  %9583 = vst [vmem:[#allocation9_spill] sm:$0xff] %v7891_v4  ;;  %v2427_v55 = vshrl.u32 %v5503_v30, 16  ;;  %v2430_v33 = vshll.u32 %v5503_v30, 16 }
  0xa5   : > { %6479 = vmatpush3.bf16.msra.mxu1 %v7544_v36  ;;  %6402 = vmatprep.mubr.bf16.mxu1 %v6755_v25  ;;  %v7864_v36 = vrot.slane %v2412_v24, 5  ;;  %v2329_v25 = vsel %vm6906_vm2, %v7814_v37, %v7800_v1  ;;  %9582 = vst [vmem:[#allocation8_spill] sm:$0xff] %v7888_v47  ;;  %v6759_v38 = vld [vmem:[%s6875_s23 + $0x3c] sm:$0xff]   ;;  %v2436_v37 = vshll.u32 %v7888_v47, 16  ;;  %v2440_v24 = vshrl.u32 %v7888_v47, 16 }
  0xa6   : > { %6480 = vmatprep.subr.bf16.mxu1 %v6757_v13  ;;  %6529 = vmatpush3.bf16.msra.mxu0 %v6758_v12  ;;  %v7880_v12 = vld [vmem:[%s6875_s23 + $0x98] sm:$0x1]  ;;  %v2395_v1 = vor.u32 %v2394_v35, %v7858_v19  ;;  %v6765_v54 = vld [vmem:[%s9520_s1 + $0x160] sm:$0xff]   ;;  %v2409_v18 = vor.u32 %v2408_v14, %v2405_v29  ;;  %v2429_v30 = vrot.slane %v2427_v55, 4  ;;  %v2432_v49 = vrot.slane %v2430_v33, 5 }
  0xa7   : > { %6530 = vmatprep.subr.bf16.mxu0 %v7824_v11  ;;  %9581 = vst [vmem:[#allocation7_spill] sm:$0xff] %v7880_v12  ;;  %v2422_v35 = vshll.u32 %v7880_v12, 16  ;;  %v2442_v6 = vrot.slane %v2440_v24, 4  ;;  %v2446_v50 = vshll.u32 %v7891_v4, 16  ;;  %v5506_v47 = vld [vmem:[%s6875_s23 + $0xa8] sm:$0xf] }
  0xa8   : > { %v6769_v29 = vld [vmem:[%s9520_s1 + $0x158] sm:$0xff]   ;;  %v7914_v14 = vrot.slane %v2385_v48, 4  ;;  %v2451_v55 = vshrl.u32 %v5506_v47, 16  ;;  %v2454_v33 = vshll.u32 %v5506_v47, 16  ;;  %v7927_v4 = vld [vmem:[%s6875_s23 + $0xb0] sm:$0x1] }
  0xa9   : > { %6451 = vmatmul.mubr.bf16.gmra.mxu0 %v5534_v40  ;;  %6481 = vmatpush3.bf16.msra.mxu1 %v6757_v13  ;;  %v6770_v13 = vld [vmem:[%s9520_s1 + $0x198] sm:$0xff]   ;;  %v2419_v40 = vor.u32 %v2418_v22, %v7864_v36  ;;  %v7916_v22 = vrot.slane %v2398_v7, 5  ;;  %v6760_v48 = vld [vmem:[%s6875_s23 + $0x48] sm:$0xff]   ;;  %v7930_v7 = vrot.slane %v2395_v1, 4  ;;  %v7932_v12 = vrot.slane %v2409_v18, 4 }
  0xaa   : > { %6454 = vmatprep.mubr.bf16.mxu0 %v5535_v20  ;;  %6482 = vmatprep.subr.bf16.mxu1 %v6761_v5  ;;  %v7907_v20 = vrot.slane %v2436_v37, 5  ;;  %v2433_v37 = vor.u32 %v2432_v49, %v2429_v30  ;;  %v7934_v59 = vrot.slane %v2422_v35, 5  ;;  %v6773_v49 = vld [vmem:[%s9520_s1 + $0x150] sm:$0xff]   ;;  %v7951_v18 = vrot.slane %v2454_v33, 5 }
  0xab   : > { %6531 = vmatpush3.bf16.msra.mxu0 %v7824_v11  ;;  %v7919_v11 = vld [vmem:[%s6875_s23 + $0xac] sm:$0xf]  ;;  %v2470_v35 = vshll.u32 %v7927_v4, 16 }
  0xac   : > { %6403 = vmatmul.mubr.bf16.gmra.mxu1 %v6756_v60  ;;  %6532 = vmatprep.subr.bf16.mxu0 %v6766_v58  ;;  %9584 = vst [vmem:[#allocation10_spill] sm:$0xff] %v7919_v11  ;;  %v2353_v60 = vsel %vm6906_vm2, %v7826_v63, %v7828_v28  ;;  %v2443_v24 = vor.u32 %v2442_v6, %v7907_v20  ;;  %v2460_v47 = vshll.u32 %v7919_v11, 16  ;;  %v6763_v63 = vld [vmem:[%s6875_s23 + $0x54] sm:$0xff]   ;;  %v7941_v28 = vrot.slane %v2419_v40, 4 }
  0xad   : > { %6406 = vmatprep.mubr.bf16.mxu1 %v6759_v38  ;;  %6483 = vmatpush3.bf16.msra.mxu1 %v6761_v5  ;;  %v6774_v5 = vld [vmem:[%s9520_s1 + $0x190] sm:$0xff]   ;;  %v7943_v6 = vrot.slane %v2446_v50, 5  ;;  %v7945_v38 = vrot.slane %v2451_v55, 4  ;;  %v2464_v1 = vshrl.u32 %v7919_v11, 16  ;;  %v7960_v40 = vrot.slane %v2433_v37, 4 }
  0xae   : > { %6484 = vmatprep.subr.bf16.mxu1 %v6765_v54  ;;  %v7962_v30 = vrot.slane %v2443_v24, 4  ;;  %v5509_v55 = vld [vmem:[%s6875_s23 + $0xb4] sm:$0xf]  ;;  %v7966_v11 = vld [vmem:[%s6875_s23 + $0xb8] sm:$0xf]  ;;  %v6777_v24 = vld [vmem:[%s9520_s1 + $0x148] sm:$0xff]  }
  0xaf   : > { %6533 = vmatpush3.bf16.msra.mxu0 %v6766_v58  ;;  %v9585_v58 = vsel %vm6906_vm2, %v7764_v46, %v7742_v21  ;;  %9586 = vst [vmem:[#allocation11_spill] sm:$0xff] %v7966_v11  ;;  %v2367_v21 = vsel %vm6906_vm2, %v7841_v9, %v7770_v57  ;;  %v7978_v46 = vrot.slane %v2460_v47, 5  ;;  %v5512_v37 = vld [vmem:[%s6875_s23 + $0xc0] sm:$0xf]  ;;  %v2377_v57 = vsel %vm6906_vm2, %v7849_v15, %v7843_v51  ;;  %v8005_v47 = vld [vmem:[%s6875_s23 + $0xc4] sm:$0xf] }
  0xb0   : > { %6534 = vmatprep.subr.bf16.mxu0 %v6770_v13  ;;  %v5538_v50 = vcombine.low %v9585_v58, %v2329_v25  ;;  %v2475_v25 = vshrl.u32 %v5509_v55, 16  ;;  %v2391_v9 = vsel %vm6906_vm2, %v7914_v14, %v7858_v19  ;;  %9589 = vst [vmem:[#allocation13_spill] sm:$0xff] %v8005_v47  ;;  %v8008_v51 = vld [vmem:[%s6875_s23 + $0xc8] sm:$0x1]  ;;  %v2508_v58 = vshll.u32 %v8005_v47, 16 }
  0xb1   : > { %6455 = vmatmul.mubr.bf16.gmra.mxu0 %v7866_v43  ;;  %6485 = vmatpush3.bf16.msra.mxu1 %v6765_v54  ;;  %v9587_v43 = vsel %vm6906_vm2, %v7816_v2, %v7754_v53  ;;  %v2466_v54 = vrot.slane %v2464_v1, 4  ;;  %v2478_v53 = vshll.u32 %v5509_v55, 16  ;;  %v2484_v2 = vshll.u32 %v7966_v11, 16 }
  0xb2   : > { %6458 = vmatprep.mubr.bf16.mxu0 %v7869_v52  ;;  %v5539_v33 = vcombine.low %v9587_v43, %v2353_v60  ;;  %6486 = vmatprep.subr.bf16.mxu1 %v6769_v29  ;;  %v6778_v52 = vld [vmem:[%s9520_s1 + $0x188] sm:$0xff]   ;;  %v2488_v60 = vshrl.u32 %v7966_v11, 16  ;;  %v2477_v15 = vrot.slane %v2475_v25, 4  ;;  %v9590_v55 = vrot.slane %v7413_v32, 5 }
  0xb3   : > { %6535 = vmatpush3.bf16.msra.mxu0 %v6770_v13  ;;  %v2401_v13 = vsel %vm6906_vm2, %v7930_v7, %v7916_v22  ;;  %v2480_v19 = vrot.slane %v2478_v53, 5  ;;  %v8010_v14 = vrot.slane %v2484_v2, 5  ;;  %v2499_v22 = vshrl.u32 %v5512_v37, 16  ;;  %v6764_v2 = vld [vmem:[%s6875_s23 + $0x60] sm:$0xff]  }
  0xb4   : > { %6407 = vmatmul.mubr.bf16.gmra.mxu1 %v6760_v48  ;;  %6536 = vmatprep.subr.bf16.mxu0 %v6774_v5  ;;  %v8002_v48 = vld [vmem:[%s6875_s23 + $0xbc] sm:$0x1]  ;;  %v2490_v1 = vrot.slane %v2488_v60, 4  ;;  %v2502_v7 = vshll.u32 %v5512_v37, 16  ;;  %v8015_v43 = vrot.slane %v9590_v55, 4  ;;  %v8020_v25 = vrot.slane %v2470_v35, 5 }
  0xb5   : > { %9588 = vst [vmem:[#allocation12_spill] sm:$0xff] %v8002_v48  ;;  %6410 = vmatprep.mubr.bf16.mxu1 %v6763_v63  ;;  %6487 = vmatpush3.bf16.msra.mxu1 %v6769_v29  ;;  %v2457_v63 = vor.u32 %v7951_v18, %v7945_v38  ;;  %v2467_v29 = vor.u32 %v2466_v54, %v7978_v46  ;;  %v2512_v53 = vshrl.u32 %v8005_v47, 16  ;;  %v2494_v60 = vshll.u32 %v8002_v48, 16  ;;  %v6767_v38 = vld [vmem:[%s6875_s23 + $0x6c] sm:$0xff]   ;;  %v8040_v48 = vld [vmem:[%s6875_s23 + $0x18] sm:$0xe] }
  0xb6   : > { %6488 = vmatprep.subr.bf16.mxu1 %v6773_v49  ;;  %v2501_v37 = vrot.slane %v2499_v22, 4  ;;  %v2504_v11 = vrot.slane %v2502_v7, 5  ;;  %v8025_v55 = vrot.slane %v2508_v58, 5  ;;  %v2481_v18 = vor.u32 %v2480_v19, %v2477_v15  ;;  %v6781_v22 = vld [vmem:[%s9520_s1 + $0x140] sm:$0xff]   ;;  %v8037_v58 = vld [vmem:[%s6875_s23 + $0xc] sm:$0xe] }
  0xb7   : > { %6537 = vmatpush3.bf16.msra.mxu0 %v6774_v5  ;;  %v6782_v5 = vld [vmem:[%s9520_s1 + $0x180] sm:$0xff]   ;;  %v2491_v35 = vor.u32 %v2490_v1, %v8010_v14  ;;  %v2514_v54 = vrot.slane %v2512_v53, 4  ;;  %v2518_v47 = vshll.u32 %v8008_v51, 16  ;;  %v5540_v15 = vcombine.low %v2367_v21, %v2377_v57 }
  0xb8   : > { %6538 = vmatprep.subr.bf16.mxu0 %v6778_v52  ;;  %v2505_v7 = vor.u32 %v2504_v11, %v2501_v37  ;;  %v5541_v19 = vcombine.low %v2391_v9, %v2401_v13  ;;  %v8048_v1 = vrot.slane %v2457_v63, 4  ;;  %v8050_v11 = vrot.slane %v2467_v29, 4  ;;  %v6768_v9 = vld [vmem:[%s6875_s23 + $0x78] sm:$0xff]   ;;  %v6771_v37 = vld [vmem:[%s6875_s23 + $0x84] sm:$0xff]  }
  0xb9   : > { %6459 = vmatmul.mubr.bf16.gmra.mxu0 %v5538_v50  ;;  %6489 = vmatpush3.bf16.msra.mxu1 %v6773_v49  ;;  %v8045_v49 = vld [vmem:[%s9520_s1 + $0x238] sm:$0xff]   ;;  %v2515_v50 = vor.u32 %v2514_v54, %v8025_v55  ;;  %v8059_v53 = vrot.slane %v2491_v35, 4  ;;  %v8061_v21 = vrot.slane %v2494_v60, 5  ;;  %v8067_v63 = vrot.slane %v2518_v47, 5  ;;  %v5558_v60 = vld [vmem:[%s6875_s23 + $0x30] sm:$0xe] }
  0xba   : > { %6462 = vmatprep.mubr.bf16.mxu0 %v5539_v33  ;;  %6490 = vmatprep.subr.bf16.mxu1 %v6777_v24  ;;  %v8055_v33 = vld [vmem:[%s9520_s1 + $0x1f8] sm:$0xff]   ;;  %v8065_v13 = vrot.slane %v2505_v7, 4  ;;  %v2913_v29 = vrot.slane %v7487_v42, 5  ;;  %v9591_v35 = vld [vmem:[#allocation2_spill] sm:$0xff]  ;;  %v5574_v47 = vrot.slane %v5558_v60, 9  ;;  %v9594_v60 = vld [vmem:[#allocation3_spill] sm:$0xff] }
  0xbb   : > { %6539 = vmatpush3.bf16.msra.mxu0 %v6778_v52  ;;  %v8057_v52 = vrot.slane %v2481_v18, 4  ;;  %v9592_v7 = vld [vmem:[#allocation5_spill] sm:$0xff]  ;;  %v2934_v18 = vrot.slane %v7570_v0, 5  ;;  %v2449_v0 = vsel %vm6906_vm2, %v7962_v30, %v7943_v6  ;;  %v2948_v30 = vrot.slane %v7661_v41, 5 }
  0xbc   : > { %6411 = vmatmul.mubr.bf16.gmra.mxu1 %v6764_v2  ;;  %6540 = vmatprep.subr.bf16.mxu0 %v6782_v5  ;;  %v2931_v57 = vrot.slane %v9592_v7, 5  ;;  %v9593_v2 = vld [vmem:[#allocation4_spill] sm:$0xff] }
  0xbd   : > { %6414 = vmatprep.mubr.bf16.mxu1 %v6767_v38  ;;  %6491 = vmatpush3.bf16.msra.mxu1 %v6777_v24  ;;  %v8072_v24 = vrot.slane %v2515_v50, 4  ;;  %v2917_v38 = vrot.slane %v7504_v61, 5  ;;  %v2415_v50 = vsel %vm6906_vm2, %v7932_v12, %v7864_v36  ;;  %v2938_v54 = vrot.slane %v9593_v2, 5  ;;  %v5559_v12 = vld [vmem:[%s6875_s23 + $0x3c] sm:$0xe] }
  0xbe   : > { %6492 = vmatprep.subr.bf16.mxu1 %v6781_v22  ;;  %v8094_v7 = vsel %vm7217_vm5, %v5574_v47, %v2931_v57  ;;  %v2933_v36 = vrot.slane %v2931_v57, 4  ;;  %v5575_v2 = vrot.slane %v5559_v12, 9  ;;  %v6772_v47 = vld [vmem:[%s6875_s23 + $0x90] sm:$0xff]   ;;  %v2955_v12 = vrot.slane %v7681_v34, 5 }
  0xbf   : > { %6541 = vmatpush3.bf16.msra.mxu0 %v6782_v5  ;;  %v2425_v5 = vsel %vm6906_vm2, %v7941_v28, %v7934_v59  ;;  %v2439_v59 = vsel %vm6906_vm2, %v7960_v40, %v7907_v20  ;;  %v2940_v28 = vrot.slane %v2938_v54, 4  ;;  %v2945_v20 = vrot.slane %v7620_v39, 5 }
  0xc0   : > { %6622 = vmatprep.subr.bf16.mxu0 %v8045_v49  ;;  %v8108_v57 = vsel %vm7217_vm5, %v2933_v36, %v2934_v18  ;;  %v5543_v18 = vcombine.low %v2439_v59, %v2449_v0  ;;  %v8123_v39 = vsel %vm7217_vm5, %v5575_v2, %v2938_v54  ;;  %v2463_v36 = vsel %vm6906_vm2, %v8048_v1, %v7978_v46  ;;  %v5561_v54 = vld [vmem:[%s6875_s23 + $0x54] sm:$0xe] }
  0xc1   : > { %6463 = vmatmul.mubr.bf16.gmra.mxu0 %v5540_v15  ;;  %6493 = vmatpush3.bf16.msra.mxu1 %v6781_v22  ;;  %v2927_v15 = vrot.slane %v9594_v60, 5  ;;  %v2941_v22 = vrot.slane %v7599_v45, 5  ;;  %v5606_v40 = vcombine.low %v8094_v7, %v8108_v57  ;;  %v5560_v45 = vld [vmem:[%s6875_s23 + $0x48] sm:$0xe]  ;;  %v2473_v46 = vsel %vm6906_vm2, %v8050_v11, %v8020_v25  ;;  %v6792_v7 = vld [vmem:[%s6875_s23 + $0x54] sm:$0xff]  }
  0xc2   : > { %6466 = vmatprep.mubr.bf16.mxu0 %v5541_v19  ;;  %6574 = vmatprep.subr.bf16.mxu1 %v8055_v33  ;;  %v5542_v19 = vcombine.low %v2415_v50, %v2425_v5  ;;  %v2947_v50 = vrot.slane %v2945_v20, 4  ;;  %v6775_v5 = vld [vmem:[%s6875_s23 + $0x9c] sm:$0xff]   ;;  %v2959_v2 = vrot.slane %v7685_v31, 5  ;;  %v2487_v34 = vsel %vm6906_vm2, %v8057_v52, %v8010_v14 }
  0xc3   : > { %v8115_v6 = vsel %vm7217_vm5, %v2940_v28, %v2941_v22  ;;  %v5577_v28 = vrot.slane %v5561_v54, 9  ;;  %v5562_v22 = vld [vmem:[%s6875_s23 + $0x60] sm:$0xe]  ;;  %v2962_v25 = vrot.slane %v7733_v16, 5  ;;  %v2497_v11 = vsel %vm6906_vm2, %v8059_v53, %v8061_v21 }
  0xc4   : > { %6415 = vmatmul.mubr.bf16.gmra.mxu1 %v6768_v9  ;;  %v2952_v9 = vrot.slane %v7655_v10, 5  ;;  %v5607_v41 = vcombine.low %v8123_v39, %v8115_v6  ;;  %v8138_v59 = vsel %vm7217_vm5, %v2947_v50, %v2948_v30  ;;  %v2966_v14 = vrot.slane %v7725_v8, 5  ;;  %v5788_v6 = vld [vmem:[%s6875_s23 + $0x24] sm:$0xe] }
  0xc5   : > { %6418 = vmatprep.mubr.bf16.mxu1 %v6771_v37  ;;  %v5576_v37 = vrot.slane %v5560_v45, 9  ;;  %v2961_v45 = vrot.slane %v2959_v2, 4  ;;  %v5544_v52 = vcombine.low %v2463_v36, %v2473_v46  ;;  %v2969_v8 = vrot.slane %v7746_v62, 5  ;;  %v5564_v36 = vld [vmem:[%s6875_s23 + $0x78] sm:$0xe] }
  0xc6   : > { %v2954_v0 = vrot.slane %v2952_v9, 4  ;;  %v8165_v31 = vsel %vm7217_vm5, %v5577_v28, %v2952_v9  ;;  %v2968_v9 = vrot.slane %v2966_v14, 4  ;;  %v2973_v54 = vrot.slane %v7750_v44, 5 }
  0xc7   : > { %v8134_v10 = vsel %vm7217_vm5, %v5576_v37, %v2945_v20  ;;  %v5578_v20 = vrot.slane %v5562_v22, 9  ;;  %v8177_v53 = vsel %vm7217_vm5, %v2961_v45, %v2962_v25  ;;  %v5545_v37 = vcombine.low %v2487_v34, %v2497_v11 }
  0xc8   : > { %v8193_v46 = vsel %vm7217_vm5, %v2968_v9, %v2969_v8  ;;  %v5580_v62 = vrot.slane %v5564_v36, 9  ;;  %v2980_v28 = vrot.slane %v7793_v3, 5  ;;  %v2975_v44 = vrot.slane %v2973_v54, 4  ;;  %v6783_v8 = vld [vmem:[%s6875_s23 + $0x18] sm:$0xff]   ;;  %v9599_v36 = vld [vmem:[#allocation8_spill] sm:$0xff] }
  0xc9   : > { %6467 = vmatmul.mubr.bf16.gmra.mxu0 %v5542_v19  ;;  %v8156_v19 = vsel %vm7217_vm5, %v2954_v0, %v2955_v12  ;;  %v8172_v16 = vsel %vm7217_vm5, %v5578_v20, %v2959_v2  ;;  %v2976_v0 = vrot.slane %v7757_v26, 5  ;;  %v2983_v26 = vrot.slane %v7819_v17, 5  ;;  %v5565_v20 = vld [vmem:[%s6875_s23 + $0x84] sm:$0xe] }
  0xca   : > { %6470 = vmatprep.mubr.bf16.mxu0 %v5543_v18  ;;  %v5563_v18 = vld [vmem:[%s6875_s23 + $0x6c] sm:$0xe]  ;;  %v2511_v2 = vsel %vm6906_vm2, %v8065_v13, %v8025_v55  ;;  %v8205_v34 = vsel %vm7217_vm5, %v5580_v62, %v2973_v54  ;;  %v2521_v3 = vsel %vm6906_vm2, %v8072_v24, %v8067_v63  ;;  %v5581_v25 = vrot.slane %v5565_v20, 9  ;;  %v9597_v63 = vld [vmem:[#allocation6_spill] sm:$0xff] }
  0xcb   : > { %v5579_v21 = vrot.slane %v5563_v18, 9  ;;  %v8214_v17 = vsel %vm7217_vm5, %v2975_v44, %v2976_v0  ;;  %v2982_v11 = vrot.slane %v2980_v28, 4  ;;  %v9595_v45 = vrot.slane %v7413_v32, 5  ;;  %v5566_v18 = vld [vmem:[%s6875_s23 + $0x90] sm:$0xe]  ;;  %v6795_v62 = vld [vmem:[%s6875_s23 + $0x60] sm:$0xff]  }
  0xcc   : > { %6419 = vmatmul.mubr.bf16.gmra.mxu1 %v6772_v47  ;;  %v6776_v47 = vld [vmem:[%s6875_s23 + $0xa8] sm:$0xff]   ;;  %v9596_v55 = vrot.slane %v8037_v58, 9  ;;  %v2987_v24 = vrot.slane %v9597_v63, 5  ;;  %v8231_v32 = vsel %vm7217_vm5, %v5581_v25, %v2980_v28  ;;  %v2994_v54 = vrot.slane %v9599_v36, 5 }
  0xcd   : > { %6422 = vmatprep.mubr.bf16.mxu1 %v6775_v5  ;;  %v6779_v5 = vld [vmem:[%s6875_s23 + $0xb4] sm:$0xff]   ;;  %v8189_v12 = vsel %vm7217_vm5, %v5579_v21, %v2966_v14  ;;  %v5557_v14 = vld [vmem:[%s6875_s23 + $0x24] sm:$0xe]  ;;  %v9598_v21 = vld [vmem:[#allocation7_spill] sm:$0xff]  ;;  %v8235_v58 = vsel %vm7217_vm5, %v2982_v11, %v2983_v26  ;;  %v5546_v0 = vcombine.low %v2511_v2, %v2521_v3  ;;  %v2914_v28 = vsel %vm7217_vm5, %v8015_v43, %v2913_v29 }
  0xce   : > { %v2911_v13 = vsel %vm7217_vm5, %v9596_v55, %v9595_v45  ;;  %v2990_v9 = vrot.slane %v9598_v21, 5  ;;  %v2989_v44 = vrot.slane %v2987_v24, 4  ;;  %v6780_v45 = vld [vmem:[%s6875_s23 + $0xc0] sm:$0xff]   ;;  %v2919_v26 = vrot.slane %v2917_v38, 4  ;;  %v5567_v2 = vld [vmem:[%s6875_s23 + $0x9c] sm:$0xe] }
  0xcf   : > { %v2996_v3 = vrot.slane %v2994_v54, 4  ;;  %v5583_v11 = vrot.slane %v5567_v2, 9  ;;  %v9601_v55 = vld [vmem:[#allocation10_spill] sm:$0xff]  ;;  %v5568_v63 = vld [vmem:[%s6875_s23 + $0xa8] sm:$0xe]  ;;  %v5603_v21 = vcombine.low %v2911_v13, %v2914_v28  ;;  %v9605_v28 = vrot.slane %v8040_v48, 9 }
  0xd0   : > { %v8256_v25 = vsel %vm7217_vm5, %v2989_v44, %v2990_v9  ;;  %v3001_v42 = vrot.slane %v9601_v55, 5  ;;  %v8379_v43 = vld [vmem:[%s6875_s23 + $0x34] sm:$0xf] }
  0xd1   : > { %6471 = vmatmul.mubr.bf16.gmra.mxu0 %v5544_v52  ;;  %v8269_v9 = vsel %vm7217_vm5, %v5583_v11, %v2994_v54  ;;  %v5569_v54 = vld [vmem:[%s6875_s23 + $0xb4] sm:$0xe]  ;;  %v3835_v39 = vshll.u32 %v8379_v43, 16 }
  0xd2   : > { %6474 = vmatprep.mubr.bf16.mxu0 %v5545_v37  ;;  %v5582_v37 = vrot.slane %v5566_v18, 9  ;;  %v5573_v18 = vrot.slane %v5557_v14, 9  ;;  %v3003_v36 = vrot.slane %v3001_v42, 4  ;;  %v9602_v14 = vrot.slane %v9591_v35, 5 }
  0xd3   : > { %v5585_v55 = vrot.slane %v5569_v54, 9 }
  0xd4   : > { %6423 = vmatmul.mubr.bf16.gmra.mxu1 %v6776_v47  ;;  %v9600_v47 = vld [vmem:[#allocation9_spill] sm:$0xff]  ;;  %v2926_v44 = vrot.slane %v9602_v14, 4  ;;  %v9607_v61 = vmov %v9602_v14  ;;  %v3018_v14 = vrot.slane %v8008_v51, 5  ;;  %v5705_v51 = vld [vmem:[%s6875_s23 + $0x30] sm:$0xf] }
  0xd5   : > { %6426 = vmatprep.mubr.bf16.mxu1 %v6779_v5  ;;  %v2997_v20 = vrot.slane %v9600_v47, 5  ;;  %v8251_v5 = vsel %vm7217_vm5, %v5582_v37, %v2987_v24  ;;  %v3004_v24 = vrot.slane %v7927_v4, 5  ;;  %v5584_v37 = vrot.slane %v5568_v63, 9 }
  0xd6   : > { %v9606_v63 = vrot.slane %v7518_v23, 5  ;;  %v2925_v48 = vsel %vm7217_vm5, %v5573_v18, %v9607_v61  ;;  %v2928_v23 = vsel %vm7217_vm5, %v2926_v44, %v2927_v15  ;;  %v8349_v61 = vld [vmem:[%s6875_s23 + $0x28] sm:$0xf] }
  0xd7   : > { %v8263_v29 = vsel %vm7217_vm5, %v2996_v3, %v2997_v20  ;;  %v9603_v20 = vld [vmem:[#allocation11_spill] sm:$0xff]  ;;  %v8278_v4 = vsel %vm7217_vm5, %v5584_v37, %v3001_v42  ;;  %v8282_v13 = vsel %vm7217_vm5, %v3003_v36, %v3004_v24  ;;  %v2918_v3 = vsel %vm7217_vm5, %v9605_v28, %v2917_v38  ;;  %v5570_v37 = vld [vmem:[%s6875_s23 + $0xc0] sm:$0xe]  ;;  %v9608_v38 = vld [vmem:[#allocation13_spill] sm:$0xff] }
  0xd8   : > { %v3008_v2 = vrot.slane %v9603_v20, 5  ;;  %v2921_v24 = vsel %vm7217_vm5, %v2919_v26, %v9606_v63  ;;  %v3015_v36 = vrot.slane %v9608_v38, 5  ;;  %v5586_v18 = vrot.slane %v5570_v37, 9  ;;  %v6790_v20 = vld [vmem:[%s9520_s1 + $0x230] sm:$0xff]   ;;  %v5702_v63 = vld [vmem:[%s6875_s23 + $0x24] sm:$0xf] }
  0xd9   : > { %6475 = vmatmul.mubr.bf16.gmra.mxu0 %v5546_v0  ;;  %v5604_v15 = vcombine.low %v2918_v3, %v2921_v24  ;;  %v5605_v54 = vcombine.low %v2925_v48, %v2928_v23  ;;  %v6789_v28 = vld [vmem:[%s9520_s1 + $0x1f0] sm:$0xff]   ;;  %v6788_v48 = vld [vmem:[%s6875_s23 + $0x3c] sm:$0xff]   ;;  %v3802_v37 = vshrl.u32 %v5702_v63, 16  ;;  %v6791_v38 = vld [vmem:[%s6875_s23 + $0x48] sm:$0xff]   ;;  %v3811_v23 = vshll.u32 %v8349_v61, 16 }
  0xda   : > { %6542 = vmatprep.mubr.bf16.mxu0 %v6783_v8  ;;  %v9604_v8 = vld [vmem:[#allocation12_spill] sm:$0xff]  ;;  %v3010_v42 = vrot.slane %v3008_v2, 4  ;;  %v8313_v26 = vsel %vm7217_vm5, %v5585_v55, %v3008_v2  ;;  %v3017_v60 = vrot.slane %v3015_v36, 4  ;;  %v8326_v44 = vsel %vm7217_vm5, %v5586_v18, %v3015_v36  ;;  %v5699_v2 = vld [vmem:[%s6875_s23 + $0x18] sm:$0xf]  ;;  %v6794_v55 = vld [vmem:[%s9520_s1 + $0x228] sm:$0xff]  }
  0xdb   : > { %v3011_v0 = vrot.slane %v9604_v8, 5  ;;  %v3781_v24 = vshll.u32 %v5699_v2, 16  ;;  %v6793_v36 = vld [vmem:[%s9520_s1 + $0x1e8] sm:$0xff]   ;;  %v5701_v18 = vld [vmem:[%s6875_s23 + $0x20] sm:$0x1]  ;;  %v3804_v11 = vrot.slane %v3802_v37, 4 }
  0xdc   : > { %6427 = vmatmul.mubr.bf16.gmra.mxu1 %v6780_v45  ;;  %v6784_v45 = vld [vmem:[%s6875_s23 + $0x24] sm:$0xff]   ;;  %v8331_v8 = vsel %vm7217_vm5, %v3017_v60, %v3018_v14  ;;  %v3805_v14 = vshll.u32 %v5702_v63, 16  ;;  %v8369_v63 = vld [vmem:[%s6875_s23 + $0x2c] sm:$0x1]  ;;  %v3826_v37 = vshrl.u32 %v5705_v51, 16 }
  0xdd   : > { %6494 = vmatprep.mubr.bf16.mxu1 %v5603_v21  ;;  %v6787_v21 = vld [vmem:[%s6875_s23 + $0x30] sm:$0xff]   ;;  %v8317_v35 = vsel %vm7217_vm5, %v3010_v42, %v3011_v0  ;;  %v8334_v0 = vld [vmem:[%s6875_s23 + $0x1c] sm:$0xf]  ;;  %v3778_v42 = vshrl.u32 %v5699_v2, 16 }
  0xde   : > { %v4549_v3 = vrot.slane %v8334_v0, 5  ;;  %v3807_v47 = vrot.slane %v3805_v14, 5 }
  0xdf   : > { %v3780_v60 = vrot.slane %v3778_v42, 4  ;;  %v6797_v42 = vld [vmem:[%s9520_s1 + $0x1e0] sm:$0xff]  }
  0xe1   : > { %6543 = vmatmul.mubr.bf16.vlgmr.msra.gmra.mxu0 %v6784_v45  ;;  %v3791_v45 = vshrl.u32 %v8334_v0, 16 }
  0xe2   : > { %6623 = vmatpush3.bf16.msra.mxu0 %v8045_v49  ;;  %6546 = vmatprep.mubr.bf16.mxu0 %v6787_v21  ;;  %v3787_v49 = vshll.u32 %v8334_v0, 16  ;;  %v3815_v21 = vshrl.u32 %v8349_v61, 16 }
  0xe3   : > { %6624 = vmatprep.subr.bf16.mxu0 %v6790_v20 }
  0xe4   : > { %6495 = vmatmul.mubr.bf16.vlgmr.msra.gmra.mxu1 %v5604_v15  ;;  %v5787_v15 = vld [vmem:[%s6875_s23 + $0x18] sm:$0xe]  ;;  %v8364_v2 = vrot.slane %v3787_v49, 5  ;;  %v3797_v49 = vshll.u32 %v5701_v18, 16  ;;  %v3817_v0 = vrot.slane %v3815_v21, 4 }
  0xe5   : > { %6575 = vmatpush3.bf16.msra.mxu1 %v8055_v33  ;;  %6498 = vmatprep.mubr.bf16.mxu1 %v5605_v54  ;;  %v6798_v33 = vld [vmem:[%s9520_s1 + $0x220] sm:$0xff]   ;;  %v3793_v54 = vrot.slane %v3791_v45, 4  ;;  %v8376_v45 = vrot.slane %v3811_v23, 5  ;;  %v6802_v23 = vld [vmem:[%s9520_s1 + $0x218] sm:$0xff]  }
  0xe6   : > { %6576 = vmatprep.subr.bf16.mxu1 %v6789_v28  ;;  %6625 = vmatpush3.bf16.msra.mxu0 %v6790_v20  ;;  %v3783_v20 = vrot.slane %v3781_v24, 5 }
  0xe7   : > { %6626 = vmatprep.subr.bf16.mxu0 %v6794_v55  ;;  %v3794_v21 = vor.u32 %v3793_v54, %v8364_v2  ;;  %v3818_v54 = vor.u32 %v3817_v0, %v8376_v45 }
  0xe9   : > { %6547 = vmatmul.mubr.bf16.gmra.mxu0 %v6788_v48  ;;  %6577 = vmatpush3.bf16.msra.mxu1 %v6789_v28  ;;  %v5803_v48 = vrot.slane %v5787_v15, 9  ;;  %v4552_v28 = vrot.slane %v5701_v18, 5  ;;  %v4551_v18 = vrot.slane %v4549_v3, 4  ;;  %v3821_v15 = vshll.u32 %v8369_v63, 16 }
  0xea   : > { %6550 = vmatprep.mubr.bf16.mxu0 %v6791_v38  ;;  %6578 = vmatprep.subr.bf16.mxu1 %v6793_v36  ;;  %v3829_v38 = vshll.u32 %v5705_v51, 16  ;;  %v4556_v51 = vrot.slane %v8349_v61, 5  ;;  %v3839_v61 = vshrl.u32 %v8379_v43, 16 }
  0xeb   : > { %6627 = vmatpush3.bf16.msra.mxu0 %v6794_v55  ;;  %v3784_v55 = vor.u32 %v3783_v20, %v3780_v60  ;;  %v6801_v60 = vld [vmem:[%s9520_s1 + $0x1d8] sm:$0xff]   ;;  %v8402_v20 = vrot.slane %v3797_v49, 5  ;;  %v6806_v49 = vld [vmem:[%s9520_s1 + $0x210] sm:$0xff]  }
  0xec   : > { %v8374_v24 = vpop.f32.mrf.mxu0  ;;  %6499 = vmatmul.mubr.bf16.gmra.mxu1 %v5606_v40  ;;  %6628 = vmatprep.subr.bf16.mxu0 %v6798_v33  ;;  %v8384_v14 = vpop.f32.mrf.mxu1  ;;  %v3808_v40 = vor.u32 %v3807_v47, %v3804_v11  ;;  %v3828_v47 = vrot.slane %v3826_v37, 4  ;;  %v3831_v11 = vrot.slane %v3829_v38, 5  ;;  %v8429_v37 = vld [vmem:[%s6875_s23 + $0x40] sm:$0xf]  ;;  %v4558_v50 = vrot.slane %v4556_v51, 4 }
  0xed   : > { %9609 = vst [vmem:[#allocation2_spill] sm:$0xff] %v8384_v14  ;;  %6502 = vmatprep.mubr.bf16.mxu1 %v5607_v41  ;;  %6579 = vmatpush3.bf16.msra.mxu1 %v6793_v36  ;;  %v8409_v41 = vsel %vm7217_vm5, %v5803_v48, %v4549_v3  ;;  %v5708_v36 = vld [vmem:[%s6875_s23 + $0x3c] sm:$0xf]  ;;  %v8418_v0 = vrot.slane %v3784_v55, 4  ;;  %v8424_v3 = vsel %vm7217_vm5, %v4551_v18, %v4552_v28  ;;  %v8426_v48 = vrot.slane %v3821_v15, 5  ;;  %v6805_v55 = vld [vmem:[%s9520_s1 + $0x1d0] sm:$0xff]  }
  0xee   : > { %v8395_v57 = vpop.f32.mrf.mxu0  ;;  %6580 = vmatprep.subr.bf16.mxu1 %v6797_v42  ;;  %v8413_v52 = vpop.f32.mrf.mxu1  ;;  %v8436_v22 = vrot.slane %v3808_v40, 4  ;;  %v4559_v28 = vrot.slane %v8369_v63, 5  ;;  %v3819_v18 = vrot.slane %v3818_v54, 4  ;;  %v8440_v15 = vld [vmem:[%s6875_s23 + $0x38] sm:$0x1]  ;;  %v3853_v30 = vshll.u32 %v5708_v36, 16 }
  0xef   : > { %6629 = vmatpush3.bf16.msra.mxu0 %v6798_v33  ;;  %9610 = vst [vmem:[#allocation5_spill] sm:$0xff] %v8413_v52  ;;  %v8420_v33 = vrot.slane %v3794_v21, 4  ;;  %v5804_v21 = vrot.slane %v5788_v6, 9  ;;  %v3832_v1 = vor.u32 %v3831_v11, %v3828_v47  ;;  %v8444_v52 = vrot.slane %v3839_v61, 4  ;;  %v5789_v40 = vld [vmem:[%s6875_s23 + $0x30] sm:$0xe] }
  0xf0   : > { %6630 = vmatprep.subr.bf16.mxu0 %v6802_v23  ;;  %v8431_v38 = vpop.f32.mrf.mxu0  ;;  %v3859_v6 = vshll.u32 %v8429_v37, 16  ;;  %v3863_v63 = vshrl.u32 %v8429_v37, 16  ;;  %v8452_v54 = vpop.f32.mrf.mxu1  ;;  %v9613_v11 = vcombine.low %v8165_v31, %v8156_v19  ;;  %v6796_v61 = vld [vmem:[%s6875_s23 + $0x6c] sm:$0xff]   ;;  %v8485_v19 = vsel %vm7217_vm5, %v4558_v50, %v4559_v28  ;;  %v8503_v28 = vld [vmem:[%s6875_s23 + $0x44] sm:$0x1] }
  0xf1   : > { %6551 = vmatmul.mubr.bf16.gmra.mxu0 %v6792_v7  ;;  %6581 = vmatpush3.bf16.msra.mxu1 %v6797_v42  ;;  %v8442_v7 = vrot.slane %v3835_v39, 5  ;;  %v3850_v42 = vshrl.u32 %v5708_v36, 16  ;;  %9612 = vst [vmem:[#allocation4_spill] sm:$0xff] %v8452_v54  ;;  %v3790_v39 = vsel %vm6906_vm2, %v8418_v0, %v8364_v2  ;;  %v3800_v47 = vsel %vm6906_vm2, %v8420_v33, %v8402_v20  ;;  %v6799_v36 = vld [vmem:[%s6875_s23 + $0x78] sm:$0xff]   ;;  %v8496_v33 = vld [vmem:[%s6875_s23 + $0x4c] sm:$0xf] }
  0xf2   : > { %6554 = vmatprep.mubr.bf16.mxu0 %v6795_v62  ;;  %6582 = vmatprep.subr.bf16.mxu1 %v6801_v60  ;;  %v9611_v62 = vcombine.low %v8134_v10, %v8138_v59  ;;  %v4563_v59 = vrot.slane %v8379_v43, 5  ;;  %v3814_v2 = vsel %vm6906_vm2, %v8436_v22, %v8376_v45  ;;  %v8481_v20 = vsel %vm7217_vm5, %v5804_v21, %v4556_v51  ;;  %v5711_v43 = vld [vmem:[%s6875_s23 + $0x48] sm:$0xf]  ;;  %v8507_v54 = vpop.f32.mrf.mxu1  ;;  %v5790_v14 = vld [vmem:[%s6875_s23 + $0x3c] sm:$0xe] }
  0xf3   : > { %6631 = vmatpush3.bf16.msra.mxu0 %v6802_v23  ;;  %v6810_v23 = vld [vmem:[%s9520_s1 + $0x208] sm:$0xff]   ;;  %v3845_v31 = vshll.u32 %v8440_v15, 16  ;;  %v3824_v22 = vsel %vm6906_vm2, %v3819_v18, %v8426_v48  ;;  %v5805_v45 = vrot.slane %v5789_v40, 9  ;;  %v3852_v0 = vrot.slane %v3850_v42, 4  ;;  %9615 = vst [vmem:[#allocation6_spill] sm:$0xff] %v8507_v54  ;;  %v6813_v42 = vld [vmem:[%s9520_s1 + $0x1c0] sm:$0xff]  }
  0xf4   : > { %6503 = vmatmul.mubr.bf16.gmra.mxu1 %v9611_v62  ;;  %6632 = vmatprep.subr.bf16.mxu0 %v6806_v49  ;;  %v8473_v62 = vpop.f32.mrf.mxu0  ;;  %v3855_v51 = vrot.slane %v3853_v30, 5  ;;  %v8498_v50 = vrot.slane %v3832_v1, 4  ;;  %v3842_v21 = vor.u32 %v8444_v52, %v8442_v7  ;;  %v3865_v10 = vrot.slane %v3863_v63, 4  ;;  %v6814_v30 = vld [vmem:[%s9520_s1 + $0x200] sm:$0xff]  }
  0xf5   : > { %6506 = vmatprep.mubr.bf16.mxu1 %v9613_v11  ;;  %6583 = vmatpush3.bf16.msra.mxu1 %v6801_v60  ;;  %9614 = vst [vmem:[#allocation3_spill] sm:$0xff] %v8473_v62  ;;  %v6809_v60 = vld [vmem:[%s9520_s1 + $0x1c8] sm:$0xff]   ;;  %v8505_v11 = vrot.slane %v3859_v6, 5  ;;  %v4565_v48 = vrot.slane %v4563_v59, 4  ;;  %v3874_v1 = vshrl.u32 %v5711_v43, 16  ;;  %v3877_v18 = vshll.u32 %v5711_v43, 16 }
  0xf6   : > { %6584 = vmatprep.subr.bf16.mxu1 %v6805_v55  ;;  %v8518_v40 = vcombine.low %v3790_v39, %v3800_v47  ;;  %v3887_v63 = vshrl.u32 %v8496_v33, 16  ;;  %v8526_v43 = vrot.slane %v3845_v31, 5  ;;  %v3869_v54 = vshll.u32 %v8503_v28, 16  ;;  %v5714_v39 = vld [vmem:[%s6875_s23 + $0x54] sm:$0xf]  ;;  %v6800_v6 = vld [vmem:[%s6875_s23 + $0x84] sm:$0xff]  }
  0xf7   : > { %6633 = vmatpush3.bf16.msra.mxu0 %v6806_v49  ;;  %v4566_v49 = vrot.slane %v8440_v15, 5  ;;  %v8513_v52 = vpop.f32.mrf.mxu0  ;;  %v3883_v15 = vshll.u32 %v8496_v33, 16  ;;  %v4570_v31 = vrot.slane %v8429_v37, 5  ;;  %v9619_v37 = vcombine.low %v8189_v12, %v8193_v46  ;;  %v6803_v47 = vld [vmem:[%s6875_s23 + $0x90] sm:$0xff]  }
  0xf8   : > { %6634 = vmatprep.subr.bf16.mxu0 %v6810_v23  ;;  %9616 = vst [vmem:[#allocation7_spill] sm:$0xff] %v8513_v52 }
  0xf9   : > { %6555 = vmatmul.mubr.bf16.gmra.mxu0 %v6796_v61  ;;  %6585 = vmatpush3.bf16.msra.mxu1 %v6805_v55  ;;  %v8524_v61 = vcombine.low %v3814_v2, %v3824_v22  ;;  %v3856_v55 = vor.u32 %v3855_v51, %v3852_v0  ;;  %v3866_v2 = vor.u32 %v3865_v10, %v8505_v11  ;;  %v8542_v22 = vld [vmem:[%s6875_s23 + $0x58] sm:$0xf]  ;;  %v8549_v51 = vrot.slane %v3842_v21, 4 }
  0xfa   : > { %6558 = vmatprep.mubr.bf16.mxu0 %v6799_v36  ;;  %6586 = vmatprep.subr.bf16.mxu1 %v6809_v60  ;;  %v8537_v36 = vsel %vm7217_vm5, %v5805_v45, %v4563_v59  ;;  %v9617_v0 = vcombine.low %v8172_v16, %v8177_v53  ;;  %v8553_v59 = vsel %vm7217_vm5, %v4565_v48, %v4566_v49  ;;  %v3876_v45 = vrot.slane %v3874_v1, 4  ;;  %v8560_v16 = vpop.f32.mrf.mxu0  ;;  %v5713_v1 = vld [vmem:[%s6875_s23 + $0x50] sm:$0x1] }
  0xfb   : > { %6635 = vmatpush3.bf16.msra.mxu0 %v6810_v23  ;;  %v8547_v23 = vpop.f32.mrf.mxu1  ;;  %v3879_v10 = vrot.slane %v3877_v18, 5  ;;  %9620 = vst [vmem:[#allocation9_spill] sm:$0xff] %v8560_v16  ;;  %v5806_v53 = vrot.slane %v5790_v14, 9  ;;  %v3889_v21 = vrot.slane %v3887_v63, 4  ;;  %v3857_v48 = vrot.slane %v3856_v55, 4 }
  0xfc   : > { %6507 = vmatmul.mubr.bf16.gmra.mxu1 %v9617_v0  ;;  %9618 = vst [vmem:[#allocation8_spill] sm:$0xff] %v8547_v23  ;;  %6636 = vmatprep.subr.bf16.mxu0 %v6814_v30  ;;  %v8562_v0 = vrot.slane %v3883_v15, 5  ;;  %v3898_v23 = vshrl.u32 %v5714_v39, 16  ;;  %v3871_v49 = vrot.slane %v3869_v54, 5  ;;  %v3901_v18 = vshll.u32 %v5714_v39, 16  ;;  %v8578_v39 = vpop.f32.mrf.mxu0 }
  0xfd   : > { %6510 = vmatprep.mubr.bf16.mxu1 %v9619_v37  ;;  %6587 = vmatpush3.bf16.msra.mxu1 %v6809_v60  ;;  %v3907_v52 = vshll.u32 %v8542_v22, 16  ;;  %v3867_v12 = vrot.slane %v3866_v2, 4  ;;  %v4572_v46 = vrot.slane %v4570_v31, 4  ;;  %v4573_v37 = vrot.slane %v8503_v28, 5  ;;  %v8568_v60 = vpop.f32.mrf.mxu1  ;;  %v5717_v55 = vld [vmem:[%s6875_s23 + $0x60] sm:$0xf] }
  0xfe   : > { %6588 = vmatprep.subr.bf16.mxu1 %v6813_v42  ;;  %v3911_v14 = vshrl.u32 %v8542_v22, 16  ;;  %9621 = vst [vmem:[#allocation10_spill] sm:$0xff] %v8568_v60  ;;  %v3848_v15 = vsel %vm6906_vm2, %v8549_v51, %v8526_v43  ;;  %v3880_v63 = vor.u32 %v3879_v10, %v3876_v45  ;;  %v3890_v28 = vor.u32 %v3889_v21, %v8562_v0  ;;  %v5791_v60 = vld [vmem:[%s6875_s23 + $0x48] sm:$0xe] }
  0xff   : > { %6637 = vmatpush3.bf16.msra.mxu0 %v6814_v30  ;;  %v4577_v30 = vrot.slane %v8496_v33, 5  ;;  %v3893_v2 = vshll.u32 %v5713_v1, 16  ;;  %v3900_v16 = vrot.slane %v3898_v23, 4  ;;  %v3903_v62 = vrot.slane %v3901_v18, 5  ;;  %v8603_v10 = vpop.f32.mrf.mxu1 }
 0x100   : > { %v3862_v43 = vsel %vm6906_vm2, %v3857_v48, %v8505_v11  ;;  %v8587_v33 = vsel %vm7217_vm5, %v5806_v53, %v4570_v31  ;;  %v3872_v51 = vsel %vm6906_vm2, %v3867_v12, %v3871_v49  ;;  %v8595_v23 = vsel %vm7217_vm5, %v4572_v46, %v4573_v37  ;;  %9623 = vst [vmem:[#allocation11_spill] sm:$0xff] %v8603_v10  ;;  %v8606_v49 = vld [vmem:[%s6875_s23 + $0x64] sm:$0xf]  ;;  %v6804_v12 = vld [vmem:[%s6875_s23 + $0x9c] sm:$0xff]   ;;  %v8612_v46 = vpop.f32.mrf.mxu0 }
 0x101   : > { %6559 = vmatmul.mubr.bf16.gmra.mxu0 %v6800_v6  ;;  %6589 = vmatpush3.bf16.msra.mxu1 %v6813_v42  ;;  %v8589_v6 = vrot.slane %v3907_v52, 5  ;;  %v3913_v42 = vrot.slane %v3911_v14, 4  ;;  %v3922_v45 = vshrl.u32 %v5717_v55, 16  ;;  %v3925_v11 = vshll.u32 %v5717_v55, 16  ;;  %v6807_v55 = vld [vmem:[%s6875_s23 + $0xa8] sm:$0xff]  }
 0x102   : > { %6562 = vmatprep.mubr.bf16.mxu0 %v6803_v47  ;;  %v8598_v47 = vld [vmem:[%s6875_s23 + $0x5c] sm:$0x1]  ;;  %v9622_v31 = vcombine.low %v8205_v34, %v8214_v17  ;;  %v3881_v52 = vrot.slane %v3880_v63, 4  ;;  %v5807_v53 = vrot.slane %v5791_v60, 9  ;;  %v4579_v21 = vrot.slane %v4577_v30, 4 }
 0x103   : > { %v4580_v48 = vrot.slane %v5713_v1, 5  ;;  %v9624_v18 = vcombine.low %v8231_v32, %v8235_v58  ;;  %v3891_v37 = vrot.slane %v3890_v28, 4  ;;  %v3895_v14 = vrot.slane %v3893_v2, 5  ;;  %v5792_v63 = vld [vmem:[%s6875_s23 + $0x54] sm:$0xe]  ;;  %v8630_v28 = vpop.f32.mrf.mxu1 }
 0x104   : > { %6511 = vmatmul.mubr.bf16.gmra.mxu1 %v9622_v31  ;;  %v3904_v34 = vor.u32 %v3903_v62, %v3900_v16  ;;  %v4584_v17 = vrot.slane %v8542_v22, 5  ;;  %v3914_v60 = vor.u32 %v3913_v42, %v8589_v6  ;;  %v3917_v1 = vshll.u32 %v8598_v47, 16  ;;  %9626 = vst [vmem:[#allocation12_spill] sm:$0xff] %v8630_v28  ;;  %v5793_v62 = vld [vmem:[%s6875_s23 + $0x60] sm:$0xe] }
 0x105   : > { %6514 = vmatprep.mubr.bf16.mxu1 %v9624_v18  ;;  %v3924_v31 = vrot.slane %v3922_v45, 4  ;;  %v3927_v54 = vrot.slane %v3925_v11, 5  ;;  %v9625_v32 = vsel %vm6906_vm2, %v8498_v50, %v8442_v7  ;;  %v3931_v22 = vshll.u32 %v8606_v49, 16 }
 0x106   : > { %v8624_v58 = vcombine.low %v9625_v32, %v3848_v15  ;;  %v3935_v16 = vshrl.u32 %v8606_v49, 16  ;;  %v8632_v2 = vcombine.low %v3862_v43, %v3872_v51  ;;  %v3886_v42 = vsel %vm6906_vm2, %v3881_v52, %v8562_v0  ;;  %v5720_v15 = vld [vmem:[%s6875_s23 + $0x6c] sm:$0xf]  ;;  %v8650_v32 = vld [vmem:[%s6875_s23 + $0x70] sm:$0xf] }
 0x107   : > { %v8639_v7 = vsel %vm7217_vm5, %v5807_v53, %v4577_v30  ;;  %v8643_v50 = vsel %vm7217_vm5, %v4579_v21, %v4580_v48  ;;  %v8646_v45 = vpop.f32.mrf.mxu0  ;;  %v3905_v43 = vrot.slane %v3904_v34, 4  ;;  %v5808_v51 = vrot.slane %v5792_v63, 9  ;;  %v5719_v53 = vld [vmem:[%s6875_s23 + $0x68] sm:$0x1] }
 0x108   : > { %9627 = vst [vmem:[#allocation13_spill] sm:$0xff] %v8646_v45  ;;  %v4586_v11 = vrot.slane %v4584_v17, 4  ;;  %v4587_v18 = vrot.slane %v8598_v47, 5  ;;  %v3896_v0 = vsel %vm6906_vm2, %v3891_v37, %v3895_v14  ;;  %v3915_v30 = vrot.slane %v3914_v60, 4  ;;  %v5795_v45 = vld [vmem:[%s6875_s23 + $0x78] sm:$0xe] }
 0x109   : > { %6563 = vmatmul.mubr.bf16.gmra.mxu0 %v6804_v12  ;;  %v3919_v52 = vrot.slane %v3917_v1, 5  ;;  %v3928_v21 = vor.u32 %v3927_v54, %v3924_v31  ;;  %v8655_v48 = vrot.slane %v3931_v22, 5  ;;  %v3937_v12 = vrot.slane %v3935_v16, 4  ;;  %v6808_v31 = vld [vmem:[%s6875_s23 + $0xb4] sm:$0xff]  }
 0x10a   : > { %6566 = vmatprep.mubr.bf16.mxu0 %v6807_v55  ;;  %v3946_v34 = vshrl.u32 %v5720_v15, 16  ;;  %v3949_v63 = vshll.u32 %v5720_v15, 16  ;;  %v9628_v47 = vcombine.low %v8251_v5, %v8256_v25  ;;  %v4591_v14 = vrot.slane %v8606_v49, 5  ;;  %v8672_v5 = vpop.f32.mrf.mxu0 }
 0x10b   : > { %v3955_v54 = vshll.u32 %v8650_v32, 16  ;;  %v3959_v60 = vshrl.u32 %v8650_v32, 16  ;;  %v9630_v1 = vcombine.low %v8269_v9, %v8263_v29  ;;  %9631 = vst [vmem:[#allocation15_spill] sm:$0xff] %v8672_v5  ;;  %v8674_v25 = vcombine.low %v3886_v42, %v3896_v0  ;;  %v5723_v29 = vld [vmem:[%s6875_s23 + $0x78] sm:$0xf]  ;;  %v6811_v9 = vld [vmem:[%s6875_s23 + $0xc0] sm:$0xff]  }
 0x10c   : > { %6515 = vmatmul.mubr.bf16.gmra.mxu1 %v9628_v47  ;;  %v8661_v55 = vpop.f32.mrf.mxu1  ;;  %v3910_v22 = vsel %vm6906_vm2, %v3905_v43, %v8589_v6  ;;  %v8681_v49 = vsel %vm7217_vm5, %v5808_v51, %v4584_v17  ;;  %v8685_v16 = vsel %vm7217_vm5, %v4586_v11, %v4587_v18  ;;  %v3920_v15 = vsel %vm6906_vm2, %v3915_v30, %v3919_v52  ;;  %v8698_v43 = vld [vmem:[%s6875_s23 + $0x74] sm:$0x1]  ;;  %v8755_v5 = vld [vmem:[%s6875_s23 + $0x8c] sm:$0x1] }
 0x10d   : > { %9629 = vst [vmem:[#allocation14_spill] sm:$0xff] %v8661_v55  ;;  %6518 = vmatprep.mubr.bf16.mxu1 %v9630_v1  ;;  %v8691_v47 = vrot.slane %v3928_v21, 4  ;;  %v3941_v42 = vshll.u32 %v5719_v53, 16  ;;  %v5809_v0 = vrot.slane %v5793_v62, 9  ;;  %v8694_v1 = vld [vmem:[%s6875_s23 + $0x7c] sm:$0xf]  ;;  %v3938_v6 = vor.u32 %v3937_v12, %v8655_v48  ;;  %v8704_v21 = vpop.f32.mrf.mxu0 }
 0x10e   : > { %v4594_v17 = vrot.slane %v5719_v53, 5  ;;  %v3948_v51 = vrot.slane %v3946_v34, 4  ;;  %v3951_v11 = vrot.slane %v3949_v63, 5  ;;  %v8700_v18 = vpop.f32.mrf.mxu1  ;;  %v4593_v37 = vrot.slane %v4591_v14, 4  ;;  %9633 = vst [vmem:[#allocation17_spill] sm:$0xff] %v8704_v21 }
 0x10f   : > { %9632 = vst [vmem:[#allocation16_spill] sm:$0xff] %v8700_v18  ;;  %v8702_v55 = vrot.slane %v3955_v54, 5  ;;  %v3961_v30 = vrot.slane %v3959_v60, 4  ;;  %v3970_v52 = vshrl.u32 %v5723_v29, 16  ;;  %v5794_v53 = vld [vmem:[%s6875_s23 + $0x6c] sm:$0xe]  ;;  %v8711_v18 = vcombine.low %v3910_v22, %v3920_v15 }
 0x110   : > { %v3973_v12 = vshll.u32 %v5723_v29, 16  ;;  %v3979_v34 = vshll.u32 %v8694_v1, 16  ;;  %v3983_v63 = vshrl.u32 %v8694_v1, 16  ;;  %v8713_v54 = vrot.slane %v3941_v42, 5  ;;  %v5726_v62 = vld [vmem:[%s6875_s23 + $0x84] sm:$0xf]  ;;  %v8734_v42 = vpop.f32.mrf.mxu1 }
 0x111   : > { %6567 = vmatmul.mubr.bf16.gmra.mxu0 %v6808_v31  ;;  %9634 = vst [vmem:[#allocation18_spill] sm:$0xff] %v8711_v18  ;;  %v8717_v60 = vsel %vm7217_vm5, %v5809_v0, %v4591_v14  ;;  %v3965_v31 = vshll.u32 %v8698_v43, 16  ;;  %v8725_v28 = vrot.slane %v3938_v6, 4  ;;  %v4598_v22 = vrot.slane %v8650_v32, 5  ;;  %v8729_v15 = vld [vmem:[%s6875_s23 + $0x88] sm:$0xf] }
 0x112   : > { %6570 = vmatprep.mubr.bf16.mxu0 %v6811_v9  ;;  %v3952_v9 = vor.u32 %v3951_v11, %v3948_v51  ;;  %v9635_v14 = vcombine.low %v8278_v4, %v8282_v13  ;;  %9636 = vst [vmem:[#allocation19_spill] sm:$0xff] %v8734_v42  ;;  %v6812_v0 = vld [vmem:[%s6875_s23 + $0xcc] sm:$0xff]   ;;  %v8739_v10 = vsel %vm7217_vm5, %v4593_v37, %v4594_v17  ;;  %v5810_v6 = vrot.slane %v5794_v53, 9  ;;  %v8742_v11 = vpop.f32.mrf.mxu0  ;;  %v8748_v4 = vld [vmem:[%s6875_s23 + $0x80] sm:$0x1] }
 0x113   : > { %v3962_v29 = vor.u32 %v3961_v30, %v8702_v55  ;;  %v3972_v51 = vrot.slane %v3970_v52, 4  ;;  %9637 = vst [vmem:[#allocation20_spill] sm:$0xff] %v8742_v11  ;;  %v9638_v32 = vcombine.low %v8313_v26, %v8317_v35  ;;  %v3975_v13 = vrot.slane %v3973_v12, 5 }
 0x114   : > { %6519 = vmatmul.mubr.bf16.gmra.mxu1 %v9635_v14  ;;  %v8750_v14 = vrot.slane %v3979_v34, 5  ;;  %v3985_v42 = vrot.slane %v3983_v63, 4  ;;  %v3994_v21 = vshrl.u32 %v5726_v62, 16  ;;  %v3967_v37 = vrot.slane %v3965_v31, 5 }
 0x115   : > { %6522 = vmatprep.mubr.bf16.mxu1 %v9638_v32  ;;  %v4601_v17 = vrot.slane %v8698_v43, 5  ;;  %v3997_v30 = vshll.u32 %v5726_v62, 16  ;;  %v4003_v52 = vshll.u32 %v8729_v15, 16  ;;  %v3953_v53 = vrot.slane %v3952_v9, 4  ;;  %v8758_v32 = vpop.f32.mrf.mxu1 }
 0x116   : > { %v4600_v11 = vrot.slane %v4598_v22, 4  ;;  %v3996_v26 = vrot.slane %v3994_v21, 4  ;;  %v4007_v35 = vshrl.u32 %v8729_v15, 16  ;;  %v3963_v12 = vrot.slane %v3962_v29, 4 }
 0x117   : > { %v3989_v34 = vshll.u32 %v8748_v4, 16  ;;  %v3999_v63 = vrot.slane %v3997_v30, 5  ;;  %v8761_v31 = vrot.slane %v4003_v52, 5  ;;  %v3976_v62 = vor.u32 %v3975_v13, %v3972_v51  ;;  %v5796_v52 = vld [vmem:[%s6875_s23 + $0x84] sm:$0xe] }
 0x118   : > { %v8763_v43 = vpop.f32.mrf.mxu0  ;;  %v3986_v9 = vor.u32 %v3985_v42, %v8750_v14  ;;  %v4605_v21 = vrot.slane %v8694_v1, 5  ;;  %v4009_v18 = vrot.slane %v4007_v35, 4  ;;  %v9639_v29 = vcombine.low %v8409_v41, %v8424_v3 }
 0x119   : > { %6571 = vmatmul.mubr.bf16.gmra.mxu0 %v6812_v0  ;;  %v3944_v30 = vsel %vm6906_vm2, %v8725_v28, %v8713_v54  ;;  %v8779_v51 = vsel %vm7217_vm5, %v5810_v6, %v4598_v22  ;;  %v4013_v42 = vshll.u32 %v8755_v5, 16  ;;  %v3958_v41 = vsel %vm6906_vm2, %v3953_v53, %v8702_v55  ;;  %v5729_v54 = vld [vmem:[%s6875_s23 + $0x90] sm:$0xf] }
 0x11a   : > { %6638 = vmatprep.mubr.bf16.mxu0 %v9639_v29  ;;  %v8782_v1 = vpop.f32.mrf.mxu0  ;;  %v4000_v3 = vor.u32 %v3999_v63, %v3996_v26  ;;  %v4010_v13 = vor.u32 %v4009_v18, %v8761_v31  ;;  %v4612_v28 = vrot.slane %v8729_v15, 5  ;;  %v9641_v22 = vcombine.low %v8326_v44, %v8331_v8 }
 0x11b   : > { %v3968_v6 = vsel %vm6906_vm2, %v3963_v12, %v3967_v37  ;;  %v8800_v55 = vsel %vm7217_vm5, %v4600_v11, %v4601_v17  ;;  %v3991_v53 = vrot.slane %v3989_v34, 5  ;;  %v5811_v18 = vrot.slane %v5795_v45, 9  ;;  %v8809_v12 = vld [vmem:[%s6875_s23 + $0x94] sm:$0xf] }
 0x11c   : > { %v8791_v35 = vpop.f32.mrf.mxu1  ;;  %6523 = vmatmul.mubr.bf16.gmra.mxu1 %v9641_v22  ;;  %v8802_v26 = vpop.f32.mrf.mxu0  ;;  %v3977_v15 = vrot.slane %v3976_v62, 4  ;;  %v3987_v63 = vrot.slane %v3986_v9, 4  ;;  %v4607_v29 = vrot.slane %v4605_v21, 4  ;;  %v4608_v0 = vrot.slane %v8748_v4, 5 }
 0x11d   : > { %9640 = vst [vmem:[#allocation21_spill] sm:$0xff] %v8791_v35  ;;  %6590 = vmatprep.mubr.bf16.mxu1 %v8518_v40  ;;  %v4015_v8 = vrot.slane %v4013_v42, 5  ;;  %v5812_v37 = vrot.slane %v5796_v52, 9  ;;  %v4018_v11 = vshrl.u32 %v5729_v54, 16  ;;  %v4021_v17 = vshll.u32 %v5729_v54, 16 }
 0x11e   : > { %v8806_v44 = vpop.f32.mrf.mxu1  ;;  %v8811_v34 = vpop.f32.mrf.mxu0  ;;  %v4001_v45 = vrot.slane %v4000_v3, 4  ;;  %v4011_v22 = vrot.slane %v4010_v13, 4  ;;  %v4614_v40 = vrot.slane %v4612_v28, 4  ;;  %v4615_v62 = vrot.slane %v8755_v5, 5  ;;  %v8832_v54 = vld [vmem:[%s6875_s23 + $0x98] sm:$0x1] }
 0x11f   : > { %9642 = vst [vmem:[#allocation22_spill] sm:$0xff] %v8806_v44  ;;  %v9644_v4 = vsel %vm6906_vm2, %v8691_v47, %v8655_v48  ;;  %v8823_v52 = vcombine.low %v3958_v41, %v3968_v6  ;;  %v8829_v13 = vsel %vm7217_vm5, %v5811_v18, %v4605_v21  ;;  %v3982_v48 = vsel %vm6906_vm2, %v3977_v15, %v8750_v14  ;;  %v5732_v41 = vld [vmem:[%s6875_s23 + $0x9c] sm:$0xf]  ;;  %v8849_v6 = vld [vmem:[%s6875_s23 + $0xa0] sm:$0xf] }
 0x120   : > { %v8814_v9 = vpop.f32.mrf.mxu1  ;;  %v8821_v42 = vcombine.low %v9644_v4, %v3944_v30  ;;  %v6352_v5 = vpop.f32.mrf.mxu0  ;;  %v3992_v47 = vsel %vm6906_vm2, %v3987_v63, %v3991_v53  ;;  %v8844_v30 = vsel %vm7217_vm5, %v4607_v29, %v4608_v0  ;;  %v4027_v21 = vshll.u32 %v8809_v12, 16  ;;  %v8936_v35 = vld [vmem:[%s6875_s23 + $0xb0] sm:$0x1] }
 0x121   : > { %9643 = vst [vmem:[#allocation23_spill] sm:$0xff] %v8814_v9  ;;  %v9645_v9 = vcombine.low %v8481_v20, %v8485_v19  ;;  %v9647_v20 = vcombine.low %v8537_v36, %v8553_v59  ;;  %v8858_v19 = vsel %vm7217_vm5, %v5812_v37, %v4612_v28  ;;  %v4020_v14 = vrot.slane %v4018_v11, 4  ;;  %v8873_v37 = vld [vmem:[%s6875_s23 + $0x90] sm:$0xe] }
 0x122   : > { %v8851_v18 = vpop.f32.mrf.mxu1  ;;  %v4023_v53 = vrot.slane %v4021_v17, 5  ;;  %v4031_v0 = vshrl.u32 %v8809_v12, 16  ;;  %v1544_v15 = vpop.f32.mrf.mxu0  ;;  %v4006_v63 = vsel %vm6906_vm2, %v4001_v45, %v8761_v31  ;;  %v4016_v29 = vsel %vm6906_vm2, %v4011_v22, %v4015_v8 }
 0x123   : > { %6639 = vmatmul.mubr.bf16.vlgmr.msra.gmra.mxu0 %v9645_v9  ;;  %9646 = vst [vmem:[#allocation24_spill] sm:$0xff] %v8851_v18  ;;  %v8868_v36 = vsel %vm7217_vm5, %v4614_v40, %v4615_v62  ;;  %v4037_v59 = vshll.u32 %v8832_v54, 16  ;;  %v4042_v11 = vshrl.u32 %v5732_v41, 16  ;;  %v4045_v17 = vshll.u32 %v5732_v41, 16 }
 0x124   : > { %6642 = vmatprep.mubr.bf16.mxu0 %v9647_v20  ;;  %v6304_v28 = vpop.f32.mrf.mxu1  ;;  %6591 = vmatmul.mubr.bf16.vlgmr.msra.gmra.mxu1 %v8524_v61  ;;  %v4051_v9 = vshll.u32 %v8849_v6, 16  ;;  %v4055_v31 = vshrl.u32 %v8849_v6, 16  ;;  %v6353_v45 = vpop.f32.mrf.mxu0  ;;  %v8879_v22 = vcombine.low %v3982_v48, %v3992_v47  ;;  %v8883_v40 = vrot.slane %v4027_v21, 5  ;;  %v8897_v61 = vld [vmem:[%s6875_s23 + $0xa4] sm:$0x1] }
 0x125   : > { %v1100_v8 = vadd.f32 %v6304_v28, %v8374_v24  ;;  %6594 = vmatprep.mubr.bf16.mxu1 %v8624_v58  ;;  %v8885_v4 = vcombine.low %v4006_v63, %v4016_v29  ;;  %v4024_v20 = vor.u32 %v4023_v53, %v4020_v14  ;;  %v4033_v24 = vrot.slane %v4031_v0, 4  ;;  %v5735_v28 = vld [vmem:[%s6875_s23 + $0xa8] sm:$0xf]  ;;  %v8902_v14 = vld [vmem:[%s6875_s23 + $0xac] sm:$0xf] }
 0x126   : > { %v1091_v62 = vpop.f32.mrf.mxu1  ;;  %v1547_v48 = vpop.f32.mrf.mxu0  ;;  %v8893_v47 = vrot.slane %v4037_v59, 5  ;;  %v5813_v21 = vrot.slane %v8873_v37, 9  ;;  %v4044_v29 = vrot.slane %v4042_v11, 4  ;;  %v4047_v18 = vrot.slane %v4045_v17, 5 }
 0x127   : > { %v8890_v3 = vadd.f32 %v6352_v5, %v1100_v8  ;;  %v1092_v58 = vadd.f32 %v1091_v62, %v8395_v57  ;;  %v8899_v44 = vrot.slane %v4051_v9, 5  ;;  %v4057_v41 = vrot.slane %v4055_v31, 4  ;;  %v9653_v62 = vld [vmem:[#allocation3_spill] sm:$0xff] }
 0x128   : > { %v6305_v63 = vpop.f32.mrf.mxu1  ;;  %v6356_v5 = vpop.f32.mrf.mxu0  ;;  %v9650_v0 = vcombine.low %v8587_v33, %v8595_v23  ;;  %v4066_v59 = vshrl.u32 %v5735_v28, 16  ;;  %v4069_v37 = vshll.u32 %v5735_v28, 16  ;;  %v9651_v11 = vcombine.low %v8639_v7, %v8643_v50 }
 0x129   : > { %9648 = vst [vmem:[#allocation25_spill] sm:$0xff] %v8890_v3  ;;  %v8904_v53 = vadd.f32 %v1544_v15, %v1092_v58  ;;  %v1103_v57 = vadd.f32 %v6305_v63, %v8431_v38  ;;  %v8913_v17 = vrot.slane %v4024_v20, 4  ;;  %v4034_v15 = vor.u32 %v4033_v24, %v8883_v40  ;;  %v5798_v58 = vld [vmem:[%s6875_s23 + $0x9c] sm:$0xe] }
 0x12a   : > { %v1094_v8 = vpop.f32.mrf.mxu1  ;;  %v4619_v9 = vrot.slane %v8809_v12, 5  ;;  %v4061_v38 = vshll.u32 %v8897_v61, 16  ;;  %v1560_v23 = vpop.f32.mrf.mxu0  ;;  %v4622_v28 = vrot.slane %v8832_v54, 5  ;;  %v4075_v63 = vshll.u32 %v8902_v14, 16 }
 0x12b   : > { %9649 = vst [vmem:[#allocation26_spill] sm:$0xff] %v8904_v53  ;;  %6643 = vmatmul.mubr.bf16.gmra.mxu0 %v9650_v0  ;;  %v8918_v31 = vadd.f32 %v6353_v45, %v1103_v57  ;;  %v1095_v33 = vadd.f32 %v1094_v8, %v9653_v62  ;;  %v4048_v50 = vor.u32 %v4047_v18, %v4044_v29  ;;  %v4626_v12 = vrot.slane %v8849_v6, 5  ;;  %v9654_v57 = vld [vmem:[#allocation7_spill] sm:$0xff]  ;;  %v9655_v6 = vld [vmem:[#allocation9_spill] sm:$0xff] }
 0x12c   : > { %6646 = vmatprep.mubr.bf16.mxu0 %v9651_v11  ;;  %v6308_v7 = vpop.f32.mrf.mxu1  ;;  %6595 = vmatmul.mubr.bf16.gmra.mxu1 %v8632_v2  ;;  %v4058_v20 = vor.u32 %v4057_v41, %v8899_v44  ;;  %v4079_v45 = vshrl.u32 %v8902_v14, 16  ;;  %v6357_v8 = vpop.f32.mrf.mxu0  ;;  %v4068_v54 = vrot.slane %v4066_v59, 4  ;;  %v4071_v11 = vrot.slane %v4069_v37, 5 }
 0x12d   : > { %9652 = vst [vmem:[#allocation27_spill] sm:$0xff] %v8918_v31  ;;  %v8928_v24 = vadd.f32 %v1547_v48, %v1095_v33  ;;  %v1116_v0 = vadd.f32 %v6308_v7, %v9654_v57  ;;  %6598 = vmatprep.mubr.bf16.mxu1 %v8674_v25  ;;  %v4035_v31 = vrot.slane %v4034_v15, 4  ;;  %v4621_v2 = vrot.slane %v4619_v9, 4 }
 0x12e   : > { %v1107_v62 = vpop.f32.mrf.mxu1  ;;  %v4063_v18 = vrot.slane %v4061_v38, 5  ;;  %v5814_v29 = vrot.slane %v5798_v58, 9  ;;  %v1563_v3 = vpop.f32.mrf.mxu0  ;;  %v8938_v48 = vrot.slane %v4075_v63, 5  ;;  %v4081_v33 = vrot.slane %v4079_v45, 4 }
 0x12f   : > { %v8932_v41 = vadd.f32 %v6356_v5, %v1116_v0  ;;  %v1108_v53 = vadd.f32 %v1107_v62, %v9655_v6  ;;  %v4049_v57 = vrot.slane %v4048_v50, 4  ;;  %v4059_v25 = vrot.slane %v4058_v20, 4 }
 0x130   : > { %v6309_v7 = vpop.f32.mrf.mxu1  ;;  %v4628_v59 = vrot.slane %v4626_v12, 4  ;;  %v4629_v37 = vrot.slane %v8897_v61, 5  ;;  %v6360_v38 = vpop.f32.mrf.mxu0  ;;  %v9656_v58 = vcombine.low %v8681_v49, %v8685_v16  ;;  %v8949_v63 = vsel %vm7217_vm5, %v5813_v21, %v4619_v9  ;;  %v5799_v21 = vld [vmem:[%s6875_s23 + $0xa8] sm:$0xe] }
 0x131   : > { %v8941_v15 = vadd.f32 %v1560_v23, %v1108_v53  ;;  %v1119_v5 = vadd.f32 %v6309_v7, %v8578_v39  ;;  %v4072_v50 = vor.u32 %v4071_v11, %v4068_v54  ;;  %v9657_v20 = vcombine.low %v8717_v60, %v8739_v10 }
 0x132   : > { %v1110_v45 = vpop.f32.mrf.mxu1  ;;  %v4030_v39 = vsel %vm6906_vm2, %v8913_v17, %v8883_v40  ;;  %v4040_v49 = vsel %vm6906_vm2, %v4035_v31, %v8893_v47  ;;  %v8963_v16 = vsel %vm7217_vm5, %v4621_v2, %v4622_v28  ;;  %v4085_v61 = vshll.u32 %v8936_v35, 16  ;;  %v1576_v60 = vpop.f32.mrf.mxu0  ;;  %v5738_v17 = vld [vmem:[%s6875_s23 + $0xb4] sm:$0xf]  ;;  %v9658_v47 = vld [vmem:[#allocation18_spill] sm:$0xff]  ;;  %v8992_v2 = vld [vmem:[%s6875_s23 + $0xb8] sm:$0xf] }
 0x133   : > { %6647 = vmatmul.mubr.bf16.gmra.mxu0 %v9656_v58  ;;  %v8967_v53 = vadd.f32 %v6357_v8, %v1119_v5  ;;  %v1111_v10 = vadd.f32 %v1110_v45, %v8612_v46  ;;  %v4082_v9 = vor.u32 %v4081_v33, %v8938_v48  ;;  %v4633_v40 = vrot.slane %v8902_v14, 5  ;;  %v9659_v8 = vld [vmem:[#allocation13_spill] sm:$0xff] }
 0x134   : > { %6650 = vmatprep.mubr.bf16.mxu0 %v9657_v20  ;;  %v6312_v23 = vpop.f32.mrf.mxu1  ;;  %6599 = vmatmul.mubr.bf16.gmra.mxu1 %v9658_v47  ;;  %v4054_v31 = vsel %vm6906_vm2, %v4049_v57, %v8899_v44  ;;  %v4064_v28 = vsel %vm6906_vm2, %v4059_v25, %v4063_v18  ;;  %v8981_v46 = vsel %vm7217_vm5, %v5814_v29, %v4626_v12  ;;  %v6361_v11 = vpop.f32.mrf.mxu0  ;;  %v4073_v62 = vrot.slane %v4072_v50, 4  ;;  %v9660_v57 = vld [vmem:[#allocation15_spill] sm:$0xff]  ;;  %v9664_v47 = vld [vmem:[#allocation20_spill] sm:$0xff] }
 0x135   : > { %v8985_v0 = vsel %vm7217_vm5, %v4628_v59, %v4629_v37  ;;  %v8987_v14 = vadd.f32 %v1563_v3, %v1111_v10  ;;  %v1132_v54 = vadd.f32 %v6312_v23, %v9659_v8  ;;  %6602 = vmatprep.mubr.bf16.mxu1 %v8821_v42  ;;  %v5815_v44 = vrot.slane %v5799_v21, 9 }
 0x136   : > { %v1123_v18 = vpop.f32.mrf.mxu1  ;;  %v4087_v6 = vrot.slane %v4085_v61, 5  ;;  %v4636_v12 = vrot.slane %v8936_v35, 5  ;;  %v4090_v29 = vshrl.u32 %v5738_v17, 16  ;;  %v4093_v33 = vshll.u32 %v5738_v17, 16  ;;  %v1579_v25 = vpop.f32.mrf.mxu0 }
 0x137   : > { %v8995_v7 = vadd.f32 %v6360_v38, %v1132_v54  ;;  %v1124_v3 = vadd.f32 %v1123_v18, %v9660_v57  ;;  %v4083_v59 = vrot.slane %v4082_v9, 4  ;;  %v4635_v37 = vrot.slane %v4633_v40, 4  ;;  %v9661_v38 = vld [vmem:[#allocation17_spill] sm:$0xff] }
 0x138   : > { %v6313_v42 = vpop.f32.mrf.mxu1  ;;  %v8998_v5 = vcombine.low %v4030_v39, %v4040_v49  ;;  %v5845_v58 = vcombine.low %v8949_v63, %v8963_v16  ;;  %v9002_v50 = vcombine.low %v4054_v31, %v4064_v28  ;;  %v4099_v35 = vshll.u32 %v8992_v2, 16  ;;  %v6364_v61 = vpop.f32.mrf.mxu0  ;;  %v5741_v49 = vld [vmem:[%s6875_s23 + $0xc0] sm:$0xf]  ;;  %v9016_v16 = vld [vmem:[%s6875_s23 + $0xc4] sm:$0xf] }
 0x139   : > { %v9005_v45 = vadd.f32 %v1576_v60, %v1124_v3  ;;  %v1135_v20 = vadd.f32 %v6313_v42, %v9661_v38  ;;  %v9662_v21 = vcombine.low %v8779_v51, %v8800_v55  ;;  %v5846_v39 = vcombine.low %v8981_v46, %v8985_v0  ;;  %v9669_v46 = vld [vmem:[#allocation6_spill] sm:$0xff] }
 0x13a   : > { %v4103_v63 = vshrl.u32 %v8992_v2, 16  ;;  %v1126_v10 = vpop.f32.mrf.mxu1  ;;  %v9663_v60 = vcombine.low %v8829_v13, %v8844_v30  ;;  %v4078_v51 = vsel %vm6906_vm2, %v4073_v62, %v8938_v48  ;;  %v9026_v55 = vsel %vm7217_vm5, %v5815_v44, %v4633_v40  ;;  %v1592_v28 = vpop.f32.mrf.mxu0  ;;  %v9038_v30 = vld [vmem:[%s6875_s23 + $0xbc] sm:$0x1]  ;;  %v5800_v48 = vld [vmem:[%s6875_s23 + $0xb4] sm:$0xe] }
 0x13b   : > { %6651 = vmatmul.mubr.bf16.gmra.mxu0 %v9662_v21  ;;  %v4092_v9 = vrot.slane %v4090_v29, 4  ;;  %v4095_v17 = vrot.slane %v4093_v33, 5  ;;  %v9028_v23 = vadd.f32 %v6361_v11, %v1135_v20  ;;  %v1127_v31 = vadd.f32 %v1126_v10, %v9664_v47  ;;  %v9060_v20 = vld [vmem:[%s6875_s23 + $0xc8] sm:$0x1] }
 0x13c   : > { %6654 = vmatprep.mubr.bf16.mxu0 %v9663_v60  ;;  %v4088_v8 = vsel %vm6906_vm2, %v4083_v59, %v4087_v6  ;;  %v9035_v13 = vsel %vm7217_vm5, %v4635_v37, %v4636_v12  ;;  %v6316_v54 = vpop.f32.mrf.mxu1  ;;  %6603 = vmatmul.mubr.bf16.gmra.mxu1 %v8823_v52  ;;  %v9042_v40 = vrot.slane %v4099_v35, 5  ;;  %v4114_v11 = vshrl.u32 %v5741_v49, 16  ;;  %v6365_v29 = vpop.f32.mrf.mxu0 }
 0x13d   : > { %v4117_v62 = vshll.u32 %v5741_v49, 16  ;;  %v4123_v44 = vshll.u32 %v9016_v16, 16  ;;  %v9045_v18 = vadd.f32 %v1579_v25, %v1127_v31  ;;  %v1148_v6 = vadd.f32 %v6316_v54, %v8763_v43  ;;  %6606 = vmatprep.mubr.bf16.mxu1 %v8879_v22 }
 0x13e   : > { %v4105_v12 = vrot.slane %v4103_v63, 4  ;;  %v4127_v33 = vshrl.u32 %v9016_v16, 16  ;;  %v1139_v57 = vpop.f32.mrf.mxu1  ;;  %v4096_v3 = vor.u32 %v4095_v17, %v4092_v9  ;;  %v4109_v52 = vshll.u32 %v9038_v30, 16  ;;  %v1595_v43 = vpop.f32.mrf.mxu0  ;;  %v5744_v9 = vld [vmem:[%s6875_s23 + $0xcc] sm:$0xf] }
 0x13f   : > { %v5816_v59 = vrot.slane %v5800_v48, 9  ;;  %v4640_v37 = vrot.slane %v8992_v2, 5  ;;  %v9052_v42 = vadd.f32 %v6364_v61, %v1148_v6  ;;  %v1140_v25 = vadd.f32 %v1139_v57, %v8782_v1  ;;  %v5801_v48 = vld [vmem:[%s6875_s23 + $0xc0] sm:$0xe] }
 0x140   : > { %v9055_v35 = vcombine.low %v4078_v51, %v4088_v8  ;;  %v5847_v22 = vcombine.low %v9026_v55, %v9035_v13  ;;  %v6317_v38 = vpop.f32.mrf.mxu1  ;;  %v4116_v21 = vrot.slane %v4114_v11, 4  ;;  %v4119_v63 = vrot.slane %v4117_v62, 5  ;;  %v6368_v10 = vpop.f32.mrf.mxu0  ;;  %v9082_v8 = vld [vmem:[%s6875_s23 + $0xd0] sm:$0xf] }
 0x141   : > { %v9062_v49 = vrot.slane %v4123_v44, 5  ;;  %v4129_v2 = vrot.slane %v4127_v33, 4  ;;  %v9064_v61 = vadd.f32 %v1592_v28, %v1140_v25  ;;  %v1151_v1 = vadd.f32 %v6317_v38, %v8802_v26 }
 0x142   : > { %v9665_v60 = vcombine.low %v8858_v19, %v8868_v36  ;;  %v4106_v51 = vor.u32 %v4105_v12, %v9042_v40  ;;  %v4643_v55 = vrot.slane %v9038_v30, 5  ;;  %v1142_v17 = vpop.f32.mrf.mxu1  ;;  %v9073_v47 = vrot.slane %v4096_v3, 4  ;;  %v1608_v13 = vpop.f32.mrf.mxu0 }
 0x143   : > { %v9075_v31 = vrot.slane %v4109_v52, 5  ;;  %v9079_v26 = vsel %vm7217_vm5, %v5816_v59, %v4640_v37  ;;  %v4642_v28 = vrot.slane %v4640_v37, 4  ;;  %v9084_v19 = vadd.f32 %v6365_v29, %v1151_v1  ;;  %v9666_v29 = vld [vmem:[#allocation2_spill] sm:$0xff] }
 0x144   : > { %6655 = vmatmul.mubr.bf16.gmra.mxu0 %v9665_v60  ;;  %v1143_v36 = vadd.f32 %v1142_v17, %v8811_v34  ;;  %v4133_v30 = vshll.u32 %v9060_v20, 16  ;;  %v6320_v54 = vpop.f32.mrf.mxu1  ;;  %6607 = vmatmul.mubr.bf16.gmra.mxu1 %v8885_v4  ;;  %v4120_v11 = vor.u32 %v4119_v63, %v4116_v21  ;;  %v4130_v62 = vor.u32 %v4129_v2, %v9062_v49  ;;  %v6369_v57 = vpop.f32.mrf.mxu0 }
 0x145   : > { %6658 = vmatprep.mubr.bf16.mxu0 %v5845_v58  ;;  %v4647_v58 = vrot.slane %v9016_v16, 5  ;;  %v4138_v44 = vshrl.u32 %v5744_v9, 16  ;;  %v4141_v6 = vshll.u32 %v5744_v9, 16  ;;  %v1164_v33 = vadd.f32 %v6320_v54, %v9666_v29  ;;  %6610 = vmatprep.mubr.bf16.mxu1 %v8998_v5 }
 0x146   : > { %v9092_v12 = vadd.f32 %v1595_v43, %v1143_v36  ;;  %v4147_v34 = vshll.u32 %v9082_v8, 16  ;;  %v4151_v3 = vshrl.u32 %v9082_v8, 16  ;;  %v1155_v16 = vpop.f32.mrf.mxu1  ;;  %v4107_v52 = vrot.slane %v4106_v51, 4  ;;  %v9667_v43 = vld [vmem:[#allocation5_spill] sm:$0xff]  ;;  %v1611_v21 = vpop.f32.mrf.mxu0  ;;  %v9668_v36 = vld [vmem:[#allocation4_spill] sm:$0xff] }
 0x147   : > { %v4644_v4 = vsel %vm7217_vm5, %v4642_v28, %v4643_v55  ;;  %v5817_v59 = vrot.slane %v5801_v48, 9  ;;  %v4650_v37 = vrot.slane %v9060_v20, 5  ;;  %v9101_v25 = vadd.f32 %v6368_v10, %v1164_v33  ;;  %v5746_v20 = vld [vmem:[%s6875_s23 + $0xd4] sm:$0x1] }
 0x148   : > { %v1156_v38 = vadd.f32 %v1155_v16, %v9667_v43  ;;  %v4135_v63 = vrot.slane %v4133_v30, 5  ;;  %v4649_v5 = vrot.slane %v4647_v58, 4  ;;  %v6321_v2 = vpop.f32.mrf.mxu1  ;;  %v4121_v1 = vrot.slane %v4120_v11, 4 }
 0x149   : > { %v4131_v60 = vrot.slane %v4130_v62, 4  ;;  %v4140_v9 = vrot.slane %v4138_v44, 4  ;;  %v4143_v17 = vrot.slane %v4141_v6, 5  ;;  %v1167_v55 = vadd.f32 %v6321_v2, %v9668_v36  ;;  %v6372_v28 = vpop.f32.mrf.mxu0  ;;  %v5802_v6 = vld [vmem:[%s6875_s23 + $0xcc] sm:$0xe] }
 0x14a   : > { %v9104_v51 = vadd.f32 %v1608_v13, %v1156_v38  ;;  %v9111_v10 = vrot.slane %v4147_v34, 5  ;;  %v4153_v30 = vrot.slane %v4151_v3, 4  ;;  %v1158_v48 = vpop.f32.mrf.mxu1  ;;  %v4102_v13 = vsel %vm6906_vm2, %v9073_v47, %v9042_v40 }
 0x14b   : > { %v4112_v54 = vsel %vm6906_vm2, %v4107_v52, %v9075_v31  ;;  %v4654_v11 = vrot.slane %v9082_v8, 5  ;;  %v9121_v62 = vadd.f32 %v6369_v57, %v1167_v55  ;;  %v1159_v0 = vadd.f32 %v1158_v48, %v9669_v46  ;;  %v9670_v57 = vld [vmem:[#allocation8_spill] sm:$0xff] }
 0x14c   : > { %6659 = vmatmul.mubr.bf16.gmra.mxu0 %v5846_v39  ;;  %v1624_v39 = vpop.f32.mrf.mxu0  ;;  %v4648_v44 = vsel %vm7217_vm5, %v5817_v59, %v4647_v58  ;;  %v6324_v29 = vpop.f32.mrf.mxu1  ;;  %6611 = vmatmul.mubr.bf16.gmra.mxu1 %v9002_v50  ;;  %v5848_v40 = vcombine.low %v9079_v26, %v4644_v4  ;;  %v4126_v47 = vsel %vm6906_vm2, %v4121_v1, %v9062_v49  ;;  %v4157_v8 = vshll.u32 %v5746_v20, 16  ;;  %v9673_v48 = vld [vmem:[#allocation12_spill] sm:$0xff] }
 0x14d   : > { %6662 = vmatprep.mubr.bf16.mxu0 %v5847_v22  ;;  %v4651_v22 = vsel %vm7217_vm5, %v4649_v5, %v4650_v37  ;;  %v4144_v31 = vor.u32 %v4143_v17, %v4140_v9  ;;  %v9134_v33 = vadd.f32 %v1611_v21, %v1159_v0  ;;  %v1180_v34 = vadd.f32 %v6324_v29, %v9670_v57  ;;  %v9671_v37 = vld [vmem:[#allocation10_spill] sm:$0xff]  ;;  %v9672_v9 = vld [vmem:[#allocation11_spill] sm:$0xff] }
 0x14e   : > { %v6373_v58 = vpop.f32.mrf.mxu0  ;;  %6614 = vmatprep.mubr.bf16.mxu1 %v9055_v35  ;;  %v4136_v3 = vsel %vm6906_vm2, %v4131_v60, %v4135_v63  ;;  %v4154_v50 = vor.u32 %v4153_v30, %v9111_v10  ;;  %v1171_v16 = vpop.f32.mrf.mxu1  ;;  %v5849_v26 = vcombine.low %v4648_v44, %v4651_v22  ;;  %v5818_v52 = vrot.slane %v5802_v6, 9  ;;  %v9674_v44 = vld [vmem:[#allocation14_spill] sm:$0xff] }
 0x14f   : > { %v4656_v4 = vrot.slane %v4654_v11, 4  ;;  %v4657_v59 = vrot.slane %v5746_v20, 5  ;;  %v9141_v49 = vadd.f32 %v6372_v28, %v1180_v34  ;;  %v1172_v43 = vadd.f32 %v1171_v16, %v9671_v37  ;;  %v9677_v37 = vld [vmem:[#allocation21_spill] sm:$0xff] }
 0x150   : > { %v1627_v38 = vpop.f32.mrf.mxu0  ;;  %v6325_v21 = vpop.f32.mrf.mxu1  ;;  %v5776_v5 = vcombine.low %v4102_v13, %v4112_v54  ;;  %v5777_v2 = vcombine.low %v4126_v47, %v4136_v3  ;;  %v4145_v1 = vrot.slane %v4144_v31, 4  ;;  %v4155_v17 = vrot.slane %v4154_v50, 4  ;;  %v9675_v47 = vld [vmem:[#allocation16_spill] sm:$0xff] }
 0x151   : > { %v9144_v35 = vadd.f32 %v1624_v39, %v1172_v43  ;;  %v1183_v63 = vadd.f32 %v6325_v21, %v9672_v9  ;;  %v4159_v36 = vrot.slane %v4157_v8, 5  ;;  %v4655_v28 = vsel %vm7217_vm5, %v5818_v52, %v4654_v11 }
 0x152   : > { %v6376_v60 = vpop.f32.mrf.mxu0  ;;  %v1174_v55 = vpop.f32.mrf.mxu1  ;;  %v4658_v20 = vsel %vm7217_vm5, %v4656_v4, %v4657_v59  ;;  %v4150_v0 = vsel %vm6906_vm2, %v4145_v1, %v9111_v10  ;;  %v9676_v10 = vld [vmem:[#allocation19_spill] sm:$0xff] }
 0x153   : > { %v9151_v30 = vadd.f32 %v6373_v58, %v1183_v63  ;;  %v1175_v13 = vadd.f32 %v1174_v55, %v9673_v48  ;;  %v4160_v56 = vsel %vm6906_vm2, %v4155_v17, %v4159_v36  ;;  %v5850_v11 = vcombine.low %v4655_v28, %v4658_v20  ;;  %v9679_v17 = vld [vmem:[#allocation23_spill] sm:$0xff]  ;;  %v9680_v20 = vld [vmem:[#allocation24_spill] sm:$0xff] }
 0x154   : > { %6663 = vmatmul.mubr.bf16.gmra.mxu0 %v5848_v40  ;;  %v1640_v54 = vpop.f32.mrf.mxu0  ;;  %v6328_v46 = vpop.f32.mrf.mxu1  ;;  %6615 = vmatmul.mubr.bf16.gmra.mxu1 %v5776_v5  ;;  %v5778_v34 = vcombine.low %v4150_v0, %v4160_v56  ;;  %v9681_v0 = vld [vmem:[#allocation25_spill] sm:$0xff] }
 0x155   : > { %6666 = vmatprep.mubr.bf16.mxu0 %v5849_v26  ;;  %v9157_v39 = vadd.f32 %v1627_v38, %v1175_v13  ;;  %v1196_v22 = vadd.f32 %v6328_v46, %v9674_v44  ;;  %6618 = vmatprep.mubr.bf16.mxu1 %v5777_v2  ;;  %v9678_v2 = vld [vmem:[#allocation22_spill] sm:$0xff] }
 0x156   : > { %v6377_v6 = vpop.f32.mrf.mxu0  ;;  %v1187_v29 = vpop.f32.mrf.mxu1 }
 0x157   : > { %v9162_v40 = vadd.f32 %v6376_v60, %v1196_v22  ;;  %v1188_v31 = vadd.f32 %v1187_v29, %v9675_v47 }
 0x158   : > { %v1643_v8 = vpop.f32.mrf.mxu0  ;;  %v6329_v57 = vpop.f32.mrf.mxu1 }
 0x159   : > { %v9165_v58 = vadd.f32 %v1640_v54, %v1188_v31  ;;  %v1199_v3 = vadd.f32 %v6329_v57, %v9676_v10  ;;  %v9683_v57 = vld [vmem:[#allocation27_spill] sm:$0xff] }
 0x15a   : > { %v6380_v50 = vpop.f32.mrf.mxu0  ;;  %v1190_v16 = vpop.f32.mrf.mxu1 }
 0x15b   : > { %v9168_v26 = vadd.f32 %v6377_v6, %v1199_v3  ;;  %v1191_v27 = vadd.f32 %v1190_v16, %v8758_v32 }
 0x15c   : > { %6667 = vmatmul.mubr.bf16.gmra.mxu0 %v5850_v11  ;;  %v1656_v52 = vpop.f32.mrf.mxu0  ;;  %v6332_v4 = vpop.f32.mrf.mxu1  ;;  %6619 = vmatmul.mubr.bf16.gmra.mxu1 %v5778_v34  ;;  %v9682_v11 = vld [vmem:[#allocation26_spill] sm:$0xff] }
 0x15d   : > { %v9171_v59 = vadd.f32 %v1643_v8, %v1191_v27  ;;  %v1212_v43 = vadd.f32 %v6332_v4, %v9677_v37 }
 0x15e   : > { %v6381_v38 = vpop.f32.mrf.mxu0  ;;  %v1203_v21 = vpop.f32.mrf.mxu1 }
 0x15f   : > { %v9174_v5 = vadd.f32 %v6380_v50, %v1212_v43  ;;  %v1204_v1 = vadd.f32 %v1203_v21, %v9678_v2 }
 0x160   : > { %v1659_v9 = vpop.f32.mrf.mxu0  ;;  %v6333_v63 = vpop.f32.mrf.mxu1 }
 0x161   : > { %v9177_v60 = vadd.f32 %v1656_v52, %v1204_v1  ;;  %v1215_v36 = vadd.f32 %v6333_v63, %v9679_v17 }
 0x162   : > { %v6448_v32 = vpop.f32.mrf.mxu0  ;;  %v1206_v55 = vpop.f32.mrf.mxu1 }
 0x163   : > { %v9180_v28 = vadd.f32 %v6381_v38, %v1215_v36  ;;  %v1207_v48 = vadd.f32 %v1206_v55, %v9680_v20 }
 0x164   : > { %v2685_v13 = vpop.f32.mrf.mxu0  ;;  %v6400_v54 = vpop.f32.mrf.mxu1 }
 0x165   : > { %v9183_v46 = vadd.f32 %v1659_v9, %v1207_v48  ;;  %v2060_v44 = vadd.f32 %v6400_v54, %v9681_v0 }
 0x166   : > { %v6449_v22 = vpop.f32.mrf.mxu0  ;;  %v1931_v6 = vpop.f32.mrf.mxu1 }
 0x167   : > { %v9186_v56 = vadd.f32 %v6448_v32, %v2060_v44  ;;  %v2058_v29 = vadd.f32 %v1931_v6, %v9682_v11 }
 0x168   : > { %v2688_v47 = vpop.f32.mrf.mxu0  ;;  %v6401_v31 = vpop.f32.mrf.mxu1 }
 0x169   : > { %v9189_v8 = vadd.f32 %v2685_v13, %v2058_v29  ;;  %v2061_v34 = vadd.f32 %v6401_v31, %v9683_v57 }
 0x16a   : > { %v6452_v10 = vpop.f32.mrf.mxu0  ;;  %v1934_v3 = vpop.f32.mrf.mxu1 }
 0x16b   : > { %v9192_v50 = vadd.f32 %v6449_v22, %v2061_v34  ;;  %v2059_v16 = vadd.f32 %v1934_v3, %v8928_v24 }
 0x16c   : > { %v2701_v27 = vpop.f32.mrf.mxu0  ;;  %v6404_v52 = vpop.f32.mrf.mxu1 }
 0x16d   : > { %v9195_v4 = vadd.f32 %v2688_v47, %v2059_v16  ;;  %v2064_v37 = vadd.f32 %v6404_v52, %v8932_v41 }
 0x16e   : > { %v6453_v43 = vpop.f32.mrf.mxu0  ;;  %v1947_v38 = vpop.f32.mrf.mxu1 }
 0x16f   : > { %v9198_v21 = vadd.f32 %v6452_v10, %v2064_v37  ;;  %v2062_v2 = vadd.f32 %v1947_v38, %v8941_v15 }
 0x170   : > { %v2704_v1 = vpop.f32.mrf.mxu0  ;;  %v6405_v9 = vpop.f32.mrf.mxu1 }
 0x171   : > { %v9201_v63 = vadd.f32 %v2701_v27, %v2062_v2  ;;  %v2065_v17 = vadd.f32 %v6405_v9, %v8967_v53 }
 0x172   : > { %v6456_v36 = vpop.f32.mrf.mxu0  ;;  %v1950_v24 = vpop.f32.mrf.mxu1 }
 0x173   : > { %v9204_v32 = vadd.f32 %v6453_v43, %v2065_v17  ;;  %v2063_v55 = vadd.f32 %v1950_v24, %v8987_v14 }
 0x174   : > { %v2717_v20 = vpop.f32.mrf.mxu0  ;;  %v6408_v41 = vpop.f32.mrf.mxu1 }
 0x175   : > { %v9207_v48 = vadd.f32 %v2704_v1, %v2063_v55  ;;  %v2068_v13 = vadd.f32 %v6408_v41, %v8995_v7 }
 0x176   : > { %v6457_v54 = vpop.f32.mrf.mxu0  ;;  %v1963_v15 = vpop.f32.mrf.mxu1 }
 0x177   : > { %v9210_v0 = vadd.f32 %v6456_v36, %v2068_v13  ;;  %v2066_v44 = vadd.f32 %v1963_v15, %v9005_v45 }
 0x178   : > { %v2720_v22 = vpop.f32.mrf.mxu0  ;;  %v6409_v53 = vpop.f32.mrf.mxu1 }
 0x179   : > { %v9213_v6 = vadd.f32 %v2717_v20, %v2066_v44  ;;  %v2069_v11 = vadd.f32 %v6409_v53, %v9028_v23 }
 0x17a   : > { %v6460_v29 = vpop.f32.mrf.mxu0  ;;  %v1966_v14 = vpop.f32.mrf.mxu1 }
 0x17b   : > { %v9216_v47 = vadd.f32 %v6457_v54, %v2069_v11  ;;  %v2067_v31 = vadd.f32 %v1966_v14, %v9045_v18 }
 0x17c   : > { %v2733_v57 = vpop.f32.mrf.mxu0  ;;  %v6412_v7 = vpop.f32.mrf.mxu1 }
 0x17d   : > { %v9219_v34 = vadd.f32 %v2720_v22, %v2067_v31  ;;  %v2072_v10 = vadd.f32 %v6412_v7, %v9052_v42 }
 0x17e   : > { %v6461_v3 = vpop.f32.mrf.mxu0  ;;  %v1979_v45 = vpop.f32.mrf.mxu1 }
 0x17f   : > { %v9222_v16 = vadd.f32 %v6460_v29, %v2072_v10  ;;  %v2070_v27 = vadd.f32 %v1979_v45, %v9064_v61 }
 0x180   : > { %v2736_v52 = vpop.f32.mrf.mxu0  ;;  %v6413_v23 = vpop.f32.mrf.mxu1 }
 0x181   : > { %v9225_v37 = vadd.f32 %v2733_v57, %v2070_v27  ;;  %v2073_v43 = vadd.f32 %v6413_v23, %v9084_v19 }
 0x182   : > { %v6464_v38 = vpop.f32.mrf.mxu0  ;;  %v1982_v18 = vpop.f32.mrf.mxu1 }
 0x183   : > { %v9228_v2 = vadd.f32 %v6461_v3, %v2073_v43  ;;  %v2071_v1 = vadd.f32 %v1982_v18, %v9092_v12 }
 0x184   : > { %v2749_v9 = vpop.f32.mrf.mxu0  ;;  %v6416_v42 = vpop.f32.mrf.mxu1 }
 0x185   : > { %v9231_v17 = vadd.f32 %v2736_v52, %v2071_v1  ;;  %v2076_v36 = vadd.f32 %v6416_v42, %v9101_v25 }
 0x186   : > { %v6465_v24 = vpop.f32.mrf.mxu0  ;;  %v1995_v61 = vpop.f32.mrf.mxu1 }
 0x187   : > { %v9234_v55 = vadd.f32 %v6464_v38, %v2076_v36  ;;  %v2074_v20 = vadd.f32 %v1995_v61, %v9104_v51 }
 0x188   : > { %v2752_v41 = vpop.f32.mrf.mxu0  ;;  %v6417_v19 = vpop.f32.mrf.mxu1 }
 0x189   : > { %v9237_v13 = vadd.f32 %v2749_v9, %v2074_v20  ;;  %v2077_v54 = vadd.f32 %v6417_v19, %v9121_v62 }
 0x18a   : > { %v6468_v15 = vpop.f32.mrf.mxu0  ;;  %v1998_v12 = vpop.f32.mrf.mxu1 }
 0x18b   : > { %v9240_v44 = vadd.f32 %v6465_v24, %v2077_v54  ;;  %v2075_v22 = vadd.f32 %v1998_v12, %v9134_v33 }
 0x18c   : > { %v2765_v53 = vpop.f32.mrf.mxu0  ;;  %v6420_v25 = vpop.f32.mrf.mxu1 }
 0x18d   : > { %v9243_v11 = vadd.f32 %v2752_v41, %v2075_v22  ;;  %v2080_v29 = vadd.f32 %v6420_v25, %v9141_v49 }
 0x18e   : > { %v6469_v14 = vpop.f32.mrf.mxu0  ;;  %v2011_v51 = vpop.f32.mrf.mxu1 }
 0x18f   : > { %v9246_v31 = vadd.f32 %v6468_v15, %v2080_v29  ;;  %v2078_v57 = vadd.f32 %v2011_v51, %v9144_v35 }
 0x190   : > { %v2768_v7 = vpop.f32.mrf.mxu0  ;;  %v6421_v62 = vpop.f32.mrf.mxu1 }
 0x191   : > { %v9249_v10 = vadd.f32 %v2765_v53, %v2078_v57  ;;  %v2081_v3 = vadd.f32 %v6421_v62, %v9151_v30 }
 0x192   : > { %v6472_v45 = vpop.f32.mrf.mxu0  ;;  %v2014_v33 = vpop.f32.mrf.mxu1 }
 0x193   : > { %v9252_v27 = vadd.f32 %v6469_v14, %v2081_v3  ;;  %v2079_v52 = vadd.f32 %v2014_v33, %v9157_v39 }
 0x194   : > { %v2781_v23 = vpop.f32.mrf.mxu0  ;;  %v6424_v49 = vpop.f32.mrf.mxu1 }
 0x195   : > { %v9255_v43 = vadd.f32 %v2768_v7, %v2079_v52  ;;  %v2084_v38 = vadd.f32 %v6424_v49, %v9162_v40 }
 0x196   : > { %v6473_v18 = vpop.f32.mrf.mxu0  ;;  %v2027_v35 = vpop.f32.mrf.mxu1 }
 0x197   : > { %v9258_v1 = vadd.f32 %v6472_v45, %v2084_v38  ;;  %v2082_v9 = vadd.f32 %v2027_v35, %v9165_v58 }
 0x198   : > { %v2784_v42 = vpop.f32.mrf.mxu0  ;;  %v6425_v30 = vpop.f32.mrf.mxu1 }
 0x199   : > { %v9261_v36 = vadd.f32 %v2781_v23, %v2082_v9  ;;  %v2085_v24 = vadd.f32 %v6425_v30, %v9168_v26 }
 0x19a   : > { %v6476_v61 = vpop.f32.mrf.mxu0  ;;  %v2030_v39 = vpop.f32.mrf.mxu1 }
 0x19b   : > { %v9264_v20 = vadd.f32 %v6473_v18, %v2085_v24  ;;  %v2083_v41 = vadd.f32 %v2030_v39, %v9171_v59 }
 0x19c   : > { %v2797_v19 = vpop.f32.mrf.mxu0  ;;  %v6428_v40 = vpop.f32.mrf.mxu1 }
 0x19d   : > { %9684 = vst [vmem:[#allocation3_spill] sm:$0xff] %v9264_v20  ;;  %v9267_v54 = vadd.f32 %v2784_v42, %v2083_v41  ;;  %v2088_v15 = vadd.f32 %v6428_v40, %v9174_v5 }
 0x19e   : > { %v6477_v12 = vpop.f32.mrf.mxu0  ;;  %v2043_v58 = vpop.f32.mrf.mxu1 }
 0x19f   : > { %9685 = vst [vmem:[#allocation7_spill] sm:$0xff] %v9267_v54  ;;  %v9270_v22 = vadd.f32 %v6476_v61, %v2088_v15  ;;  %v2086_v53 = vadd.f32 %v2043_v58, %v9177_v60 }
 0x1a0   : > { %v2800_v25 = vpop.f32.mrf.mxu0  ;;  %v6429_v26 = vpop.f32.mrf.mxu1 }
 0x1a1   : > { %v9273_v29 = vadd.f32 %v2797_v19, %v2086_v53  ;;  %v2089_v14 = vadd.f32 %v6429_v26, %v9180_v28 }
 0x1a2   : > { %v6544_v51 = vpop.f32.mrf.mxu0  ;;  %v2046_v59 = vpop.f32.mrf.mxu1 }
 0x1a3   : > { %v9276_v57 = vadd.f32 %v6477_v12, %v2089_v14  ;;  %v2087_v7 = vadd.f32 %v2046_v59, %v9183_v46 }
 0x1a4   : > { %v3570_v62 = vpop.f32.mrf.mxu0  ;;  %v6496_v5 = vpop.f32.mrf.mxu1 }
 0x1a5   : > { %9686 = vst [vmem:[#allocation9_spill] sm:$0xff] %v9276_v57  ;;  %v9279_v3 = vadd.f32 %v2800_v25, %v2087_v7  ;;  %v3312_v45 = vadd.f32 %v6496_v5, %v9186_v56 }
 0x1a6   : > { %v9282_v33 = vpop.f32.mrf.mxu0  ;;  %v3183_v60 = vpop.f32.mrf.mxu1 }
 0x1a7   : > { %9687 = vst [vmem:[#allocation18_spill] sm:$0xff] %v9279_v3  ;;  %v9284_v52 = vadd.f32 %v6544_v51, %v3312_v45  ;;  %v3310_v23 = vadd.f32 %v3183_v60, %v9189_v8 }
 0x1a8   : > { %v9287_v28 = vpop.f32.mrf.mxu0  ;;  %v9289_v49 = vpop.f32.mrf.mxu1 }
 0x1a9   : > { %v9291_v38 = vadd.f32 %v3570_v62, %v3310_v23 }
 0x1aa   : > { %v6548_v46 = vpop.f32.mrf.mxu0  ;;  %v9293_v18 = vpop.f32.mrf.mxu1 }
 0x1ac   : > { %v3586_v35 = vpop.f32.mrf.mxu0  ;;  %v6500_v9 = vpop.f32.mrf.mxu1 }
 0x1ad   : > { %v3316_v56 = vadd.f32 %v6500_v9, %v9198_v21 }
 0x1ae   : > { %v9296_v42 = vpop.f32.mrf.mxu0  ;;  %v3199_v30 = vpop.f32.mrf.mxu1 }
 0x1af   : > { %v9298_v24 = vadd.f32 %v6548_v46, %v3316_v56  ;;  %v3314_v8 = vadd.f32 %v3199_v30, %v9201_v63 }
 0x1b0   : > { %v9301_v61 = vpop.f32.mrf.mxu0  ;;  %v9303_v39 = vpop.f32.mrf.mxu1 }
 0x1b1   : > { %v9305_v41 = vadd.f32 %v3586_v35, %v3314_v8 }
 0x1b2   : > { %v6552_v19 = vpop.f32.mrf.mxu0  ;;  %v9307_v40 = vpop.f32.mrf.mxu1 }
 0x1b4   : > { %v3602_v15 = vpop.f32.mrf.mxu0  ;;  %v6504_v12 = vpop.f32.mrf.mxu1 }
 0x1b5   : > { %v3320_v21 = vadd.f32 %v6504_v12, %v9210_v0 }
 0x1b6   : > { %v9310_v58 = vpop.f32.mrf.mxu0  ;;  %v3215_v53 = vpop.f32.mrf.mxu1 }
 0x1b7   : > { %v9312_v25 = vadd.f32 %v6552_v19, %v3320_v21  ;;  %v3318_v63 = vadd.f32 %v3215_v53, %v9213_v6 }
 0x1b8   : > { %v9315_v26 = vpop.f32.mrf.mxu0  ;;  %v9317_v14 = vpop.f32.mrf.mxu1 }
 0x1b9   : > { %v9319_v51 = vadd.f32 %v3602_v15, %v3318_v63 }
 0x1ba   : > { %v6556_v59 = vpop.f32.mrf.mxu0  ;;  %v9321_v7 = vpop.f32.mrf.mxu1 }
 0x1bc   : > { %v3618_v62 = vpop.f32.mrf.mxu0  ;;  %v6508_v5 = vpop.f32.mrf.mxu1 }
 0x1bd   : > { %v3324_v0 = vadd.f32 %v6508_v5, %v9222_v16 }
 0x1be   : > { %v9324_v45 = vpop.f32.mrf.mxu0  ;;  %v3231_v60 = vpop.f32.mrf.mxu1 }
 0x1bf   : > { %v9326_v23 = vadd.f32 %v6556_v59, %v3324_v0  ;;  %v3322_v6 = vadd.f32 %v3231_v60, %v9225_v37 }
 0x1c0   : > { %v9329_v46 = vpop.f32.mrf.mxu0  ;;  %v9331_v35 = vpop.f32.mrf.mxu1 }
 0x1c1   : > { %v9333_v9 = vadd.f32 %v3618_v62, %v3322_v6 }
 0x1c2   : > { %v6560_v56 = vpop.f32.mrf.mxu0  ;;  %v9335_v30 = vpop.f32.mrf.mxu1 }
 0x1c4   : > { %v3634_v8 = vpop.f32.mrf.mxu0  ;;  %v6512_v19 = vpop.f32.mrf.mxu1 }
 0x1c5   : > { %v3328_v16 = vadd.f32 %v6512_v19, %v9234_v55 }
 0x1c6   : > { %v9338_v15 = vpop.f32.mrf.mxu0  ;;  %v3247_v12 = vpop.f32.mrf.mxu1 }
 0x1c7   : > { %v9340_v21 = vadd.f32 %v6560_v56, %v3328_v16  ;;  %v3326_v37 = vadd.f32 %v3247_v12, %v9237_v13 }
 0x1c8   : > { %v9343_v53 = vpop.f32.mrf.mxu0  ;;  %v9345_v63 = vpop.f32.mrf.mxu1 }
 0x1c9   : > { %v9347_v59 = vadd.f32 %v3634_v8, %v3326_v37 }
 0x1ca   : > { %v6564_v62 = vpop.f32.mrf.mxu0  ;;  %v9349_v5 = vpop.f32.mrf.mxu1 }
 0x1cc   : > { %v3650_v0 = vpop.f32.mrf.mxu0  ;;  %v6516_v60 = vpop.f32.mrf.mxu1 }
 0x1cd   : > { %v3332_v55 = vadd.f32 %v6516_v60, %v9246_v31 }
 0x1ce   : > { %v9352_v6 = vpop.f32.mrf.mxu0  ;;  %v3263_v19 = vpop.f32.mrf.mxu1 }
 0x1cf   : > { %9688 = vst [vmem:[#allocation13_spill] sm:$0xff] %v9352_v6  ;;  %v9354_v56 = vadd.f32 %v6564_v62, %v3332_v55  ;;  %v3330_v13 = vadd.f32 %v3263_v19, %v9249_v10 }
 0x1d0   : > { %v9357_v16 = vpop.f32.mrf.mxu0  ;;  %v9359_v12 = vpop.f32.mrf.mxu1 }
 0x1d1   : > { %9689 = vst [vmem:[#allocation15_spill] sm:$0xff] %v9357_v16  ;;  %v9361_v8 = vadd.f32 %v3650_v0, %v3330_v13 }
 0x1d2   : > { %v6568_v37 = vpop.f32.mrf.mxu0  ;;  %v9363_v3 = vpop.f32.mrf.mxu1 }
 0x1d3   : > { %9690 = vst [vmem:[#allocation17_spill] sm:$0xff] %v9361_v8 }
 0x1d4   : > { %v3666_v57 = vpop.f32.mrf.mxu0  ;;  %v6520_v54 = vpop.f32.mrf.mxu1 }
 0x1d5   : > { %v3336_v31 = vadd.f32 %v6520_v54, %v9258_v1 }
 0x1d6   : > { %v9366_v60 = vpop.f32.mrf.mxu0  ;;  %v3279_v20 = vpop.f32.mrf.mxu1 }
 0x1d7   : > { %9691 = vst [vmem:[#allocation20_spill] sm:$0xff] %v9366_v60  ;;  %v9368_v62 = vadd.f32 %v6568_v37, %v3336_v31  ;;  %v3334_v10 = vadd.f32 %v3279_v20, %v9261_v36 }
 0x1d8   : > { %v9371_v55 = vpop.f32.mrf.mxu0  ;;  %v9373_v19 = vpop.f32.mrf.mxu1 }
 0x1d9   : > { %9692 = vst [vmem:[#allocation2_spill] sm:$0xff] %v9371_v55  ;;  %v9375_v0 = vadd.f32 %v3666_v57, %v3334_v10 }
 0x1da   : > { %v6572_v13 = vpop.f32.mrf.mxu0  ;;  %v9377_v16 = vpop.f32.mrf.mxu1 }
 0x1db   : > { %9693 = vst [vmem:[#allocation5_spill] sm:$0xff] %v9375_v0  ;;  %v3313_v0 = vadd.f32 %v9289_v49, %v9192_v50  ;;  %v9403_v50 = vld [vmem:[%s9521_s2] ss:$0 sm:$0xff] }
 0x1dc   : > { %v3682_v8 = vpop.f32.mrf.mxu0  ;;  %v6524_v6 = vpop.f32.mrf.mxu1 }
 0x1dd   : > { %v3340_v1 = vadd.f32 %v6524_v6, %v9270_v22 }
 0x1de   : > { %v9380_v54 = vpop.f32.mrf.mxu0  ;;  %v3295_v60 = vpop.f32.mrf.mxu1 }
 0x1df   : > { %9694 = vst [vmem:[#allocation4_spill] sm:$0xff] %v9380_v54  ;;  %v9382_v37 = vadd.f32 %v6572_v13, %v3340_v1  ;;  %v3338_v36 = vadd.f32 %v3295_v60, %v9273_v29  ;;  %v3311_v13 = vadd.f32 %v9293_v18, %v9195_v4 }
 0x1e0   : > { %v9385_v20 = vpop.f32.mrf.mxu0  ;;  %v9387_v31 = vpop.f32.mrf.mxu1 }
 0x1e1   : > { %9695 = vst [vmem:[#allocation6_spill] sm:$0xff] %v9382_v37  ;;  %9696 = vst [vmem:[#allocation8_spill] sm:$0xff] %v9385_v20  ;;  %v9389_v57 = vadd.f32 %v3682_v8, %v3338_v36  ;;  %v3700_v20 = vadd.f32 %v9282_v33, %v3313_v0 }
 0x1e2   : > { %v9391_v55 = vpop.f32.mrf.mxu1 }
 0x1e3   : > { %9697 = vst [vmem:[#allocation10_spill] sm:$0xff] %v9389_v57  ;;  %v6640_v10 = vpop.f32.mrf.mxu0  ;;  %9698 = vst [vmem:[#allocation11_spill] sm:$0xff] %v9391_v55  ;;  %v3698_v57 = vadd.f32 %v9287_v28, %v3311_v13 }
 0x1e4   : > { %v6592_v6 = vpop.f32.mrf.mxu1 }
 0x1e5   : > { %v4822_v22 = vpop.f32.mrf.mxu0  ;;  %v4453_v1 = vadd.f32 %v6592_v6, %v9284_v52 }
 0x1e6   : > { %v4324_v60 = vpop.f32.mrf.mxu1 }
 0x1e7   : > { %v6641_v29 = vpop.f32.mrf.mxu0  ;;  %v4951_v54 = vadd.f32 %v6640_v10, %v4453_v1  ;;  %v4451_v8 = vadd.f32 %v4324_v60, %v9291_v38  ;;  %v3317_v38 = vadd.f32 %v9303_v39, %v9204_v32  ;;  %v3315_v1 = vadd.f32 %v9307_v40, %v9207_v48 }
 0x1e8   : > { %v6593_v49 = vpop.f32.mrf.mxu1 }
 0x1e9   : > { %v4825_v36 = vpop.f32.mrf.mxu0  ;;  %v4949_v4 = vadd.f32 %v4822_v22, %v4451_v8  ;;  %v4454_v18 = vadd.f32 %v6593_v49, %v3700_v20  ;;  %v4990_v37 = vadd.f32 %v9403_v50, %v4951_v54  ;;  %v3704_v48 = vadd.f32 %v9296_v42, %v3317_v38 }
 0x1ea   : > { %v4327_v6 = vpop.f32.mrf.mxu1  ;;  %v3702_v40 = vadd.f32 %v9301_v61, %v3315_v1  ;;  %v3321_v42 = vadd.f32 %v9317_v14, %v9216_v47 }
 0x1eb   : > { %v6644_v52 = vpop.f32.mrf.mxu0  ;;  %v4952_v33 = vadd.f32 %v6641_v29, %v4454_v18  ;;  %v4452_v0 = vadd.f32 %v4327_v6, %v3698_v57  ;;  %v4988_v55 = vadd.f32 %v9403_v50, %v4949_v4  ;;  %v5022_v29 = vmax.f32 %v4990_v37, 0.0 }
 0x1ec   : > { %v6596_v60 = vpop.f32.mrf.mxu1 }
 0x1ed   : > { %v4838_v10 = vpop.f32.mrf.mxu0  ;;  %v4991_v28 = vadd.f32 %v9403_v50, %v4952_v33  ;;  %v4950_v20 = vadd.f32 %v4825_v36, %v4452_v0  ;;  %v4457_v22 = vadd.f32 %v6596_v60, %v9298_v24  ;;  %v5020_v37 = vmax.f32 %v4988_v55, 0.0 }
 0x1ee   : > { %v4340_v54 = vpop.f32.mrf.mxu1 }
 0x1ef   : > { %v6645_v13 = vpop.f32.mrf.mxu0  ;;  %v5023_v57 = vmax.f32 %v4991_v28, 0.0  ;;  %v4989_v8 = vadd.f32 %v9403_v50, %v4950_v20  ;;  %v4455_v32 = vadd.f32 %v4340_v54, %v9305_v41  ;;  %v4955_v24 = vadd.f32 %v6644_v52, %v4457_v22 }
 0x1f0   : > { %v6597_v36 = vpop.f32.mrf.mxu1  ;;  %v3319_v22 = vadd.f32 %v9321_v7, %v9219_v34  ;;  %v3708_v54 = vadd.f32 %v9310_v58, %v3321_v42  ;;  %v3325_v58 = vadd.f32 %v9331_v35, %v9228_v2  ;;  %v3323_v42 = vadd.f32 %v9335_v30, %v9231_v17 }
 0x1f1   : > { %v4841_v39 = vpop.f32.mrf.mxu0  ;;  %v5935_v49 = vpack.c.bf16 %v5023_v57, %v5022_v29  ;;  %v5021_v4 = vmax.f32 %v4989_v8, 0.0  ;;  %v4953_v18 = vadd.f32 %v4838_v10, %v4455_v32  ;;  %v4458_v41 = vadd.f32 %v6597_v36, %v3704_v48 }
 0x1f2   : > { %v4343_v33 = vpop.f32.mrf.mxu1  ;;  %v4994_v1 = vadd.f32 %v9403_v50, %v4955_v24  ;;  %v3706_v7 = vadd.f32 %v9315_v26, %v3319_v22  ;;  %v3712_v35 = vadd.f32 %v9324_v45, %v3325_v58 }
 0x1f3   : > { %v6648_v6 = vpop.f32.mrf.mxu0  ;;  %6007 = vst [vmem:[%s9422_s20 + $0x8] sm:$0xff] %v5935_v49   ;;  %v5930_v61 = vpack.c.bf16 %v5021_v4, %v5020_v37  ;;  %v4456_v0 = vadd.f32 %v4343_v33, %v3702_v40  ;;  %v4956_v60 = vadd.f32 %v6645_v13, %v4458_v41  ;;  %v4992_v55 = vadd.f32 %v9403_v50, %v4953_v18 }
 0x1f4   : > { %v6600_v52 = vpop.f32.mrf.mxu1  ;;  %v5026_v32 = vmax.f32 %v4994_v1, 0.0 }
 0x1f5   : > { %v4854_v38 = vpop.f32.mrf.mxu0  ;;  %5931 = vst [vmem:[%s9422_s20] sm:$0xff] %v5930_v61   ;;  %v4954_v28 = vadd.f32 %v4841_v39, %v4456_v0  ;;  %v4461_v10 = vadd.f32 %v6600_v52, %v9312_v25  ;;  %v4995_v47 = vadd.f32 %v9403_v50, %v4956_v60  ;;  %v5024_v25 = vmax.f32 %v4992_v55, 0.0 }
 0x1f6   : > { %v4356_v14 = vpop.f32.mrf.mxu1 }
 0x1f7   : > { %v6649_v20 = vpop.f32.mrf.mxu0  ;;  %v4993_v29 = vadd.f32 %v9403_v50, %v4954_v28  ;;  %v4959_v57 = vadd.f32 %v6648_v6, %v4461_v10  ;;  %v4459_v13 = vadd.f32 %v4356_v14, %v9319_v51  ;;  %v5027_v39 = vmax.f32 %v4995_v47, 0.0 }
 0x1f8   : > { %v6601_v48 = vpop.f32.mrf.mxu1 }
 0x1f9   : > { %v4857_v8 = vpop.f32.mrf.mxu0  ;;  %v5025_v40 = vmax.f32 %v4993_v29, 0.0  ;;  %v4462_v24 = vadd.f32 %v6601_v48, %v3708_v54  ;;  %v5945_v36 = vpack.c.bf16 %v5027_v39, %v5026_v32  ;;  %v4957_v37 = vadd.f32 %v4854_v38, %v4459_v13 }
 0x1fa   : > { %v4359_v49 = vpop.f32.mrf.mxu1  ;;  %v4998_v51 = vadd.f32 %v9403_v50, %v4959_v57  ;;  %v3329_v32 = vadd.f32 %v9345_v63, %v9240_v44 }
 0x1fb   : > { %v6652_v34 = vpop.f32.mrf.mxu0  ;;  %v5940_v4 = vpack.c.bf16 %v5025_v40, %v5024_v25  ;;  %v4960_v18 = vadd.f32 %v6649_v20, %v4462_v24  ;;  %6009 = vst [vmem:[%s9422_s20 + $0x18] sm:$0xff] %v5945_v36   ;;  %v4460_v41 = vadd.f32 %v4359_v49, %v3706_v7  ;;  %v4996_v0 = vadd.f32 %v9403_v50, %v4957_v37 }
 0x1fc   : > { %v6604_v33 = vpop.f32.mrf.mxu1  ;;  %v5030_v60 = vmax.f32 %v4998_v51, 0.0  ;;  %v3710_v20 = vadd.f32 %v9329_v46, %v3323_v42  ;;  %v3327_v46 = vadd.f32 %v9349_v5, %v9243_v11  ;;  %v3716_v5 = vadd.f32 %v9338_v15, %v3329_v32 }
 0x1fd   : > { %v4870_v6 = vpop.f32.mrf.mxu0  ;;  %6008 = vst [vmem:[%s9422_s20 + $0x10] sm:$0xff] %v5940_v4   ;;  %v4999_v26 = vadd.f32 %v9403_v50, %v4960_v18  ;;  %v4465_v61 = vadd.f32 %v6604_v33, %v9326_v23  ;;  %v4958_v38 = vadd.f32 %v4857_v8, %v4460_v41  ;;  %v5028_v14 = vmax.f32 %v4996_v0, 0.0 }
 0x1fe   : > { %v4372_v1 = vpop.f32.mrf.mxu1  ;;  %v3714_v49 = vadd.f32 %v9343_v53, %v3327_v46 }
 0x1ff   : > { %v6653_v2 = vpop.f32.mrf.mxu0  ;;  %v5031_v52 = vmax.f32 %v4999_v26, 0.0  ;;  %v4963_v55 = vadd.f32 %v6652_v34, %v4465_v61  ;;  %v4463_v28 = vadd.f32 %v4372_v1, %v9333_v9  ;;  %v4997_v17 = vadd.f32 %v9403_v50, %v4958_v38 }
 0x200   : > { %v6605_v30 = vpop.f32.mrf.mxu1  ;;  %v3333_v61 = vadd.f32 %v9359_v12, %v9252_v27 }
 0x201   : > { %v4873_v10 = vpop.f32.mrf.mxu0  ;;  %v5955_v23 = vpack.c.bf16 %v5031_v52, %v5030_v60  ;;  %v4961_v22 = vadd.f32 %v4870_v6, %v4463_v28  ;;  %v4466_v47 = vadd.f32 %v6605_v30, %v3712_v35  ;;  %v5029_v54 = vmax.f32 %v4997_v17, 0.0  ;;  %v9699_v28 = vld [vmem:[#allocation13_spill] sm:$0xff] }
 0x202   : > { %v4375_v29 = vpop.f32.mrf.mxu1  ;;  %v5002_v57 = vadd.f32 %v9403_v50, %v4963_v55  ;;  %v3331_v55 = vadd.f32 %v9363_v3, %v9255_v43  ;;  %v9701_v3 = vld [vmem:[#allocation15_spill] sm:$0xff] }
 0x203   : > { %6011 = vst [vmem:[%s9422_s20 + $0x28] sm:$0xff] %v5955_v23   ;;  %v4964_v13 = vadd.f32 %v6653_v2, %v4466_v47  ;;  %v4464_v8 = vadd.f32 %v4375_v29, %v3710_v20  ;;  %v5950_v39 = vpack.c.bf16 %v5029_v54, %v5028_v14  ;;  %v5000_v25 = vadd.f32 %v9403_v50, %v4961_v22  ;;  %v9700_v20 = vld [vmem:[#allocation17_spill] sm:$0xff] }
 0x204   : > { %v6656_v45 = vpop.f32.mrf.mxu0  ;;  %v6608_v48 = vpop.f32.mrf.mxu1  ;;  %v5034_v36 = vmax.f32 %v5002_v57, 0.0  ;;  %v3718_v57 = vadd.f32 %v9701_v3, %v3331_v55  ;;  %v9708_v55 = vld [vmem:[#allocation18_spill] sm:$0xff] }
 0x205   : > { %v5003_v40 = vadd.f32 %v9403_v50, %v4964_v13  ;;  %v4962_v24 = vadd.f32 %v4873_v10, %v4464_v8  ;;  %v4469_v34 = vadd.f32 %v6608_v48, %v9340_v21  ;;  %6010 = vst [vmem:[%s9422_s20 + $0x20] sm:$0xff] %v5950_v39   ;;  %v5032_v18 = vmax.f32 %v5000_v25, 0.0  ;;  %v9702_v13 = vld [vmem:[#allocation3_spill] sm:$0xff] }
 0x206   : > { %v4886_v9 = vpop.f32.mrf.mxu0  ;;  %v4388_v58 = vpop.f32.mrf.mxu1  ;;  %v3720_v10 = vadd.f32 %v9699_v28, %v3333_v61  ;;  %v3337_v8 = vadd.f32 %v9373_v19, %v9702_v13 }
 0x207   : > { %v5035_v37 = vmax.f32 %v5003_v40, 0.0  ;;  %v5001_v44 = vadd.f32 %v9403_v50, %v4962_v24  ;;  %v4467_v63 = vadd.f32 %v4388_v58, %v9347_v59  ;;  %v4967_v4 = vadd.f32 %v6656_v45, %v4469_v34 }
 0x208   : > { %v6657_v7 = vpop.f32.mrf.mxu0  ;;  %v6609_v51 = vpop.f32.mrf.mxu1 }
 0x209   : > { %v5965_v21 = vpack.c.bf16 %v5035_v37, %v5034_v36  ;;  %v5033_v6 = vmax.f32 %v5001_v44, 0.0  ;;  %v4965_v41 = vadd.f32 %v4886_v9, %v4467_v63  ;;  %v4470_v42 = vadd.f32 %v6609_v51, %v3716_v5  ;;  %v9704_v44 = vld [vmem:[#allocation20_spill] sm:$0xff] }
 0x20a   : > { %v4889_v11 = vpop.f32.mrf.mxu0  ;;  %v4391_v26 = vpop.f32.mrf.mxu1  ;;  %v5006_v15 = vadd.f32 %v9403_v50, %v4967_v4  ;;  %v3724_v63 = vadd.f32 %v9704_v44, %v3337_v8 }
 0x20b   : > { %6013 = vst [vmem:[%s9422_s20 + $0x38] sm:$0xff] %v5965_v21   ;;  %v5960_v59 = vpack.c.bf16 %v5033_v6, %v5032_v18  ;;  %v4468_v2 = vadd.f32 %v4391_v26, %v3714_v49  ;;  %v4968_v53 = vadd.f32 %v6657_v7, %v4470_v42  ;;  %v5004_v38 = vadd.f32 %v9403_v50, %v4965_v41  ;;  %v9703_v7 = vld [vmem:[#allocation7_spill] sm:$0xff]  ;;  %v9705_v21 = vld [vmem:[#allocation5_spill] sm:$0xff]  ;;  %v9706_v42 = vld [vmem:[#allocation2_spill] sm:$0xff] }
 0x20c   : > { %v6660_v33 = vpop.f32.mrf.mxu0  ;;  %v6612_v0 = vpop.f32.mrf.mxu1  ;;  %v5038_v47 = vmax.f32 %v5006_v15, 0.0  ;;  %v3335_v58 = vadd.f32 %v9377_v16, %v9703_v7 }
 0x20d   : > { %6012 = vst [vmem:[%s9422_s20 + $0x30] sm:$0xff] %v5960_v59   ;;  %v4966_v1 = vadd.f32 %v4889_v11, %v4468_v2  ;;  %v4473_v60 = vadd.f32 %v6612_v0, %v9354_v56  ;;  %v5007_v27 = vadd.f32 %v9403_v50, %v4968_v53  ;;  %v5036_v56 = vmax.f32 %v5004_v38, 0.0 }
 0x20e   : > { %v4902_v35 = vpop.f32.mrf.mxu0  ;;  %v4404_v12 = vpop.f32.mrf.mxu1  ;;  %v3722_v26 = vadd.f32 %v9706_v42, %v3335_v58 }
 0x20f   : > { %v5005_v17 = vadd.f32 %v9403_v50, %v4966_v1  ;;  %v4971_v30 = vadd.f32 %v6660_v33, %v4473_v60  ;;  %v4471_v23 = vadd.f32 %v4404_v12, %v9700_v20  ;;  %v5039_v45 = vmax.f32 %v5007_v27, 0.0  ;;  %v9707_v60 = vld [vmem:[#allocation9_spill] sm:$0xff]  ;;  %v9709_v27 = vld [vmem:[#allocation11_spill] sm:$0xff] }
 0x210   : > { %v6661_v52 = vpop.f32.mrf.mxu0  ;;  %v6613_v14 = vpop.f32.mrf.mxu1  ;;  %v3339_v12 = vadd.f32 %v9709_v27, %v9708_v55 }
 0x211   : > { %v5037_v54 = vmax.f32 %v5005_v17, 0.0  ;;  %v4474_v29 = vadd.f32 %v6613_v14, %v3720_v10  ;;  %v5975_v9 = vpack.c.bf16 %v5039_v45, %v5038_v47  ;;  %v4969_v32 = vadd.f32 %v4902_v35, %v4471_v23 }
 0x212   : > { %v4905_v22 = vpop.f32.mrf.mxu0  ;;  %v4407_v46 = vpop.f32.mrf.mxu1  ;;  %v5010_v48 = vadd.f32 %v9403_v50, %v4971_v30 }
 0x213   : > { %v5970_v39 = vpack.c.bf16 %v5037_v54, %v5036_v56  ;;  %v4972_v25 = vadd.f32 %v6661_v52, %v4474_v29  ;;  %6015 = vst [vmem:[%s9422_s20 + $0x48] sm:$0xff] %v5975_v9   ;;  %v4472_v24 = vadd.f32 %v4407_v46, %v3718_v57  ;;  %v5008_v11 = vadd.f32 %v9403_v50, %v4969_v32  ;;  %v9711_v54 = vld [vmem:[#allocation10_spill] sm:$0xff]  ;;  %v9713_v57 = vld [vmem:[#allocation8_spill] sm:$0xff] }
 0x214   : > { %v6664_v43 = vpop.f32.mrf.mxu0  ;;  %v6616_v34 = vpop.f32.mrf.mxu1  ;;  %v5042_v4 = vmax.f32 %v5010_v48, 0.0  ;;  %v3341_v52 = vadd.f32 %v9387_v31, %v9707_v60  ;;  %v3726_v13 = vadd.f32 %v9713_v57, %v3339_v12 }
 0x215   : > { %6014 = vst [vmem:[%s9422_s20 + $0x40] sm:$0xff] %v5970_v39   ;;  %v5011_v36 = vadd.f32 %v9403_v50, %v4972_v25  ;;  %v4477_v37 = vadd.f32 %v6616_v34, %v9368_v62  ;;  %v4970_v5 = vadd.f32 %v4905_v22, %v4472_v24  ;;  %v5040_v35 = vmax.f32 %v5008_v11, 0.0  ;;  %v9710_v22 = vld [vmem:[#allocation6_spill] sm:$0xff] }
 0x216   : > { %v4918_v40 = vpop.f32.mrf.mxu0  ;;  %v4420_v49 = vpop.f32.mrf.mxu1 }
 0x217   : > { %v5043_v51 = vmax.f32 %v5011_v36, 0.0  ;;  %v4975_v18 = vadd.f32 %v6664_v43, %v4477_v37  ;;  %v4475_v6 = vadd.f32 %v4420_v49, %v9705_v21  ;;  %v5009_v16 = vadd.f32 %v9403_v50, %v4970_v5  ;;  %v9712_v43 = vld [vmem:[#allocation4_spill] sm:$0xff] }
 0x218   : > { %v6665_v19 = vpop.f32.mrf.mxu0  ;;  %v6617_v33 = vpop.f32.mrf.mxu1  ;;  %v3728_v3 = vadd.f32 %v9712_v43, %v3341_v52 }
 0x219   : > { %v5985_v62 = vpack.c.bf16 %v5043_v51, %v5042_v4  ;;  %v4973_v61 = vadd.f32 %v4918_v40, %v4475_v6  ;;  %v4478_v59 = vadd.f32 %v6617_v33, %v3724_v63  ;;  %v5041_v15 = vmax.f32 %v5009_v16, 0.0 }
 0x21a   : > { %v4921_v41 = vpop.f32.mrf.mxu0  ;;  %v4423_v53 = vpop.f32.mrf.mxu1  ;;  %v5014_v0 = vadd.f32 %v9403_v50, %v4975_v18 }
 0x21b   : > { %6017 = vst [vmem:[%s9422_s20 + $0x58] sm:$0xff] %v5985_v62   ;;  %v4976_v38 = vadd.f32 %v6665_v19, %v4478_v59  ;;  %v4476_v1 = vadd.f32 %v4423_v53, %v3722_v26  ;;  %v5980_v28 = vpack.c.bf16 %v5041_v15, %v5040_v35  ;;  %v5012_v30 = vadd.f32 %v9403_v50, %v4973_v61 }
 0x21c   : > { %v6668_v2 = vpop.f32.mrf.mxu0  ;;  %v6620_v10 = vpop.f32.mrf.mxu1  ;;  %v5046_v14 = vmax.f32 %v5014_v0, 0.0 }
 0x21d   : > { %v5015_v20 = vadd.f32 %v9403_v50, %v4976_v38  ;;  %v4974_v23 = vadd.f32 %v4921_v41, %v4476_v1  ;;  %v4481_v47 = vadd.f32 %v6620_v10, %v9710_v22  ;;  %6016 = vst [vmem:[%s9422_s20 + $0x50] sm:$0xff] %v5980_v28   ;;  %v5044_v46 = vmax.f32 %v5012_v30, 0.0 }
 0x21e   : > { %v4934_v17 = vpop.f32.mrf.mxu0  ;;  %v4436_v45 = vpop.f32.mrf.mxu1 }
 0x21f   : > { %v5047_v56 = vmax.f32 %v5015_v20, 0.0  ;;  %v5013_v31 = vadd.f32 %v9403_v50, %v4974_v23  ;;  %v4479_v29 = vadd.f32 %v4436_v45, %v9711_v54  ;;  %v4979_v8 = vadd.f32 %v6668_v2, %v4481_v47 }
 0x220   : > { %v6621_v9 = vpop.f32.mrf.mxu1  ;;  %v6669_v32 = vpop.f32.mrf.mxu0 }
 0x221   : > { %v5995_v39 = vpack.c.bf16 %v5047_v56, %v5046_v14  ;;  %v5045_v48 = vmax.f32 %v5013_v31, 0.0  ;;  %v4977_v25 = vadd.f32 %v4934_v17, %v4479_v29  ;;  %v4482_v40 = vadd.f32 %v6621_v9, %v3728_v3 }
 0x222   : > { %v4439_v24 = vpop.f32.mrf.mxu1  ;;  %v5018_v58 = vadd.f32 %v9403_v50, %v4979_v8  ;;  %v4937_v37 = vpop.f32.mrf.mxu0 }
 0x223   : > { %6019 = vst [vmem:[%s9422_s20 + $0x68] sm:$0xff] %v5995_v39   ;;  %v5990_v34 = vpack.c.bf16 %v5045_v48, %v5044_v46  ;;  %v4480_v7 = vadd.f32 %v4439_v24, %v3726_v13  ;;  %v4980_v36 = vadd.f32 %v6669_v32, %v4482_v40  ;;  %v5016_v19 = vadd.f32 %v9403_v50, %v4977_v25 }
 0x224   : > { %v5050_v5 = vmax.f32 %v5018_v58, 0.0 }
 0x225   : > { %6018 = vst [vmem:[%s9422_s20 + $0x60] sm:$0xff] %v5990_v34   ;;  %v4978_v44 = vadd.f32 %v4937_v37, %v4480_v7  ;;  %v5019_v63 = vadd.f32 %v9403_v50, %v4980_v36  ;;  %v5048_v4 = vmax.f32 %v5016_v19, 0.0 }
 0x227   : > { %v5017_v11 = vadd.f32 %v9403_v50, %v4978_v44  ;;  %v5051_v49 = vmax.f32 %v5019_v63, 0.0 }
 0x229   : > { %v5049_v51 = vmax.f32 %v5017_v11, 0.0  ;;  %v6005_v18 = vpack.c.bf16 %v5051_v49, %v5050_v5 }
 0x22b   : > { %v6000_v21 = vpack.c.bf16 %v5049_v51, %v5048_v4  ;;  %6021 = vst [vmem:[%s9422_s20 + $0x78] sm:$0xff] %v6005_v18  }
 0x22d   : > { %6020 = vst [vmem:[%s9422_s20 + $0x70] sm:$0xff] %v6000_v21  }
 0x22e PF: > { %s13_s12 = sadd.s32 1, %s6830_s12  }
 0x22f   : > { %p10_p4 = scmp.ge.s32.totalorder %s13_s12, 4  }
 0x231   :  { %12 = sbr.rel (!%p10_p4) target bundleno = 1 (0x1), region = 72 }

</bundles_post_ra>
